<compile_context>
chip_gen: v7x
topology: tpu7x:2x2x1
jax: 0.10.0
libtpu: 0.0.40
codegen_flags: <defaults>
</compile_context>

<pallas_src>
import functools

import jax
import jax.numpy as jnp
from jax.experimental import pallas as pl
from jax.experimental.pallas import tpu as pltpu

LANE = 128


# ------------------------------ Pallas kernel -------------------------------

def _fused_basic_block_kernel(x_ref, w1_ref, b1_ref, w2_ref, b2_ref, o_ref,
                              mid_ref, *, H, W, pad, dilation):
    """One batch element per grid step.

    x_ref   : [1, Hp, Wp, Cp] f32   spatially zero-padded, channel zero-padded input
    w*_ref  : [9, Cp, Cp]     bf16  tap-major weights (kh*3+kw, c_in, c_out)
    b*_ref  : [1, Cp]         f32
    o_ref   : [1, H, W, Cp]   f32
    mid_ref : [Hp, Wp, Cp]    bf16  VMEM scratch: zero-padded conv1 output
    """
    HW = H * W
    Cp = o_ref.shape[-1]
    d = dilation

    # -------------------- conv1 (+ bias, ReLU) --------------------
    acc = None
    for t in range(9):                                        # unrolled 3x3 taps
        kh, kw = divmod(t, 3)
        sl = x_ref[0, kh * d:kh * d + H, kw * d:kw * d + W, :]
        sl = sl.reshape(HW, Cp).astype(jnp.bfloat16)          # bf16 MXU operand
        p = jnp.dot(sl, w1_ref[t], preferred_element_type=jnp.float32)
        acc = p if acc is None else acc + p
    out1 = jnp.maximum(acc + b1_ref[...], 0.0)                # bias broadcast [1,Cp]

    # Zero-padded intermediate stays in VMEM (border zeros == conv2 spatial pad).
    # Stored as bf16: it is re-read 9 times as an MXU operand.
    mid_ref[...] = jnp.zeros_like(mid_ref)
    mid_ref[pad:pad + H, pad:pad + W, :] = out1.astype(jnp.bfloat16).reshape(H, W, Cp)

    # ------------- conv2 (+ bias) + identity residual + ReLU -------------
    acc = None
    for t in range(9):
        kh, kw = divmod(t, 3)
        sl = mid_ref[kh * d:kh * d + H, kw * d:kw * d + W, :].reshape(HW, Cp)
        p = jnp.dot(sl, w2_ref[t], preferred_element_type=jnp.float32)
        acc = p if acc is None else acc + p
    res = x_ref[0, pad:pad + H, pad:pad + W, :].reshape(HW, Cp)   # f32 shortcut
    out2 = jnp.maximum(acc + b2_ref[...] + res, 0.0)
    o_ref[0] = out2.reshape(H, W, Cp)


# ------------------------------ glue (JAX) ----------------------------------

def _round_up(x, m):
    return (x + m - 1) // m * m


def _prep_weight(w_oihw, cp_in, cp_out):
    """PyTorch OIHW -> [9, Cp_in, Cp_out] bf16, tap index = kh*3 + kw."""
    co, ci, kh, kw = w_oihw.shape
    w = jnp.transpose(w_oihw, (2, 3, 1, 0))                        # [3,3,Ci,Co]
    w = jnp.pad(w, ((0, 0), (0, 0), (0, cp_in - ci), (0, cp_out - co)))
    return w.reshape(kh * kw, cp_in, cp_out).astype(jnp.bfloat16)


def _prep_bias(b, cp):
    return jnp.pad(b.astype(jnp.float32), (0, cp - b.shape[0])).reshape(1, cp)


@functools.partial(jax.jit, static_argnames=("stride", "pad", "dilation"))
def basic_block_forward(x_nchw, w1, b1, w2, b2, stride, pad, dilation):
    """BasicBlock forward with downsample=None (identity shortcut)."""
    n, c_in, h, w = x_nchw.shape
    planes = w1.shape[0]

    # Identity shortcut requires shape-preserving convs (trace-time checks).
    assert stride == 1, "downsample=None requires stride == 1"
    assert pad == dilation, "3x3 conv preserves H,W only when pad == dilation"
    assert planes == c_in and w2.shape[0] == planes and w2.shape[1] == planes

    cp = _round_up(max(c_in, planes, LANE), LANE)       # lane-dense channel width
    hp, wp = h + 2 * pad, w + 2 * pad

    # NCHW -> NHWC, zero-pad channels to cp, zero-pad spatially by `pad`.
    x_nhwc = jnp.transpose(x_nchw, (0, 2, 3, 1)).astype(jnp.float32)
    x_p = jnp.pad(x_nhwc, ((0, 0), (pad, pad), (pad, pad), (0, cp - c_in)))

    w1p = _prep_weight(w1, cp, cp)
    w2p = _prep_weight(w2, cp, cp)
    b1p = _prep_bias(b1, cp)
    b2p = _prep_bias(b2, cp)

    kernel = functools.partial(_fused_basic_block_kernel,
                               H=h, W=w, pad=pad, dilation=dilation)

    flops = 2 * 2 * 9 * n * h * w * cp * cp             # 2 convs, 9 taps, 2*M*K*N
    bytes_accessed = (x_p.size * 4 + w1p.size * 2 + w2p.size * 2
                      + b1p.size * 4 + b2p.size * 4 + n * h * w * cp * 4)

    out = pl.pallas_call(
        kernel,
        out_shape=jax.ShapeDtypeStruct((n, h, w, cp), jnp.float32),
        grid_spec=pltpu.PrefetchScalarGridSpec(
            num_scalar_prefetch=0,
            grid=(n,),
            in_specs=[
                pl.BlockSpec((1, hp, wp, cp), lambda i: (i, 0, 0, 0)),   # x (per image)
                pl.BlockSpec((9, cp, cp), lambda i: (0, 0, 0)),          # w1 (constant)
                pl.BlockSpec((1, cp), lambda i: (0, 0)),                 # b1 (constant)
                pl.BlockSpec((9, cp, cp), lambda i: (0, 0, 0)),          # w2 (constant)
                pl.BlockSpec((1, cp), lambda i: (0, 0)),                 # b2 (constant)
            ],
            out_specs=pl.BlockSpec((1, h, w, cp), lambda i: (i, 0, 0, 0)),
            scratch_shapes=[pltpu.VMEM((hp, wp, cp), jnp.bfloat16)],
        ),
        compiler_params=pltpu.CompilerParams(
            dimension_semantics=("parallel",),          # shard batch across TCs
            vmem_limit_bytes=32 * 1024 * 1024,          # safe on v5e/v6e/v7x
        ),
        cost_estimate=pl.CostEstimate(flops=flops, transcendentals=0,
                                      bytes_accessed=bytes_accessed),
    )(x_p, w1p, b1p, w2p, b2p)

    out = out[..., :planes]                             # drop channel padding
    return jnp.transpose(out, (0, 3, 1, 2))             # back to NCHW


# ------------------------------- reference ----------------------------------

def _ref_forward(x, w1, b1, w2, b2, stride, pad, dilation):
    dn = jax.lax.conv_dimension_numbers(x.shape, w1.shape, ("NCHW", "OIHW", "NCHW"))
    o = jax.lax.conv_general_dilated(
        x, w1, (stride, stride), [(pad, pad), (pad, pad)],
        rhs_dilation=(dilation, dilation), dimension_numbers=dn)
    o = jnp.maximum(o + b1[None, :, None, None], 0.0)
    o = jax.lax.conv_general_dilated(
        o, w2, (1, 1), [(pad, pad), (pad, pad)],
        rhs_dilation=(dilation, dilation), dimension_numbers=dn)
    o = o + b2[None, :, None, None] + x
    return jnp.maximum(o, 0.0)


# ---------------------------------- main -------------------------------------

if __name__ == "__main__":
    # BasicBlock(inplanes=4, planes=4, stride=1, downsample=None, pad=1, dilation=1)
    N, INPLANES, PLANES, H, W = 2, 4, 4, 16, 16
    STRIDE, PAD, DILATION = 1, 1, 1

    key = jax.random.PRNGKey(0)
    kx, kw1, kb1, kw2, kb2 = jax.random.split(key, 5)

    x = jax.random.normal(kx, (N, INPLANES, H, W), dtype=jnp.float32)
    w1 = 0.1 * jax.random.normal(kw1, (PLANES, INPLANES, 3, 3), dtype=jnp.float32)
    b1 = 0.1 * jax.random.normal(kb1, (PLANES,), dtype=jnp.float32)
    w2 = 0.1 * jax.random.normal(kw2, (PLANES, PLANES, 3, 3), dtype=jnp.float32)
    b2 = 0.1 * jax.random.normal(kb2, (PLANES,), dtype=jnp.float32)

    out = jax.block_until_ready(
        basic_block_forward(x, w1, b1, w2, b2, STRIDE, PAD, DILATION))
    ref = jax.block_until_ready(
        _ref_forward(x, w1, b1, w2, b2, STRIDE, PAD, DILATION))

    assert out.shape == (N, PLANES, H, W), out.shape
    max_err = float(jnp.max(jnp.abs(out - ref)))
    # bf16 MXU operands / bf16 intermediate, f32 accumulation -> small bounded deviation.
    assert jnp.allclose(out, ref, rtol=2e-2, atol=2e-2), max_err

    print("KERNEL_OK")
</pallas_src>

<mosaic_0001>
module attributes {stable_mosaic.version = 11 : i64} {
  func.func @_fused_basic_block_kernel(%arg0: i32, %arg1: memref<1x18x18x128xf32, #tpu.memory_space<vmem>>, %arg2: memref<9x128x128xbf16, #tpu.memory_space<vmem>>, %arg3: memref<1x128xf32, #tpu.memory_space<vmem>>, %arg4: memref<9x128x128xbf16, #tpu.memory_space<vmem>>, %arg5: memref<1x128xf32, #tpu.memory_space<vmem>>, %arg6: memref<1x16x16x128xf32, #tpu.memory_space<vmem>>, %arg7: memref<18x18x128xbf16, #tpu.memory_space<vmem>>) attributes {dimension_semantics = [#tpu.dimension_semantics<parallel>], iteration_bounds = array<i64: 2>, scalar_prefetch = 0 : i64, scratch_operands = 1 : i64, tpu.core_type = #tpu.core_type<tc>, window_params = [{transform_indices = @transform_0, window_bounds = array<i64: 1, 18, 18, 128>}, {pipeline_mode = #tpu.pipeline_mode<synchronous>, transform_indices = @transform_1, window_bounds = array<i64: 9, 128, 128>}, {pipeline_mode = #tpu.pipeline_mode<synchronous>, transform_indices = @transform_2, window_bounds = array<i64: 1, 128>}, {pipeline_mode = #tpu.pipeline_mode<synchronous>, transform_indices = @transform_3, window_bounds = array<i64: 9, 128, 128>}, {pipeline_mode = #tpu.pipeline_mode<synchronous>, transform_indices = @transform_4, window_bounds = array<i64: 1, 128>}, {transform_indices = @transform_5, window_bounds = array<i64: 1, 16, 16, 128>}]} {
    %c0 = arith.constant 0 : index
    %c0_0 = arith.constant 0 : index
    %c0_1 = arith.constant 0 : index
    %c0_2 = arith.constant 0 : index
    %0 = vector.load %arg1[%c0, %c0_0, %c0_1, %c0_2] : memref<1x18x18x128xf32, #tpu.memory_space<vmem>>, vector<1x16x16x128xf32>
    %1 = vector.shape_cast %0 : vector<1x16x16x128xf32> to vector<16x16x128xf32>
    %2 = vector.shape_cast %1 : vector<16x16x128xf32> to vector<256x128xf32>
    %3 = arith.truncf %2 : vector<256x128xf32> to vector<256x128xbf16>
    %c0_3 = arith.constant 0 : index
    %c0_4 = arith.constant 0 : index
    %c0_5 = arith.constant 0 : index
    %4 = vector.load %arg2[%c0_3, %c0_4, %c0_5] : memref<9x128x128xbf16, #tpu.memory_space<vmem>>, vector<1x128x128xbf16>
    %5 = vector.shape_cast %4 : vector<1x128x128xbf16> to vector<128x128xbf16>
    %cst = arith.constant dense<0.000000e+00> : vector<256x128xf32>
    %6 = tpu.matmul %3, %5, %cst {dimension_numbers = #tpu.dot_dimension_numbers<[1], [0], [0], [1], [0, 0, 1, 1], [], []>} : vector<256x128xbf16>, vector<128x128xbf16>, vector<256x128xf32> -> vector<256x128xf32>
    %c0_6 = arith.constant 0 : index
    %c0_7 = arith.constant 0 : index
    %c1 = arith.constant 1 : index
    %c0_8 = arith.constant 0 : index
    %7 = vector.load %arg1[%c0_6, %c0_7, %c1, %c0_8] : memref<1x18x18x128xf32, #tpu.memory_space<vmem>>, vector<1x16x16x128xf32>
    %8 = vector.shape_cast %7 : vector<1x16x16x128xf32> to vector<16x16x128xf32>
    %9 = vector.shape_cast %8 : vector<16x16x128xf32> to vector<256x128xf32>
    %10 = arith.truncf %9 : vector<256x128xf32> to vector<256x128xbf16>
    %c1_9 = arith.constant 1 : index
    %c0_10 = arith.constant 0 : index
    %c0_11 = arith.constant 0 : index
    %11 = vector.load %arg2[%c1_9, %c0_10, %c0_11] : memref<9x128x128xbf16, #tpu.memory_space<vmem>>, vector<1x128x128xbf16>
    %12 = vector.shape_cast %11 : vector<1x128x128xbf16> to vector<128x128xbf16>
    %cst_12 = arith.constant dense<0.000000e+00> : vector<256x128xf32>
    %13 = tpu.matmul %10, %12, %cst_12 {dimension_numbers = #tpu.dot_dimension_numbers<[1], [0], [0], [1], [0, 0, 1, 1], [], []>} : vector<256x128xbf16>, vector<128x128xbf16>, vector<256x128xf32> -> vector<256x128xf32>
    %14 = arith.addf %6, %13 : vector<256x128xf32>
    %c0_13 = arith.constant 0 : index
    %c0_14 = arith.constant 0 : index
    %c2 = arith.constant 2 : index
    %c0_15 = arith.constant 0 : index
    %15 = vector.load %arg1[%c0_13, %c0_14, %c2, %c0_15] : memref<1x18x18x128xf32, #tpu.memory_space<vmem>>, vector<1x16x16x128xf32>
    %16 = vector.shape_cast %15 : vector<1x16x16x128xf32> to vector<16x16x128xf32>
    %17 = vector.shape_cast %16 : vector<16x16x128xf32> to vector<256x128xf32>
    %18 = arith.truncf %17 : vector<256x128xf32> to vector<256x128xbf16>
    %c2_16 = arith.constant 2 : index
    %c0_17 = arith.constant 0 : index
    %c0_18 = arith.constant 0 : index
    %19 = vector.load %arg2[%c2_16, %c0_17, %c0_18] : memref<9x128x128xbf16, #tpu.memory_space<vmem>>, vector<1x128x128xbf16>
    %20 = vector.shape_cast %19 : vector<1x128x128xbf16> to vector<128x128xbf16>
    %cst_19 = arith.constant dense<0.000000e+00> : vector<256x128xf32>
    %21 = tpu.matmul %18, %20, %cst_19 {dimension_numbers = #tpu.dot_dimension_numbers<[1], [0], [0], [1], [0, 0, 1, 1], [], []>} : vector<256x128xbf16>, vector<128x128xbf16>, vector<256x128xf32> -> vector<256x128xf32>
    %22 = arith.addf %14, %21 : vector<256x128xf32>
    %c0_20 = arith.constant 0 : index
    %c1_21 = arith.constant 1 : index
    %c0_22 = arith.constant 0 : index
    %c0_23 = arith.constant 0 : index
    %23 = vector.load %arg1[%c0_20, %c1_21, %c0_22, %c0_23] : memref<1x18x18x128xf32, #tpu.memory_space<vmem>>, vector<1x16x16x128xf32>
    %24 = vector.shape_cast %23 : vector<1x16x16x128xf32> to vector<16x16x128xf32>
    %25 = vector.shape_cast %24 : vector<16x16x128xf32> to vector<256x128xf32>
    %26 = arith.truncf %25 : vector<256x128xf32> to vector<256x128xbf16>
    %c3 = arith.constant 3 : index
    %c0_24 = arith.constant 0 : index
    %c0_25 = arith.constant 0 : index
    %27 = vector.load %arg2[%c3, %c0_24, %c0_25] : memref<9x128x128xbf16, #tpu.memory_space<vmem>>, vector<1x128x128xbf16>
    %28 = vector.shape_cast %27 : vector<1x128x128xbf16> to vector<128x128xbf16>
    %cst_26 = arith.constant dense<0.000000e+00> : vector<256x128xf32>
    %29 = tpu.matmul %26, %28, %cst_26 {dimension_numbers = #tpu.dot_dimension_numbers<[1], [0], [0], [1], [0, 0, 1, 1], [], []>} : vector<256x128xbf16>, vector<128x128xbf16>, vector<256x128xf32> -> vector<256x128xf32>
    %30 = arith.addf %22, %29 : vector<256x128xf32>
    %c0_27 = arith.constant 0 : index
    %c1_28 = arith.constant 1 : index
    %c1_29 = arith.constant 1 : index
    %c0_30 = arith.constant 0 : index
    %31 = vector.load %arg1[%c0_27, %c1_28, %c1_29, %c0_30] : memref<1x18x18x128xf32, #tpu.memory_space<vmem>>, vector<1x16x16x128xf32>
    %32 = vector.shape_cast %31 : vector<1x16x16x128xf32> to vector<16x16x128xf32>
    %33 = vector.shape_cast %32 : vector<16x16x128xf32> to vector<256x128xf32>
    %34 = arith.truncf %33 : vector<256x128xf32> to vector<256x128xbf16>
    %c4 = arith.constant 4 : index
    %c0_31 = arith.constant 0 : index
    %c0_32 = arith.constant 0 : index
    %35 = vector.load %arg2[%c4, %c0_31, %c0_32] : memref<9x128x128xbf16, #tpu.memory_space<vmem>>, vector<1x128x128xbf16>
    %36 = vector.shape_cast %35 : vector<1x128x128xbf16> to vector<128x128xbf16>
    %cst_33 = arith.constant dense<0.000000e+00> : vector<256x128xf32>
    %37 = tpu.matmul %34, %36, %cst_33 {dimension_numbers = #tpu.dot_dimension_numbers<[1], [0], [0], [1], [0, 0, 1, 1], [], []>} : vector<256x128xbf16>, vector<128x128xbf16>, vector<256x128xf32> -> vector<256x128xf32>
    %38 = arith.addf %30, %37 : vector<256x128xf32>
    %c0_34 = arith.constant 0 : index
    %c1_35 = arith.constant 1 : index
    %c2_36 = arith.constant 2 : index
    %c0_37 = arith.constant 0 : index
    %39 = vector.load %arg1[%c0_34, %c1_35, %c2_36, %c0_37] : memref<1x18x18x128xf32, #tpu.memory_space<vmem>>, vector<1x16x16x128xf32>
    %40 = vector.shape_cast %39 : vector<1x16x16x128xf32> to vector<16x16x128xf32>
    %41 = vector.shape_cast %40 : vector<16x16x128xf32> to vector<256x128xf32>
    %42 = arith.truncf %41 : vector<256x128xf32> to vector<256x128xbf16>
    %c5 = arith.constant 5 : index
    %c0_38 = arith.constant 0 : index
    %c0_39 = arith.constant 0 : index
    %43 = vector.load %arg2[%c5, %c0_38, %c0_39] : memref<9x128x128xbf16, #tpu.memory_space<vmem>>, vector<1x128x128xbf16>
    %44 = vector.shape_cast %43 : vector<1x128x128xbf16> to vector<128x128xbf16>
    %cst_40 = arith.constant dense<0.000000e+00> : vector<256x128xf32>
    %45 = tpu.matmul %42, %44, %cst_40 {dimension_numbers = #tpu.dot_dimension_numbers<[1], [0], [0], [1], [0, 0, 1, 1], [], []>} : vector<256x128xbf16>, vector<128x128xbf16>, vector<256x128xf32> -> vector<256x128xf32>
    %46 = arith.addf %38, %45 : vector<256x128xf32>
    %c0_41 = arith.constant 0 : index
    %c2_42 = arith.constant 2 : index
    %c0_43 = arith.constant 0 : index
    %c0_44 = arith.constant 0 : index
    %47 = vector.load %arg1[%c0_41, %c2_42, %c0_43, %c0_44] : memref<1x18x18x128xf32, #tpu.memory_space<vmem>>, vector<1x16x16x128xf32>
    %48 = vector.shape_cast %47 : vector<1x16x16x128xf32> to vector<16x16x128xf32>
    %49 = vector.shape_cast %48 : vector<16x16x128xf32> to vector<256x128xf32>
    %50 = arith.truncf %49 : vector<256x128xf32> to vector<256x128xbf16>
    %c6 = arith.constant 6 : index
    %c0_45 = arith.constant 0 : index
    %c0_46 = arith.constant 0 : index
    %51 = vector.load %arg2[%c6, %c0_45, %c0_46] : memref<9x128x128xbf16, #tpu.memory_space<vmem>>, vector<1x128x128xbf16>
    %52 = vector.shape_cast %51 : vector<1x128x128xbf16> to vector<128x128xbf16>
    %cst_47 = arith.constant dense<0.000000e+00> : vector<256x128xf32>
    %53 = tpu.matmul %50, %52, %cst_47 {dimension_numbers = #tpu.dot_dimension_numbers<[1], [0], [0], [1], [0, 0, 1, 1], [], []>} : vector<256x128xbf16>, vector<128x128xbf16>, vector<256x128xf32> -> vector<256x128xf32>
    %54 = arith.addf %46, %53 : vector<256x128xf32>
    %c0_48 = arith.constant 0 : index
    %c2_49 = arith.constant 2 : index
    %c1_50 = arith.constant 1 : index
    %c0_51 = arith.constant 0 : index
    %55 = vector.load %arg1[%c0_48, %c2_49, %c1_50, %c0_51] : memref<1x18x18x128xf32, #tpu.memory_space<vmem>>, vector<1x16x16x128xf32>
    %56 = vector.shape_cast %55 : vector<1x16x16x128xf32> to vector<16x16x128xf32>
    %57 = vector.shape_cast %56 : vector<16x16x128xf32> to vector<256x128xf32>
    %58 = arith.truncf %57 : vector<256x128xf32> to vector<256x128xbf16>
    %c7 = arith.constant 7 : index
    %c0_52 = arith.constant 0 : index
    %c0_53 = arith.constant 0 : index
    %59 = vector.load %arg2[%c7, %c0_52, %c0_53] : memref<9x128x128xbf16, #tpu.memory_space<vmem>>, vector<1x128x128xbf16>
    %60 = vector.shape_cast %59 : vector<1x128x128xbf16> to vector<128x128xbf16>
    %cst_54 = arith.constant dense<0.000000e+00> : vector<256x128xf32>
    %61 = tpu.matmul %58, %60, %cst_54 {dimension_numbers = #tpu.dot_dimension_numbers<[1], [0], [0], [1], [0, 0, 1, 1], [], []>} : vector<256x128xbf16>, vector<128x128xbf16>, vector<256x128xf32> -> vector<256x128xf32>
    %62 = arith.addf %54, %61 : vector<256x128xf32>
    %c0_55 = arith.constant 0 : index
    %c2_56 = arith.constant 2 : index
    %c2_57 = arith.constant 2 : index
    %c0_58 = arith.constant 0 : index
    %63 = vector.load %arg1[%c0_55, %c2_56, %c2_57, %c0_58] : memref<1x18x18x128xf32, #tpu.memory_space<vmem>>, vector<1x16x16x128xf32>
    %64 = vector.shape_cast %63 : vector<1x16x16x128xf32> to vector<16x16x128xf32>
    %65 = vector.shape_cast %64 : vector<16x16x128xf32> to vector<256x128xf32>
    %66 = arith.truncf %65 : vector<256x128xf32> to vector<256x128xbf16>
    %c8 = arith.constant 8 : index
    %c0_59 = arith.constant 0 : index
    %c0_60 = arith.constant 0 : index
    %67 = vector.load %arg2[%c8, %c0_59, %c0_60] : memref<9x128x128xbf16, #tpu.memory_space<vmem>>, vector<1x128x128xbf16>
    %68 = vector.shape_cast %67 : vector<1x128x128xbf16> to vector<128x128xbf16>
    %cst_61 = arith.constant dense<0.000000e+00> : vector<256x128xf32>
    %69 = tpu.matmul %66, %68, %cst_61 {dimension_numbers = #tpu.dot_dimension_numbers<[1], [0], [0], [1], [0, 0, 1, 1], [], []>} : vector<256x128xbf16>, vector<128x128xbf16>, vector<256x128xf32> -> vector<256x128xf32>
    %70 = arith.addf %62, %69 : vector<256x128xf32>
    %c0_62 = arith.constant 0 : index
    %c0_63 = arith.constant 0 : index
    %71 = vector.load %arg3[%c0_62, %c0_63] : memref<1x128xf32, #tpu.memory_space<vmem>>, vector<1x128xf32>
    %72 = vector.broadcast %71 : vector<1x128xf32> to vector<256x128xf32>
    %73 = arith.addf %70, %72 : vector<256x128xf32>
    %cst_64 = arith.constant 0.000000e+00 : f32
    %74 = vector.broadcast %cst_64 : f32 to vector<256x128xf32>
    %75 = arith.maximumf %73, %74 : vector<256x128xf32>
    %cst_65 = arith.constant 0.000000e+00 : bf16
    %76 = vector.broadcast %cst_65 : bf16 to vector<18x18x128xbf16>
    %c0_66 = arith.constant 0 : index
    %c0_67 = arith.constant 0 : index
    %c0_68 = arith.constant 0 : index
    %77 = vector.load %arg7[%c0_66, %c0_67, %c0_68] : memref<18x18x128xbf16, #tpu.memory_space<vmem>>, vector<18x18x128xbf16>
    tpu.vector_store %arg7[%c0_66, %c0_67, %c0_68], %76 {strides = array<i32>} : memref<18x18x128xbf16, #tpu.memory_space<vmem>>, vector<18x18x128xbf16>,
    %78 = arith.truncf %75 : vector<256x128xf32> to vector<256x128xbf16>
    %79 = vector.shape_cast %78 : vector<256x128xbf16> to vector<16x16x128xbf16>
    %c1_69 = arith.constant 1 : index
    %c1_70 = arith.constant 1 : index
    %c0_71 = arith.constant 0 : index
    %80 = vector.load %arg7[%c1_69, %c1_70, %c0_71] : memref<18x18x128xbf16, #tpu.memory_space<vmem>>, vector<16x16x128xbf16>
    tpu.vector_store %arg7[%c1_69, %c1_70, %c0_71], %79 {strides = array<i32>} : memref<18x18x128xbf16, #tpu.memory_space<vmem>>, vector<16x16x128xbf16>,
    %c0_72 = arith.constant 0 : index
    %c0_73 = arith.constant 0 : index
    %c0_74 = arith.constant 0 : index
    %81 = vector.load %arg7[%c0_72, %c0_73, %c0_74] : memref<18x18x128xbf16, #tpu.memory_space<vmem>>, vector<16x16x128xbf16>
    %82 = vector.shape_cast %81 : vector<16x16x128xbf16> to vector<256x128xbf16>
    %c0_75 = arith.constant 0 : index
    %c0_76 = arith.constant 0 : index
    %c0_77 = arith.constant 0 : index
    %83 = vector.load %arg4[%c0_75, %c0_76, %c0_77] : memref<9x128x128xbf16, #tpu.memory_space<vmem>>, vector<1x128x128xbf16>
    %84 = vector.shape_cast %83 : vector<1x128x128xbf16> to vector<128x128xbf16>
    %cst_78 = arith.constant dense<0.000000e+00> : vector<256x128xf32>
    %85 = tpu.matmul %82, %84, %cst_78 {dimension_numbers = #tpu.dot_dimension_numbers<[1], [0], [0], [1], [0, 0, 1, 1], [], []>} : vector<256x128xbf16>, vector<128x128xbf16>, vector<256x128xf32> -> vector<256x128xf32>
    %c0_79 = arith.constant 0 : index
    %c1_80 = arith.constant 1 : index
    %c0_81 = arith.constant 0 : index
    %86 = vector.load %arg7[%c0_79, %c1_80, %c0_81] : memref<18x18x128xbf16, #tpu.memory_space<vmem>>, vector<16x16x128xbf16>
    %87 = vector.shape_cast %86 : vector<16x16x128xbf16> to vector<256x128xbf16>
    %c1_82 = arith.constant 1 : index
    %c0_83 = arith.constant 0 : index
    %c0_84 = arith.constant 0 : index
    %88 = vector.load %arg4[%c1_82, %c0_83, %c0_84] : memref<9x128x128xbf16, #tpu.memory_space<vmem>>, vector<1x128x128xbf16>
    %89 = vector.shape_cast %88 : vector<1x128x128xbf16> to vector<128x128xbf16>
    %cst_85 = arith.constant dense<0.000000e+00> : vector<256x128xf32>
    %90 = tpu.matmul %87, %89, %cst_85 {dimension_numbers = #tpu.dot_dimension_numbers<[1], [0], [0], [1], [0, 0, 1, 1], [], []>} : vector<256x128xbf16>, vector<128x128xbf16>, vector<256x128xf32> -> vector<256x128xf32>
    %91 = arith.addf %85, %90 : vector<256x128xf32>
    %c0_86 = arith.constant 0 : index
    %c2_87 = arith.constant 2 : index
    %c0_88 = arith.constant 0 : index
    %92 = vector.load %arg7[%c0_86, %c2_87, %c0_88] : memref<18x18x128xbf16, #tpu.memory_space<vmem>>, vector<16x16x128xbf16>
    %93 = vector.shape_cast %92 : vector<16x16x128xbf16> to vector<256x128xbf16>
    %c2_89 = arith.constant 2 : index
    %c0_90 = arith.constant 0 : index
    %c0_91 = arith.constant 0 : index
    %94 = vector.load %arg4[%c2_89, %c0_90, %c0_91] : memref<9x128x128xbf16, #tpu.memory_space<vmem>>, vector<1x128x128xbf16>
    %95 = vector.shape_cast %94 : vector<1x128x128xbf16> to vector<128x128xbf16>
    %cst_92 = arith.constant dense<0.000000e+00> : vector<256x128xf32>
    %96 = tpu.matmul %93, %95, %cst_92 {dimension_numbers = #tpu.dot_dimension_numbers<[1], [0], [0], [1], [0, 0, 1, 1], [], []>} : vector<256x128xbf16>, vector<128x128xbf16>, vector<256x128xf32> -> vector<256x128xf32>
    %97 = arith.addf %91, %96 : vector<256x128xf32>
    %c1_93 = arith.constant 1 : index
    %c0_94 = arith.constant 0 : index
    %c0_95 = arith.constant 0 : index
    %98 = vector.load %arg7[%c1_93, %c0_94, %c0_95] : memref<18x18x128xbf16, #tpu.memory_space<vmem>>, vector<16x16x128xbf16>
    %99 = vector.shape_cast %98 : vector<16x16x128xbf16> to vector<256x128xbf16>
    %c3_96 = arith.constant 3 : index
    %c0_97 = arith.constant 0 : index
    %c0_98 = arith.constant 0 : index
    %100 = vector.load %arg4[%c3_96, %c0_97, %c0_98] : memref<9x128x128xbf16, #tpu.memory_space<vmem>>, vector<1x128x128xbf16>
    %101 = vector.shape_cast %100 : vector<1x128x128xbf16> to vector<128x128xbf16>
    %cst_99 = arith.constant dense<0.000000e+00> : vector<256x128xf32>
    %102 = tpu.matmul %99, %101, %cst_99 {dimension_numbers = #tpu.dot_dimension_numbers<[1], [0], [0], [1], [0, 0, 1, 1], [], []>} : vector<256x128xbf16>, vector<128x128xbf16>, vector<256x128xf32> -> vector<256x128xf32>
    %103 = arith.addf %97, %102 : vector<256x128xf32>
    %c1_100 = arith.constant 1 : index
    %c1_101 = arith.constant 1 : index
    %c0_102 = arith.constant 0 : index
    %104 = vector.load %arg7[%c1_100, %c1_101, %c0_102] : memref<18x18x128xbf16, #tpu.memory_space<vmem>>, vector<16x16x128xbf16>
    %105 = vector.shape_cast %104 : vector<16x16x128xbf16> to vector<256x128xbf16>
    %c4_103 = arith.constant 4 : index
    %c0_104 = arith.constant 0 : index
    %c0_105 = arith.constant 0 : index
    %106 = vector.load %arg4[%c4_103, %c0_104, %c0_105] : memref<9x128x128xbf16, #tpu.memory_space<vmem>>, vector<1x128x128xbf16>
    %107 = vector.shape_cast %106 : vector<1x128x128xbf16> to vector<128x128xbf16>
    %cst_106 = arith.constant dense<0.000000e+00> : vector<256x128xf32>
    %108 = tpu.matmul %105, %107, %cst_106 {dimension_numbers = #tpu.dot_dimension_numbers<[1], [0], [0], [1], [0, 0, 1, 1], [], []>} : vector<256x128xbf16>, vector<128x128xbf16>, vector<256x128xf32> -> vector<256x128xf32>
    %109 = arith.addf %103, %108 : vector<256x128xf32>
    %c1_107 = arith.constant 1 : index
    %c2_108 = arith.constant 2 : index
    %c0_109 = arith.constant 0 : index
    %110 = vector.load %arg7[%c1_107, %c2_108, %c0_109] : memref<18x18x128xbf16, #tpu.memory_space<vmem>>, vector<16x16x128xbf16>
    %111 = vector.shape_cast %110 : vector<16x16x128xbf16> to vector<256x128xbf16>
    %c5_110 = arith.constant 5 : index
    %c0_111 = arith.constant 0 : index
    %c0_112 = arith.constant 0 : index
    %112 = vector.load %arg4[%c5_110, %c0_111, %c0_112] : memref<9x128x128xbf16, #tpu.memory_space<vmem>>, vector<1x128x128xbf16>
    %113 = vector.shape_cast %112 : vector<1x128x128xbf16> to vector<128x128xbf16>
    %cst_113 = arith.constant dense<0.000000e+00> : vector<256x128xf32>
    %114 = tpu.matmul %111, %113, %cst_113 {dimension_numbers = #tpu.dot_dimension_numbers<[1], [0], [0], [1], [0, 0, 1, 1], [], []>} : vector<256x128xbf16>, vector<128x128xbf16>, vector<256x128xf32> -> vector<256x128xf32>
    %115 = arith.addf %109, %114 : vector<256x128xf32>
    %c2_114 = arith.constant 2 : index
    %c0_115 = arith.constant 0 : index
    %c0_116 = arith.constant 0 : index
    %116 = vector.load %arg7[%c2_114, %c0_115, %c0_116] : memref<18x18x128xbf16, #tpu.memory_space<vmem>>, vector<16x16x128xbf16>
    %117 = vector.shape_cast %116 : vector<16x16x128xbf16> to vector<256x128xbf16>
    %c6_117 = arith.constant 6 : index
    %c0_118 = arith.constant 0 : index
    %c0_119 = arith.constant 0 : index
    %118 = vector.load %arg4[%c6_117, %c0_118, %c0_119] : memref<9x128x128xbf16, #tpu.memory_space<vmem>>, vector<1x128x128xbf16>
    %119 = vector.shape_cast %118 : vector<1x128x128xbf16> to vector<128x128xbf16>
    %cst_120 = arith.constant dense<0.000000e+00> : vector<256x128xf32>
    %120 = tpu.matmul %117, %119, %cst_120 {dimension_numbers = #tpu.dot_dimension_numbers<[1], [0], [0], [1], [0, 0, 1, 1], [], []>} : vector<256x128xbf16>, vector<128x128xbf16>, vector<256x128xf32> -> vector<256x128xf32>
    %121 = arith.addf %115, %120 : vector<256x128xf32>
    %c2_121 = arith.constant 2 : index
    %c1_122 = arith.constant 1 : index
    %c0_123 = arith.constant 0 : index
    %122 = vector.load %arg7[%c2_121, %c1_122, %c0_123] : memref<18x18x128xbf16, #tpu.memory_space<vmem>>, vector<16x16x128xbf16>
    %123 = vector.shape_cast %122 : vector<16x16x128xbf16> to vector<256x128xbf16>
    %c7_124 = arith.constant 7 : index
    %c0_125 = arith.constant 0 : index
    %c0_126 = arith.constant 0 : index
    %124 = vector.load %arg4[%c7_124, %c0_125, %c0_126] : memref<9x128x128xbf16, #tpu.memory_space<vmem>>, vector<1x128x128xbf16>
    %125 = vector.shape_cast %124 : vector<1x128x128xbf16> to vector<128x128xbf16>
    %cst_127 = arith.constant dense<0.000000e+00> : vector<256x128xf32>
    %126 = tpu.matmul %123, %125, %cst_127 {dimension_numbers = #tpu.dot_dimension_numbers<[1], [0], [0], [1], [0, 0, 1, 1], [], []>} : vector<256x128xbf16>, vector<128x128xbf16>, vector<256x128xf32> -> vector<256x128xf32>
    %127 = arith.addf %121, %126 : vector<256x128xf32>
    %c2_128 = arith.constant 2 : index
    %c2_129 = arith.constant 2 : index
    %c0_130 = arith.constant 0 : index
    %128 = vector.load %arg7[%c2_128, %c2_129, %c0_130] : memref<18x18x128xbf16, #tpu.memory_space<vmem>>, vector<16x16x128xbf16>
    %129 = vector.shape_cast %128 : vector<16x16x128xbf16> to vector<256x128xbf16>
    %c8_131 = arith.constant 8 : index
    %c0_132 = arith.constant 0 : index
    %c0_133 = arith.constant 0 : index
    %130 = vector.load %arg4[%c8_131, %c0_132, %c0_133] : memref<9x128x128xbf16, #tpu.memory_space<vmem>>, vector<1x128x128xbf16>
    %131 = vector.shape_cast %130 : vector<1x128x128xbf16> to vector<128x128xbf16>
    %cst_134 = arith.constant dense<0.000000e+00> : vector<256x128xf32>
    %132 = tpu.matmul %129, %131, %cst_134 {dimension_numbers = #tpu.dot_dimension_numbers<[1], [0], [0], [1], [0, 0, 1, 1], [], []>} : vector<256x128xbf16>, vector<128x128xbf16>, vector<256x128xf32> -> vector<256x128xf32>
    %133 = arith.addf %127, %132 : vector<256x128xf32>
    %c0_135 = arith.constant 0 : index
    %c1_136 = arith.constant 1 : index
    %c1_137 = arith.constant 1 : index
    %c0_138 = arith.constant 0 : index
    %134 = vector.load %arg1[%c0_135, %c1_136, %c1_137, %c0_138] : memref<1x18x18x128xf32, #tpu.memory_space<vmem>>, vector<1x16x16x128xf32>
    %135 = vector.shape_cast %134 : vector<1x16x16x128xf32> to vector<16x16x128xf32>
    %136 = vector.shape_cast %135 : vector<16x16x128xf32> to vector<256x128xf32>
    %c0_139 = arith.constant 0 : index
    %c0_140 = arith.constant 0 : index
    %137 = vector.load %arg5[%c0_139, %c0_140] : memref<1x128xf32, #tpu.memory_space<vmem>>, vector<1x128xf32>
    %138 = vector.broadcast %137 : vector<1x128xf32> to vector<256x128xf32>
    %139 = arith.addf %133, %138 : vector<256x128xf32>
    %140 = arith.addf %139, %136 : vector<256x128xf32>
    %cst_141 = arith.constant 0.000000e+00 : f32
    %141 = vector.broadcast %cst_141 : f32 to vector<256x128xf32>
    %142 = arith.maximumf %140, %141 : vector<256x128xf32>
    %143 = vector.shape_cast %142 : vector<256x128xf32> to vector<16x16x128xf32>
    %c0_142 = arith.constant 0 : index
    %c0_143 = arith.constant 0 : index
    %c0_144 = arith.constant 0 : index
    %c0_145 = arith.constant 0 : index
    %144 = vector.load %arg6[%c0_142, %c0_143, %c0_144, %c0_145] : memref<1x16x16x128xf32, #tpu.memory_space<vmem>>, vector<1x16x16x128xf32>
    %145 = vector.shape_cast %144 : vector<1x16x16x128xf32> to vector<16x16x128xf32>
    %146 = vector.shape_cast %143 : vector<16x16x128xf32> to vector<1x16x16x128xf32>
    tpu.vector_store %arg6[%c0_142, %c0_143, %c0_144, %c0_145], %146 {strides = array<i32>} : memref<1x16x16x128xf32, #tpu.memory_space<vmem>>, vector<1x16x16x128xf32>,
    return
  }
  func.func @transform_0(%arg0: i32) -> (i32, i32, i32, i32) {
    %c0_i32 = arith.constant 0 : i32
    %c0_i32_0 = arith.constant 0 : i32
    %c0_i32_1 = arith.constant 0 : i32
    %c0_i32_2 = arith.constant 0 : i32
    return %arg0, %c0_i32, %c0_i32_0, %c0_i32_1 : i32, i32, i32, i32
  }
  func.func @transform_1(%arg0: i32) -> (i32, i32, i32) {
    %c0_i32 = arith.constant 0 : i32
    %c0_i32_0 = arith.constant 0 : i32
    %c0_i32_1 = arith.constant 0 : i32
    %c0_i32_2 = arith.constant 0 : i32
    return %c0_i32, %c0_i32_0, %c0_i32_1 : i32, i32, i32
  }
  func.func @transform_2(%arg0: i32) -> (i32, i32) {
    %c0_i32 = arith.constant 0 : i32
    %c0_i32_0 = arith.constant 0 : i32
    %c0_i32_1 = arith.constant 0 : i32
    return %c0_i32, %c0_i32_0 : i32, i32
  }
  func.func @transform_3(%arg0: i32) -> (i32, i32, i32) {
    %c0_i32 = arith.constant 0 : i32
    %c0_i32_0 = arith.constant 0 : i32
    %c0_i32_1 = arith.constant 0 : i32
    %c0_i32_2 = arith.constant 0 : i32
    return %c0_i32, %c0_i32_0, %c0_i32_1 : i32, i32, i32
  }
  func.func @transform_4(%arg0: i32) -> (i32, i32) {
    %c0_i32 = arith.constant 0 : i32
    %c0_i32_0 = arith.constant 0 : i32
    %c0_i32_1 = arith.constant 0 : i32
    return %c0_i32, %c0_i32_0 : i32, i32
  }
  func.func @transform_5(%arg0: i32) -> (i32, i32, i32, i32) {
    %c0_i32 = arith.constant 0 : i32
    %c0_i32_0 = arith.constant 0 : i32
    %c0_i32_1 = arith.constant 0 : i32
    %c0_i32_2 = arith.constant 0 : i32
    return %arg0, %c0_i32, %c0_i32_0, %c0_i32_1 : i32, i32, i32, i32
  }
}

</mosaic_0001>

<bundles_post_ra>
// kernel: basic_block_forward.1
= control target key start
LH: loop header
LB: loop body
LE: loop exit
PB: predicated region body
PF: predicated region fallthrough
CT: control target
= control target key end

     0   :  { %s11595_s18 = smov 0   ;;  %s14053_s0 = inlined_call_operand.vmem [shape: f32[2,18,18,128], index: 0, kind: input, shape index: {}]   ;;  %s14054_s1 = inlined_call_operand.vmem [shape: bf16[9,128,128], index: 1, kind: input, shape index: {}]   ;;  %s14055_s2 = inlined_call_operand.vmem [shape: f32[1,128], index: 2, kind: input, shape index: {}]   ;;  %s14056_s3 = inlined_call_operand.vmem [shape: bf16[9,128,128], index: 3, kind: input, shape index: {}]   ;;  %s14057_s4 = inlined_call_operand.vmem [shape: f32[1,128], index: 4, kind: input, shape index: {}]   ;;  %s14058_s5 = inlined_call_operand.vmem [shape: f32[2,16,16,128], index: 5, kind: output, shape index: {}]  }
   0x1 LB: > { %s8609_s19 = sadd.s32 4294967295, %s11562_s18   ;;  %p8613_p0 = scmp.ge.s32.totalorder %s11562_s18, 1  ;;  %s11562_s18 = sphi %s11595_s18, %s15_s18  }
   0x2   : > { %p187_p1 = scmp.lt.s32.totalorder %s11562_s18, 3 }
   0x4   : > { %p188_p2 = pnand %p8613_p0, %p187_p1 }
   0x6   : > { %191 = sbr.rel (%p188_p2) target bundleno = 1655 (0x677), region = 40 }
   0xd   : > { %v11320_v0 = vld [vmem:[%s14054_s1 + $0x40] sm:$0xff]   ;;  %p215_p3 = scmp.lt.s32.totalorder %s8609_s19, 1  ;;  %v11321_v1 = vld [vmem:[%s14054_s1 + $0x48] sm:$0xff]   ;;  %v11322_v2 = vld [vmem:[%s14054_s1 + $0x50] sm:$0xff]   ;;  %vm3643_vm0 = vsmask.f32 3328 }
   0xe   : > { %9934 = vmatprep.subr.bf16.mxu0 %v11320_v0  ;;  %v11323_v3 = vld [vmem:[%s14054_s1 + $0x58] sm:$0xff]   ;;  %v11324_v7 = vld [vmem:[%s14054_s1 + $0x60] sm:$0xff]   ;;  %v11325_v8 = vld [vmem:[%s14054_s1 + $0x68] sm:$0xff]   ;;  %vm3644_vm1 = vsmask.f32 7440  ;;  %vm3462_vm3 = vcmask 1043456  }
   0xf   : > { %s14278_s19 = smov (!%p215_p3, %s8609_s19), 1  ;;  %9935 = vmatpush3.bf16.msra.mxu0 %v11320_v0  ;;  %v11326_v9 = vld [vmem:[%s14054_s1 + $0x70] sm:$0xff]   ;;  %v11327_v10 = vld [vmem:[%s14054_s1 + $0x78] sm:$0xff]   ;;  %v11328_v13 = vld [vmem:[%s14054_s1] sm:$0xff]   ;;  %vm3463_vm4 = vsmask.f32 7938 }
  0x10   : > { %9936 = vmatprep.subr.bf16.mxu0 %v11321_v1  ;;  %s11310_s26 = smul.u32 432, %s14278_s19  ;;  %v11329_v18 = vld [vmem:[%s14054_s1 + $0x8] sm:$0xff]   ;;  %v11330_v23 = vld [vmem:[%s14054_s1 + $0x10] sm:$0xff]   ;;  %v11331_v26 = vld [vmem:[%s14054_s1 + $0x18] sm:$0xff]   ;;  %vm3138_vm5 = vsmask.f32 256 }
  0x11   : > { %v11332_v31 = vld [vmem:[%s14054_s1 + $0x20] sm:$0xff]   ;;  %v11333_v34 = vld [vmem:[%s14054_s1 + $0x28] sm:$0xff]   ;;  %v11334_v39 = vld [vmem:[%s14054_s1 + $0x30] sm:$0xff]   ;;  %vm3139_vm6 = vsmask.f32 4368  ;;  %vm3469_vm7 = vcmask 1040384  }
  0x12   : > { %s11618_s29 = scalar_lea.vmem %s14053_s0, %s11310_s26  ;;  %v11335_v41 = vld [vmem:[%s14054_s1 + $0x38] sm:$0xff]   ;;  %v11336_v47 = vld [vmem:[%s14054_s1 + $0x80] sm:$0xff]   ;;  %vm12221_vm2 = vmor %vm3643_vm0, %vm3644_vm1  ;;  %vm4673_vm11 = vcmask 1042432   ;;  %vm4674_vm12 = vcmask 1046532   ;;  %s9469_s7 = sshll.u32 %s14278_s19, 8 }
  0x13   : > { %9937 = vmatpush3.bf16.msra.mxu0 %v11321_v1  ;;  %v290_v4 = vld [vmem:[%s11618_s29 + $0x1] sm:$0xff]  ;;  %v291_v5 = vld [vmem:[%s11618_s29 + $0x9] sm:$0xff]  ;;  %v292_v11 = vld [vmem:[%s11618_s29 + $0x19] sm:$0xff]  ;;  %s13959_s10 = scalar_lea.vmem %s14058_s5, %s9469_s7 }
  0x14   : > { %9938 = vmatprep.subr.bf16.mxu0 %v11322_v2  ;;  %v322_v6 = vpack.c.bf16 %v291_v5, %v290_v4  ;;  %v293_v12 = vld [vmem:[%s11618_s29 + $0x21] sm:$0xff]  ;;  %v294_v14 = vld [vmem:[%s11618_s29 + $0x31] sm:$0xff]  ;;  %v295_v15 = vld [vmem:[%s11618_s29 + $0x39] sm:$0xff] }
  0x15   : > { %v11644_v16 = vpack.c.bf16 %v293_v12, %v292_v11  ;;  %v11646_v17 = vpack.c.bf16 %v295_v15, %v294_v14  ;;  %v296_v19 = vld [vmem:[%s11618_s29 + $0x49] sm:$0xff]  ;;  %v297_v20 = vld [vmem:[%s11618_s29 + $0x51] sm:$0xff]  ;;  %v298_v21 = vld [vmem:[%s11618_s29 + $0x61] sm:$0xff] }
  0x16   : > { %9950 = vmatprep.mubr.bf16.mxu0 %v322_v6  ;;  %v299_v22 = vld [vmem:[%s11618_s29 + $0x69] sm:$0xff]  ;;  %v11660_v24 = vpack.c.bf16 %v297_v20, %v296_v19  ;;  %v300_v27 = vld [vmem:[%s11618_s29 + $0x79] sm:$0xff]  ;;  %v301_v28 = vld [vmem:[%s11618_s29 + $0x81] sm:$0xff] }
  0x17   : > { %9939 = vmatpush3.bf16.msra.mxu0 %v11322_v2  ;;  %v11662_v25 = vpack.c.bf16 %v299_v22, %v298_v21  ;;  %v302_v29 = vld [vmem:[%s11618_s29 + $0x91] sm:$0xff]  ;;  %v303_v30 = vld [vmem:[%s11618_s29 + $0x99] sm:$0xff]  ;;  %v11676_v32 = vpack.c.bf16 %v301_v28, %v300_v27  ;;  %v304_v35 = vld [vmem:[%s11618_s29 + $0xa9] sm:$0xff] }
  0x18   : > { %9940 = vmatprep.subr.bf16.mxu0 %v11323_v3  ;;  %v11678_v33 = vpack.c.bf16 %v303_v30, %v302_v29  ;;  %v305_v36 = vld [vmem:[%s11618_s29 + $0xb1] sm:$0xff]  ;;  %v306_v37 = vld [vmem:[%s11618_s29 + $0xc1] sm:$0xff]  ;;  %v307_v38 = vld [vmem:[%s11618_s29 + $0xc9] sm:$0xff] }
  0x19   : > { %v11692_v40 = vpack.c.bf16 %v305_v36, %v304_v35  ;;  %v11697_v42 = vpack.c.bf16 %v307_v38, %v306_v37  ;;  %v308_v43 = vld [vmem:[%s11618_s29 + $0xd9] sm:$0xff]  ;;  %v309_v44 = vld [vmem:[%s11618_s29 + $0xe1] sm:$0xff]  ;;  %v310_v45 = vld [vmem:[%s11618_s29 + $0xf1] sm:$0xff] }
  0x1a   : > { %v311_v46 = vld [vmem:[%s11618_s29 + $0xf9] sm:$0xff]  ;;  %v11708_v48 = vpack.c.bf16 %v309_v44, %v308_v43  ;;  %v312_v50 = vld [vmem:[%s11618_s29 + $0x109] sm:$0xff]  ;;  %v313_v51 = vld [vmem:[%s11618_s29 + $0x111] sm:$0xff] }
  0x1b   : > { %9941 = vmatpush3.bf16.msra.mxu0 %v11323_v3  ;;  %v11710_v49 = vpack.c.bf16 %v311_v46, %v310_v45  ;;  %v314_v52 = vld [vmem:[%s11618_s29 + $0x121] sm:$0xff]  ;;  %v315_v53 = vld [vmem:[%s11618_s29 + $0x129] sm:$0xff]  ;;  %v11718_v54 = vpack.c.bf16 %v313_v51, %v312_v50  ;;  %v316_v56 = vld [vmem:[%s11618_s29 + $0x139] sm:$0xff] }
  0x1c   : > { %9942 = vmatprep.subr.bf16.mxu0 %v11324_v7  ;;  %v11720_v55 = vpack.c.bf16 %v315_v53, %v314_v52  ;;  %v317_v57 = vld [vmem:[%s11618_s29 + $0x141] sm:$0xff]  ;;  %v318_v58 = vld [vmem:[%s11618_s29 + $0x151] sm:$0xff]  ;;  %v319_v59 = vld [vmem:[%s11618_s29 + $0x159] sm:$0xff] }
  0x1d   : > { %v11728_v60 = vpack.c.bf16 %v317_v57, %v316_v56  ;;  %v11730_v61 = vpack.c.bf16 %v319_v59, %v318_v58  ;;  %v320_v62 = vld [vmem:[%s11618_s29 + $0x169] sm:$0xff]  ;;  %v321_v63 = vld [vmem:[%s11618_s29 + $0x171] sm:$0xff]  ;;  %v226_v0 = vld [vmem:[%s11618_s29] sm:$0xff] }
  0x1e   : > { %v227_v1 = vld [vmem:[%s11618_s29 + $0x8] sm:$0xff]  ;;  %v11738_v2 = vpack.c.bf16 %v321_v63, %v320_v62  ;;  %v228_v4 = vld [vmem:[%s11618_s29 + $0x18] sm:$0xff]  ;;  %v229_v5 = vld [vmem:[%s11618_s29 + $0x20] sm:$0xff] }
  0x1f   : > { %9943 = vmatpush3.bf16.msra.mxu0 %v11324_v7  ;;  %v258_v3 = vpack.c.bf16 %v227_v1, %v226_v0  ;;  %v230_v6 = vld [vmem:[%s11618_s29 + $0x30] sm:$0xff]  ;;  %v231_v7 = vld [vmem:[%s11618_s29 + $0x38] sm:$0xff]  ;;  %v232_v11 = vld [vmem:[%s11618_s29 + $0x48] sm:$0xff] }
  0x20   : > { %9944 = vmatprep.subr.bf16.mxu0 %v11325_v8  ;;  %v233_v12 = vld [vmem:[%s11618_s29 + $0x50] sm:$0xff]  ;;  %v235_v14 = vld [vmem:[%s11618_s29 + $0x68] sm:$0xff]  ;;  %v11339_v19 = vld [vmem:[%s14054_s1 + $0x98] sm:$0xff]  }
  0x21   : > { %v11338_v15 = vld [vmem:[%s14054_s1 + $0x90] sm:$0xff]   ;;  %v236_v21 = vld [vmem:[%s11618_s29 + $0x78] sm:$0xff]  ;;  %v237_v22 = vld [vmem:[%s11618_s29 + $0x80] sm:$0xff] }
  0x22   : > { %v11340_v27 = vld [vmem:[%s14054_s1 + $0xa0] sm:$0xff]   ;;  %v11777_v28 = vpack.c.bf16 %v237_v22, %v236_v21  ;;  %v11341_v29 = vld [vmem:[%s14054_s1 + $0xa8] sm:$0xff]   ;;  %v11342_v37 = vld [vmem:[%s14054_s1 + $0xb0] sm:$0xff]  }
  0x23   : > { %9945 = vmatpush3.bf16.msra.mxu0 %v11325_v8  ;;  %v11745_v8 = vpack.c.bf16 %v229_v5, %v228_v4  ;;  %v242_v35 = vld [vmem:[%s11618_s29 + $0xc0] sm:$0xff]  ;;  %v243_v36 = vld [vmem:[%s11618_s29 + $0xc8] sm:$0xff]  ;;  %v244_v43 = vld [vmem:[%s11618_s29 + $0xd8] sm:$0xff] }
  0x24   : > { %9946 = vmatprep.subr.bf16.mxu0 %v11326_v9  ;;  %v245_v44 = vld [vmem:[%s11618_s29 + $0xe0] sm:$0xff]  ;;  %v246_v45 = vld [vmem:[%s11618_s29 + $0xf0] sm:$0xff]  ;;  %v247_v46 = vld [vmem:[%s11618_s29 + $0xf8] sm:$0xff] }
  0x25   : > { %v11809_v50 = vpack.c.bf16 %v245_v44, %v244_v43  ;;  %v11811_v51 = vpack.c.bf16 %v247_v46, %v246_v45  ;;  %v248_v52 = vld [vmem:[%s11618_s29 + $0x108] sm:$0xff]  ;;  %v249_v53 = vld [vmem:[%s11618_s29 + $0x110] sm:$0xff]  ;;  %v250_v56 = vld [vmem:[%s11618_s29 + $0x120] sm:$0xff] }
  0x26   : > { %v251_v57 = vld [vmem:[%s11618_s29 + $0x128] sm:$0xff]  ;;  %v11819_v58 = vpack.c.bf16 %v249_v53, %v248_v52  ;;  %v252_v62 = vld [vmem:[%s11618_s29 + $0x138] sm:$0xff]  ;;  %v253_v63 = vld [vmem:[%s11618_s29 + $0x140] sm:$0xff] }
  0x27   : > { %9947 = vmatpush3.bf16.msra.mxu0 %v11326_v9  ;;  %v11337_v9 = vld [vmem:[%s14054_s1 + $0x88] sm:$0xff]   ;;  %v11821_v59 = vpack.c.bf16 %v251_v57, %v250_v56  ;;  %v254_v0 = vld [vmem:[%s11618_s29 + $0x150] sm:$0xff]  ;;  %v255_v1 = vld [vmem:[%s11618_s29 + $0x158] sm:$0xff] }
  0x28   : > { %9948 = vmatprep.subr.bf16.mxu0 %v11327_v10  ;;  %v11831_v4 = vpack.c.bf16 %v255_v1, %v254_v0  ;;  %v256_v5 = vld [vmem:[%s11618_s29 + $0x168] sm:$0xff]  ;;  %v785_v44 = vld [vmem:[%s11618_s29 + $0x92] sm:$0xff]  ;;  %v786_v45 = vld [vmem:[%s11618_s29 + $0x9a] sm:$0xff] }
  0x29   : > { %v784_v43 = vld [vmem:[%s11618_s29 + $0x82] sm:$0xff]  ;;  %v11880_v52 = vpack.c.bf16 %v786_v45, %v785_v44  ;;  %v787_v56 = vld [vmem:[%s11618_s29 + $0xaa] sm:$0xff]  ;;  %v788_v57 = vld [vmem:[%s11618_s29 + $0xb2] sm:$0xff] }
  0x2a   : > { %v11348_v46 = vld [vmem:[%s14054_s1 + $0xe0] sm:$0xff]   ;;  %v11349_v53 = vld [vmem:[%s14054_s1 + $0xe8] sm:$0xff]   ;;  %v11350_v0 = vld [vmem:[%s14054_s1 + $0xf0] sm:$0xff]   ;;  %v11894_v1 = vpack.c.bf16 %v788_v57, %v787_v56 }
  0x2b   : > { %9949 = vmatpush3.bf16.msra.mxu0 %v11327_v10  ;;  %v11750_v10 = vpack.c.bf16 %v231_v7, %v230_v6  ;;  %v257_v6 = vld [vmem:[%s11618_s29 + $0x170] sm:$0xff]  ;;  %v773_v7 = vld [vmem:[%s11618_s29 + $0x2] sm:$0xff]  ;;  %v802_v44 = vld [vmem:[%s11618_s29 + $0x15a] sm:$0xff] }
  0x2c   : > { %9982 = vmatprep.subr.bf16.mxu0 %v11328_v13  ;;  %v804_v56 = vld [vmem:[%s11618_s29 + $0x172] sm:$0xff]  ;;  %vm12247_vm8 = vmand %vm3462_vm3, %vm3463_vm4 }
  0x2d   : > { %vm12254_vm9 = vmor %vm3138_vm5, %vm3139_vm6 }
  0x2e   : > { %9951 = vmatmul.mubr.bf16.vlgmr.msra.gmra.mrb[0].mxu0 %v11644_v16  ;;  %vm12260_vm10 = vmand %vm3469_vm7, %vm3138_vm5 }
  0x2f   : > { %9983 = vmatpush3.bf16.msra.mxu0 %v11328_v13  ;;  %9954 = vmatprep.mubr.bf16.mxu0 %v11646_v17  ;;  %v234_v13 = vld [vmem:[%s11618_s29 + $0x60] sm:$0xff]  ;;  %vm12686_vm13 = vmor %vm4673_vm11, %vm4674_vm12 }
  0x30   : > { %9984 = vmatprep.subr.bf16.mxu0 %v11329_v18  ;;  %v11766_v20 = vpack.c.bf16 %v235_v14, %v234_v13  ;;  %v775_v13 = vld [vmem:[%s11618_s29 + $0x1a] sm:$0xff]  ;;  %v776_v14 = vld [vmem:[%s11618_s29 + $0x22] sm:$0xff] }
  0x31   : > { %v11846_v21 = vpack.c.bf16 %v776_v14, %v775_v13  ;;  %v794_v13 = vld [vmem:[%s11618_s29 + $0xfa] sm:$0xff] }
  0x32   : > { %v11352_v14 = vld [vmem:[%s14054_s1 + $0x100] sm:$0xff]  }
  0x33   : > { %9985 = vmatpush3.bf16.msra.mxu0 %v11329_v18  ;;  %v11761_v18 = vpack.c.bf16 %v233_v12, %v232_v11  ;;  %v11839_v11 = vpack.c.bf16 %v257_v6, %v256_v5  ;;  %v11351_v6 = vld [vmem:[%s14054_s1 + $0xf8] sm:$0xff]  }
  0x34   : > { %9986 = vmatprep.subr.bf16.mxu0 %v11330_v23 }
  0x36   : > { %9955 = vmatmul.mubr.bf16.gmra.mrb[4].mxu0 %v11660_v24 }
  0x37   : > { %9958 = vmatprep.mubr.bf16.mxu0 %v11662_v25  ;;  %9987 = vmatpush3.bf16.msra.mxu0 %v11330_v23  ;;  %v238_v23 = vld [vmem:[%s11618_s29 + $0x90] sm:$0xff] }
  0x38   : > { %9988 = vmatprep.subr.bf16.mxu0 %v11331_v26 }
  0x3b   : > { %9989 = vmatpush3.bf16.msra.mxu0 %v11331_v26  ;;  %v239_v26 = vld [vmem:[%s11618_s29 + $0x98] sm:$0xff] }
  0x3c   : > { %9990 = vmatprep.subr.bf16.mxu0 %v11332_v31  ;;  %v11782_v30 = vpack.c.bf16 %v239_v26, %v238_v23  ;;  %v11345_v23 = vld [vmem:[%s14054_s1 + $0xc8] sm:$0xff]  }
  0x3d   : > { %v779_v26 = vld [vmem:[%s11618_s29 + $0x4a] sm:$0xff] }
  0x3e   : > { %9959 = vmatmul.mubr.bf16.gmra.mrb[8].mxu0 %v11676_v32 }
  0x3f   : > { %9962 = vmatprep.mubr.bf16.mxu0 %v11678_v33  ;;  %9991 = vmatpush3.bf16.msra.mxu0 %v11332_v31  ;;  %v240_v31 = vld [vmem:[%s11618_s29 + $0xa8] sm:$0xff] }
  0x40   : > { %9992 = vmatprep.subr.bf16.mxu0 %v11333_v34 }
  0x43   : > { %9993 = vmatpush3.bf16.msra.mxu0 %v11333_v34  ;;  %v241_v34 = vld [vmem:[%s11618_s29 + $0xb0] sm:$0xff] }
  0x44   : > { %9994 = vmatprep.subr.bf16.mxu0 %v11334_v39  ;;  %v11793_v38 = vpack.c.bf16 %v241_v34, %v240_v31  ;;  %v782_v31 = vld [vmem:[%s11618_s29 + $0x6a] sm:$0xff] }
  0x45   : > { %v11346_v34 = vld [vmem:[%s14054_s1 + $0xd0] sm:$0xff]  }
  0x46   : > { %9963 = vmatmul.mubr.bf16.gmra.mrb[12].mxu0 %v11692_v40 }
  0x47   : > { %9966 = vmatprep.mubr.bf16.mxu0 %v11697_v42  ;;  %9995 = vmatpush3.bf16.msra.mxu0 %v11334_v39  ;;  %v11343_v39 = vld [vmem:[%s14054_s1 + $0xb8] sm:$0xff]  }
  0x48   : > { %9996 = vmatprep.subr.bf16.mxu0 %v11335_v41 }
  0x4b   : > { %9997 = vmatpush3.bf16.msra.mxu0 %v11335_v41  ;;  %v11798_v41 = vpack.c.bf16 %v243_v36, %v242_v35 }
  0x4c   : > { %10030 = vmatprep.subr.bf16.mxu0 %v11336_v47 }
  0x4e   : > { %9967 = vmatmul.mubr.bf16.gmra.mrb[16].mxu0 %v11708_v48 }
  0x4f   : > { %9970 = vmatprep.mubr.bf16.mxu0 %v11710_v49 }
  0x56   : > { %9971 = vmatmul.mubr.bf16.gmra.mrb[20].mxu0 %v11718_v54 }
  0x57   : > { %9974 = vmatprep.mubr.bf16.mxu0 %v11720_v55 }
  0x5e   : > { %9975 = vmatmul.mubr.bf16.gmra.mrb[24].mxu0 %v11728_v60 }
  0x5f   : > { %9978 = vmatprep.mubr.bf16.mxu0 %v11730_v61 }
  0x66   : > { %9979 = vmatmul.mubr.bf16.gmra.mrb[28].mxu0 %v11738_v2 }
  0x67   : > { %9998 = vmatprep.mubr.bf16.mxu0 %v258_v3  ;;  %v11829_v3 = vpack.c.bf16 %v253_v63, %v252_v62  ;;  %v789_v62 = vld [vmem:[%s11618_s29 + $0xc2] sm:$0xff]  ;;  %v790_v63 = vld [vmem:[%s11618_s29 + $0xca] sm:$0xff] }
  0x68   : > { %v11896_v5 = vpack.c.bf16 %v790_v63, %v789_v62  ;;  %v11353_v62 = vld [vmem:[%s14054_s1 + $0x108] sm:$0xff]   ;;  %v11354_v63 = vld [vmem:[%s14054_s1 + $0x110] sm:$0xff]  }
  0x6e   : > { %9999 = vmatmul.mubr.bf16.vlgmr.msra.gmra.mrb[0].mxu0 %v11745_v8 }
  0x6f   : > { %10031 = vmatpush3.bf16.msra.mxu0 %v11336_v47  ;;  %10002 = vmatprep.mubr.bf16.mxu0 %v11750_v10  ;;  %v11344_v47 = vld [vmem:[%s14054_s1 + $0xc0] sm:$0xff]  }
  0x70   : > { %10032 = vmatprep.subr.bf16.mxu0 %v11337_v9 }
  0x73   : > { %10033 = vmatpush3.bf16.msra.mxu0 %v11337_v9  ;;  %v774_v9 = vld [vmem:[%s11618_s29 + $0xa] sm:$0xff] }
  0x74   : > { %10034 = vmatprep.subr.bf16.mxu0 %v11338_v15  ;;  %v805_v12 = vpack.c.bf16 %v774_v9, %v773_v7  ;;  %v791_v7 = vld [vmem:[%s11618_s29 + $0xda] sm:$0xff]  ;;  %v792_v9 = vld [vmem:[%s11618_s29 + $0xe2] sm:$0xff] }
  0x76   : > { %10003 = vmatmul.mubr.bf16.gmra.mrb[4].mxu0 %v11761_v18 }
  0x77   : > { %10006 = vmatprep.mubr.bf16.mxu0 %v11766_v20  ;;  %10035 = vmatpush3.bf16.msra.mxu0 %v11338_v15  ;;  %v777_v15 = vld [vmem:[%s11618_s29 + $0x32] sm:$0xff] }
  0x78   : > { %10036 = vmatprep.subr.bf16.mxu0 %v11339_v19 }
  0x7b   : > { %10037 = vmatpush3.bf16.msra.mxu0 %v11339_v19  ;;  %v778_v19 = vld [vmem:[%s11618_s29 + $0x3a] sm:$0xff] }
  0x7c   : > { %10038 = vmatprep.subr.bf16.mxu0 %v11340_v27  ;;  %v11848_v22 = vpack.c.bf16 %v778_v19, %v777_v15  ;;  %v11910_v15 = vpack.c.bf16 %v792_v9, %v791_v7  ;;  %v11358_v7 = vld [vmem:[%s14054_s1 + $0x130] sm:$0xff]   ;;  %v11359_v9 = vld [vmem:[%s14054_s1 + $0x138] sm:$0xff]  }
  0x7e   : > { %10007 = vmatmul.mubr.bf16.gmra.mrb[8].mxu0 %v11777_v28 }
  0x7f   : > { %10010 = vmatprep.mubr.bf16.mxu0 %v11782_v30  ;;  %10039 = vmatpush3.bf16.msra.mxu0 %v11340_v27  ;;  %v780_v27 = vld [vmem:[%s11618_s29 + $0x52] sm:$0xff] }
  0x80   : > { %10040 = vmatprep.subr.bf16.mxu0 %v11341_v29  ;;  %v11862_v35 = vpack.c.bf16 %v780_v27, %v779_v26  ;;  %v796_v26 = vld [vmem:[%s11618_s29 + $0x112] sm:$0xff]  ;;  %v797_v27 = vld [vmem:[%s11618_s29 + $0x122] sm:$0xff] }
  0x83   : > { %10041 = vmatpush3.bf16.msra.mxu0 %v11341_v29  ;;  %v781_v29 = vld [vmem:[%s11618_s29 + $0x62] sm:$0xff] }
  0x84   : > { %10042 = vmatprep.subr.bf16.mxu0 %v11342_v37  ;;  %v11864_v36 = vpack.c.bf16 %v782_v31, %v781_v29  ;;  %v798_v29 = vld [vmem:[%s11618_s29 + $0x12a] sm:$0xff] }
  0x86   : > { %10011 = vmatmul.mubr.bf16.gmra.mrb[12].mxu0 %v11793_v38 }
  0x87   : > { %10014 = vmatprep.mubr.bf16.mxu0 %v11798_v41  ;;  %10043 = vmatpush3.bf16.msra.mxu0 %v11342_v37  ;;  %v11347_v37 = vld [vmem:[%s14054_s1 + $0xd8] sm:$0xff]  }
  0x88   : > { %10044 = vmatprep.subr.bf16.mxu0 %v11343_v39 }
  0x8b   : > { %10045 = vmatpush3.bf16.msra.mxu0 %v11343_v39  ;;  %v783_v39 = vld [vmem:[%s11618_s29 + $0x7a] sm:$0xff] }
  0x8c   : > { %10078 = vmatprep.subr.bf16.mxu0 %v11344_v47 }
  0x8e   : > { %10015 = vmatmul.mubr.bf16.gmra.mrb[16].mxu0 %v11809_v50 }
  0x8f   : > { %10018 = vmatprep.mubr.bf16.mxu0 %v11811_v51 }
  0x96   : > { %10019 = vmatmul.mubr.bf16.gmra.mrb[20].mxu0 %v11819_v58 }
  0x97   : > { %10022 = vmatprep.mubr.bf16.mxu0 %v11821_v59 }
  0x9e   : > { %10023 = vmatmul.mubr.bf16.gmra.mrb[24].mxu0 %v11829_v3 }
  0x9f   : > { %10026 = vmatprep.mubr.bf16.mxu0 %v11831_v4 }
  0xa6   : > { %10027 = vmatmul.mubr.bf16.gmra.mrb[28].mxu0 %v11839_v11 }
  0xa7   : > { %10046 = vmatprep.mubr.bf16.mxu0 %v805_v12  ;;  %v793_v12 = vld [vmem:[%s11618_s29 + $0xf2] sm:$0xff] }
  0xa8   : > { %v11912_v19 = vpack.c.bf16 %v794_v13, %v793_v12  ;;  %v11360_v12 = vld [vmem:[%s14054_s1 + $0x140] sm:$0xff]  }
  0xa9   : > { %v8703_v13 = vld [vmem:[%s11618_s29 + $0x180] sm:$0xff] }
  0xae   : > { %10047 = vmatmul.mubr.bf16.vlgmr.msra.gmra.mrb[0].mxu0 %v11846_v21 }
  0xaf   : > { %10079 = vmatpush3.bf16.msra.mxu0 %v11344_v47  ;;  %10050 = vmatprep.mubr.bf16.mxu0 %v11848_v22  ;;  %v11878_v47 = vpack.c.bf16 %v784_v43, %v783_v39  ;;  %v800_v39 = vld [vmem:[%s11618_s29 + $0x142] sm:$0xff]  ;;  %v801_v43 = vld [vmem:[%s11618_s29 + $0x152] sm:$0xff] }
  0xb0   : > { %10080 = vmatprep.subr.bf16.mxu0 %v11345_v23 }
  0xb3   : > { %10081 = vmatpush3.bf16.msra.mxu0 %v11345_v23  ;;  %v795_v23 = vld [vmem:[%s11618_s29 + $0x10a] sm:$0xff] }
  0xb4   : > { %10082 = vmatprep.subr.bf16.mxu0 %v11346_v34  ;;  %v11920_v31 = vpack.c.bf16 %v796_v26, %v795_v23  ;;  %v11361_v26 = vld [vmem:[%s14054_s1 + $0x148] sm:$0xff]  }
  0xb6   : > { %10051 = vmatmul.mubr.bf16.gmra.mrb[4].mxu0 %v11862_v35 }
  0xb7   : > { %10054 = vmatprep.mubr.bf16.mxu0 %v11864_v36  ;;  %10083 = vmatpush3.bf16.msra.mxu0 %v11346_v34  ;;  %v11922_v34 = vpack.c.bf16 %v798_v29, %v797_v27  ;;  %v11362_v27 = vld [vmem:[%s14054_s1 + $0x150] sm:$0xff]  }
  0xb8   : > { %10084 = vmatprep.subr.bf16.mxu0 %v11347_v37 }
  0xbb   : > { %10085 = vmatpush3.bf16.msra.mxu0 %v11347_v37  ;;  %v799_v37 = vld [vmem:[%s11618_s29 + $0x13a] sm:$0xff] }
  0xbc   : > { %10086 = vmatprep.subr.bf16.mxu0 %v11348_v46  ;;  %v11930_v45 = vpack.c.bf16 %v800_v39, %v799_v37  ;;  %v8904_v37 = vld [vmem:[%s11618_s29 + $0x81] sm:$0xff]  ;;  %v8905_v39 = vld [vmem:[%s11618_s29 + $0x91] sm:$0xff] }
  0xbe   : > { %10055 = vmatmul.mubr.bf16.gmra.mrb[8].mxu0 %v11878_v47 }
  0xbf   : > { %10058 = vmatprep.mubr.bf16.mxu0 %v11880_v52  ;;  %10087 = vmatpush3.bf16.msra.mxu0 %v11348_v46  ;;  %v11932_v46 = vpack.c.bf16 %v802_v44, %v801_v43  ;;  %v8906_v43 = vld [vmem:[%s11618_s29 + $0x99] sm:$0xff]  ;;  %v11386_v44 = vld [vmem:[%s14054_s1 + $0x210] sm:$0xff]  }
  0xc0   : > { %10088 = vmatprep.subr.bf16.mxu0 %v11349_v53 }
  0xc3   : > { %10089 = vmatpush3.bf16.msra.mxu0 %v11349_v53  ;;  %v803_v53 = vld [vmem:[%s11618_s29 + $0x16a] sm:$0xff] }
  0xc4   : > { %10090 = vmatprep.subr.bf16.mxu0 %v11350_v0  ;;  %v11938_v57 = vpack.c.bf16 %v804_v56, %v803_v53  ;;  %v11387_v53 = vld [vmem:[%s14054_s1 + $0x218] sm:$0xff]   ;;  %v8907_v56 = vld [vmem:[%s11618_s29 + $0xa9] sm:$0xff] }
  0xc6   : > { %10059 = vmatmul.mubr.bf16.gmra.mrb[12].mxu0 %v11894_v1 }
  0xc7   : > { %10062 = vmatprep.mubr.bf16.mxu0 %v11896_v5  ;;  %10091 = vmatpush3.bf16.msra.mxu0 %v11350_v0  ;;  %v11356_v0 = vld [vmem:[%s14054_s1 + $0x120] sm:$0xff]  }
  0xc8   : > { %10092 = vmatprep.subr.bf16.mxu0 %v11351_v6 }
  0xcb   : > { %10093 = vmatpush3.bf16.msra.mxu0 %v11351_v6  ;;  %v11357_v6 = vld [vmem:[%s14054_s1 + $0x128] sm:$0xff]  }
  0xcc   : > { %10126 = vmatprep.subr.bf16.mxu0 %v11352_v14 }
  0xce   : > { %10063 = vmatmul.mubr.bf16.gmra.mrb[16].mxu0 %v11910_v15 }
  0xcf   : > { %10066 = vmatprep.mubr.bf16.mxu0 %v11912_v19 }
  0xd6   : > { %10067 = vmatmul.mubr.bf16.gmra.mrb[20].mxu0 %v11920_v31 }
  0xd7   : > { %10070 = vmatprep.mubr.bf16.mxu0 %v11922_v34 }
  0xde   : > { %10071 = vmatmul.mubr.bf16.gmra.mrb[24].mxu0 %v11930_v45 }
  0xdf   : > { %10074 = vmatprep.mubr.bf16.mxu0 %v11932_v46 }
  0xe6   : > { %10075 = vmatmul.mubr.bf16.gmra.mrb[28].mxu0 %v11938_v57 }
  0xe7   : > { %10094 = vmatprep.mubr.bf16.mxu0 %v11745_v8  ;;  %v11355_v8 = vld [vmem:[%s14054_s1 + $0x118] sm:$0xff]  }
  0xee   : > { %10095 = vmatmul.mubr.bf16.vlgmr.msra.gmra.mrb[0].mxu0 %v11750_v10 }
  0xef   : > { %10127 = vmatpush3.bf16.msra.mxu0 %v11352_v14  ;;  %10098 = vmatprep.mubr.bf16.mxu0 %v11761_v18  ;;  %v8704_v14 = vld [vmem:[%s11618_s29 + $0x188] sm:$0xff] }
  0xf0   : > { %10128 = vmatprep.subr.bf16.mxu0 %v11353_v62  ;;  %v11982_v23 = vpack.c.bf16 %v8704_v14, %v8703_v13  ;;  %v8913_v13 = vld [vmem:[%s11618_s29 + $0xf1] sm:$0xff]  ;;  %v8914_v14 = vld [vmem:[%s11618_s29 + $0xf9] sm:$0xff] }
  0xf3   : > { %10129 = vmatpush3.bf16.msra.mxu0 %v11353_v62  ;;  %v8909_v62 = vld [vmem:[%s11618_s29 + $0xc1] sm:$0xff] }
  0xf4   : > { %10130 = vmatprep.subr.bf16.mxu0 %v11354_v63 }
  0xf6   : > { %10099 = vmatmul.mubr.bf16.gmra.mrb[4].mxu0 %v11766_v20 }
  0xf7   : > { %10102 = vmatprep.mubr.bf16.mxu0 %v11777_v28  ;;  %10131 = vmatpush3.bf16.msra.mxu0 %v11354_v63  ;;  %v8910_v63 = vld [vmem:[%s11618_s29 + $0xc9] sm:$0xff] }
  0xf8   : > { %10132 = vmatprep.subr.bf16.mxu0 %v11355_v8 }
  0xfb   : > { %10133 = vmatpush3.bf16.msra.mxu0 %v11355_v8  ;;  %v11388_v8 = vld [vmem:[%s14054_s1 + $0x220] sm:$0xff]  }
  0xfc   : > { %10134 = vmatprep.subr.bf16.mxu0 %v11356_v0 }
  0xfe   : > { %10103 = vmatmul.mubr.bf16.gmra.mrb[8].mxu0 %v11782_v30 }
  0xff   : > { %10106 = vmatprep.mubr.bf16.mxu0 %v11793_v38  ;;  %10135 = vmatpush3.bf16.msra.mxu0 %v11356_v0 }
 0x100   : > { %10136 = vmatprep.subr.bf16.mxu0 %v11357_v6 }
 0x103   : > { %10137 = vmatpush3.bf16.msra.mxu0 %v11357_v6  ;;  %v2343_v6 = vpack.c.bf16 %v8910_v63, %v8909_v62 }
 0x104   : > { %10138 = vmatprep.subr.bf16.mxu0 %v11358_v7 }
 0x106   : > { %10107 = vmatmul.mubr.bf16.gmra.mrb[12].mxu0 %v11798_v41 }
 0x107   : > { %10110 = vmatprep.mubr.bf16.mxu0 %v11809_v50  ;;  %10139 = vmatpush3.bf16.msra.mxu0 %v11358_v7  ;;  %v11389_v7 = vld [vmem:[%s14054_s1 + $0x228] sm:$0xff]  }
 0x108   : > { %10140 = vmatprep.subr.bf16.mxu0 %v11359_v9 }
 0x10b   : > { %10141 = vmatpush3.bf16.msra.mxu0 %v11359_v9  ;;  %v8911_v9 = vld [vmem:[%s11618_s29 + $0xd9] sm:$0xff] }
 0x10c   : > { %10174 = vmatprep.subr.bf16.mxu0 %v11360_v12 }
 0x10e   : > { %10111 = vmatmul.mubr.bf16.gmra.mrb[16].mxu0 %v11811_v51 }
 0x10f   : > { %10114 = vmatprep.mubr.bf16.mxu0 %v11819_v58 }
 0x116   : > { %10115 = vmatmul.mubr.bf16.gmra.mrb[20].mxu0 %v11821_v59 }
 0x117   : > { %10118 = vmatprep.mubr.bf16.mxu0 %v11829_v3 }
 0x11e   : > { %10119 = vmatmul.mubr.bf16.gmra.mrb[24].mxu0 %v11831_v4 }
 0x11f   : > { %10122 = vmatprep.mubr.bf16.mxu0 %v11839_v11 }
 0x126   : > { %10123 = vmatmul.mubr.bf16.gmra.mrb[28].mxu0 %v11982_v23 }
 0x127   : > { %10142 = vmatprep.mubr.bf16.mxu0 %v11644_v16  ;;  %v11363_v16 = vld [vmem:[%s14054_s1 + $0x158] sm:$0xff]  }
 0x12e   : > { %10143 = vmatmul.mubr.bf16.vlgmr.msra.gmra.mrb[0].mxu0 %v11646_v17  ;;  %v11364_v17 = vld [vmem:[%s14054_s1 + $0x160] sm:$0xff]  }
 0x12f   : > { %10175 = vmatpush3.bf16.msra.mxu0 %v11360_v12  ;;  %10146 = vmatprep.mubr.bf16.mxu0 %v11660_v24  ;;  %v11365_v24 = vld [vmem:[%s14054_s1 + $0x168] sm:$0xff]  }
 0x130   : > { %10176 = vmatprep.subr.bf16.mxu0 %v11361_v26  ;;  %v8912_v12 = vld [vmem:[%s11618_s29 + $0xe1] sm:$0xff] }
 0x133   : > { %10177 = vmatpush3.bf16.msra.mxu0 %v11361_v26  ;;  %v2344_v26 = vpack.c.bf16 %v8912_v12, %v8911_v9 }
 0x134   : > { %10178 = vmatprep.subr.bf16.mxu0 %v11362_v27 }
 0x136   : > { %10147 = vmatmul.mubr.bf16.gmra.mrb[4].mxu0 %v11662_v25  ;;  %v11366_v25 = vld [vmem:[%s14054_s1 + $0x170] sm:$0xff]  }
 0x137   : > { %10150 = vmatprep.mubr.bf16.mxu0 %v11676_v32  ;;  %10179 = vmatpush3.bf16.msra.mxu0 %v11362_v27  ;;  %v11367_v32 = vld [vmem:[%s14054_s1 + $0x178] sm:$0xff]   ;;  %v2345_v27 = vpack.c.bf16 %v8914_v14, %v8913_v13  ;;  %v8979_v13 = vld [vmem:[%s11618_s29 + $0x16a] sm:$0xff] }
 0x138   : > { %10180 = vmatprep.subr.bf16.mxu0 %v11363_v16  ;;  %v8980_v14 = vld [vmem:[%s11618_s29 + $0x172] sm:$0xff] }
 0x13b   : > { %10181 = vmatpush3.bf16.msra.mxu0 %v11363_v16  ;;  %v11391_v16 = vld [vmem:[%s14054_s1 + $0x238] sm:$0xff]  }
 0x13c   : > { %10182 = vmatprep.subr.bf16.mxu0 %v11364_v17 }
 0x13e   : > { %10151 = vmatmul.mubr.bf16.gmra.mrb[8].mxu0 %v11678_v33  ;;  %v11368_v33 = vld [vmem:[%s14054_s1 + $0x180] sm:$0xff]  }
 0x13f   : > { %10154 = vmatprep.mubr.bf16.mxu0 %v11692_v40  ;;  %10183 = vmatpush3.bf16.msra.mxu0 %v11364_v17  ;;  %v8759_v40 = vld [vmem:[%s11618_s29 + $0x181] sm:$0xff]  ;;  %v8915_v17 = vld [vmem:[%s11618_s29 + $0x109] sm:$0xff] }
 0x140   : > { %10184 = vmatprep.subr.bf16.mxu0 %v11365_v24 }
 0x143   : > { %10185 = vmatpush3.bf16.msra.mxu0 %v11365_v24  ;;  %v8916_v24 = vld [vmem:[%s11618_s29 + $0x111] sm:$0xff] }
 0x144   : > { %10186 = vmatprep.subr.bf16.mxu0 %v11366_v25 }
 0x146   : > { %10155 = vmatmul.mubr.bf16.gmra.mrb[12].mxu0 %v11697_v42  ;;  %v8760_v42 = vld [vmem:[%s11618_s29 + $0x189] sm:$0xff] }
 0x147   : > { %10158 = vmatprep.mubr.bf16.mxu0 %v11708_v48  ;;  %10187 = vmatpush3.bf16.msra.mxu0 %v11366_v25  ;;  %v12026_v48 = vpack.c.bf16 %v8760_v42, %v8759_v40  ;;  %v8917_v25 = vld [vmem:[%s11618_s29 + $0x121] sm:$0xff]  ;;  %v8919_v42 = vld [vmem:[%s11618_s29 + $0x139] sm:$0xff] }
 0x148   : > { %10188 = vmatprep.subr.bf16.mxu0 %v11367_v32 }
 0x14b   : > { %10189 = vmatpush3.bf16.msra.mxu0 %v11367_v32  ;;  %v8918_v32 = vld [vmem:[%s11618_s29 + $0x129] sm:$0xff] }
 0x14c   : > { %10222 = vmatprep.subr.bf16.mxu0 %v11368_v33  ;;  %v2347_v40 = vpack.c.bf16 %v8918_v32, %v8917_v25  ;;  %v11394_v25 = vld [vmem:[%s14056_s3 + $0x50] sm:$0xff]   ;;  %v11395_v32 = vld [vmem:[%s14056_s3 + $0x58] sm:$0xff]  }
 0x14e   : > { %10159 = vmatmul.mubr.bf16.gmra.mrb[16].mxu0 %v11710_v49  ;;  %v11369_v49 = vld [vmem:[%s14054_s1 + $0x188] sm:$0xff]  }
 0x14f   : > { %10162 = vmatprep.mubr.bf16.mxu0 %v11718_v54  ;;  %v11370_v54 = vld [vmem:[%s14054_s1 + $0x190] sm:$0xff]  }
 0x156   : > { %10163 = vmatmul.mubr.bf16.gmra.mrb[20].mxu0 %v11720_v55  ;;  %v11371_v55 = vld [vmem:[%s14054_s1 + $0x198] sm:$0xff]  }
 0x157   : > { %10166 = vmatprep.mubr.bf16.mxu0 %v11728_v60  ;;  %v11372_v60 = vld [vmem:[%s14054_s1 + $0x1a0] sm:$0xff]  }
 0x15e   : > { %10167 = vmatmul.mubr.bf16.gmra.mrb[24].mxu0 %v11730_v61  ;;  %v11373_v61 = vld [vmem:[%s14054_s1 + $0x1a8] sm:$0xff]  }
 0x15f   : > { %10170 = vmatprep.mubr.bf16.mxu0 %v11738_v2  ;;  %v11374_v2 = vld [vmem:[%s14054_s1 + $0x1b0] sm:$0xff]  }
 0x166   : > { %10171 = vmatmul.mubr.bf16.gmra.mrb[28].mxu0 %v12026_v48 }
 0x167   : > { %10190 = vmatprep.mubr.bf16.mxu0 %v11846_v21  ;;  %v11375_v21 = vld [vmem:[%s14054_s1 + $0x1b8] sm:$0xff]  }
 0x16e   : > { %10191 = vmatmul.mubr.bf16.vlgmr.msra.gmra.mrb[0].mxu0 %v11848_v22  ;;  %v11376_v22 = vld [vmem:[%s14054_s1 + $0x1c0] sm:$0xff]  }
 0x16f   : > { %10223 = vmatpush3.bf16.msra.mxu0 %v11368_v33  ;;  %10194 = vmatprep.mubr.bf16.mxu0 %v11862_v35  ;;  %v8815_v35 = vld [vmem:[%s11618_s29 + $0x182] sm:$0xff]  ;;  %v2346_v33 = vpack.c.bf16 %v8916_v24, %v8915_v17  ;;  %v11564_v24 = vmov 0  }
 0x170   : > { %10224 = vmatprep.subr.bf16.mxu0 %v11369_v49  ;;  %v11392_v17 = vld [vmem:[%s14056_s3 + $0x40] sm:$0xff]   ;;  %2994 = vst [vmem:[#allocation2 + $0x18] sm:$0xf] %v11564_v24  ;;  %2988 = vst [vmem:[#allocation2] sm:$0xf] %v11564_v24 }
 0x171   : > { %2989 = vst [vmem:[#allocation2 + $0x4] sm:$0xf] %v11564_v24  ;;  %2990 = vst [vmem:[#allocation2 + $0x8] sm:$0x1] %v11564_v24  ;;  %10366 = vmatprep.subr.bf16.mxu1 %v11392_v17 }
 0x172   : > { %2991 = vst [vmem:[#allocation2 + $0xc] sm:$0xf] %v11564_v24  ;;  %2992 = vst [vmem:[#allocation2 + $0x10] sm:$0xf] %v11564_v24  ;;  %10367 = vmatpush3.bf16.msra.mxu1 %v11392_v17 }
 0x173   : > { %10225 = vmatpush3.bf16.msra.mxu0 %v11369_v49  ;;  %v8920_v49 = vld [vmem:[%s11618_s29 + $0x141] sm:$0xff]  ;;  %2993 = vst [vmem:[#allocation2 + $0x14] sm:$0x1] %v11564_v24  ;;  %2995 = vst [vmem:[#allocation2 + $0x1c] sm:$0xf] %v11564_v24 }
 0x174   : > { %10226 = vmatprep.subr.bf16.mxu0 %v11370_v54  ;;  %2996 = vst [vmem:[#allocation2 + $0x20] sm:$0x1] %v11564_v24  ;;  %2997 = vst [vmem:[#allocation2 + $0x24] sm:$0xf] %v11564_v24 }
 0x175   : > { %2998 = vst [vmem:[#allocation2 + $0x28] sm:$0xf] %v11564_v24  ;;  %2999 = vst [vmem:[#allocation2 + $0x2c] sm:$0x1] %v11564_v24 }
 0x176   : > { %10195 = vmatmul.mubr.bf16.gmra.mrb[4].mxu0 %v11864_v36  ;;  %v8816_v36 = vld [vmem:[%s11618_s29 + $0x18a] sm:$0xff]  ;;  %3000 = vst [vmem:[#allocation2 + $0x30] sm:$0xf] %v11564_v24  ;;  %3001 = vst [vmem:[#allocation2 + $0x34] sm:$0xf] %v11564_v24 }
 0x177   : > { %10198 = vmatprep.mubr.bf16.mxu0 %v11878_v47  ;;  %10227 = vmatpush3.bf16.msra.mxu0 %v11370_v54  ;;  %v12070_v47 = vpack.c.bf16 %v8816_v36, %v8815_v35  ;;  %v8921_v54 = vld [vmem:[%s11618_s29 + $0x151] sm:$0xff]  ;;  %v8927_v35 = vld [vmem:[%s11618_s29 + $0x199] sm:$0xff]  ;;  %v8928_v36 = vld [vmem:[%s11618_s29 + $0x1a1] sm:$0xff]  ;;  %3002 = vst [vmem:[#allocation2 + $0x38] sm:$0x1] %v11564_v24 }
 0x178   : > { %10228 = vmatprep.subr.bf16.mxu0 %v11371_v55  ;;  %3003 = vst [vmem:[#allocation2 + $0x3c] sm:$0xf] %v11564_v24  ;;  %3004 = vst [vmem:[#allocation2 + $0x40] sm:$0xf] %v11564_v24 }
 0x179   : > { %3005 = vst [vmem:[#allocation2 + $0x44] sm:$0x1] %v11564_v24  ;;  %3006 = vst [vmem:[#allocation2 + $0x48] sm:$0xf] %v11564_v24 }
 0x17a   : > { %3007 = vst [vmem:[#allocation2 + $0x4c] sm:$0xf] %v11564_v24  ;;  %3008 = vst [vmem:[#allocation2 + $0x50] sm:$0x1] %v11564_v24 }
 0x17b   : > { %10229 = vmatpush3.bf16.msra.mxu0 %v11371_v55  ;;  %v8922_v55 = vld [vmem:[%s11618_s29 + $0x159] sm:$0xff]  ;;  %3009 = vst [vmem:[#allocation2 + $0x54] sm:$0xf] %v11564_v24  ;;  %3010 = vst [vmem:[#allocation2 + $0x58] sm:$0xf] %v11564_v24 }
 0x17c   : > { %10230 = vmatprep.subr.bf16.mxu0 %v11372_v60  ;;  %3011 = vst [vmem:[#allocation2 + $0x5c] sm:$0x1] %v11564_v24  ;;  %3012 = vst [vmem:[#allocation2 + $0x60] sm:$0xf] %v11564_v24 }
 0x17d   : > { %3013 = vst [vmem:[#allocation2 + $0x64] sm:$0xf] %v11564_v24  ;;  %3014 = vst [vmem:[#allocation2 + $0x68] sm:$0x1] %v11564_v24 }
 0x17e   : > { %10199 = vmatmul.mubr.bf16.gmra.mrb[8].mxu0 %v11880_v52  ;;  %v11377_v52 = vld [vmem:[%s14054_s1 + $0x1c8] sm:$0xff]   ;;  %3015 = vst [vmem:[#allocation2 + $0x6c] sm:$0xf] %v11564_v24  ;;  %3016 = vst [vmem:[#allocation2 + $0x70] sm:$0xf] %v11564_v24 }
 0x17f   : > { %10202 = vmatprep.mubr.bf16.mxu0 %v11894_v1  ;;  %10231 = vmatpush3.bf16.msra.mxu0 %v11372_v60  ;;  %v11378_v1 = vld [vmem:[%s14054_s1 + $0x1d0] sm:$0xff]   ;;  %v2348_v60 = vpack.c.bf16 %v8920_v49, %v8919_v42  ;;  %3017 = vst [vmem:[#allocation2 + $0x74] sm:$0x1] %v11564_v24  ;;  %3018 = vst [vmem:[#allocation2 + $0x78] sm:$0xf] %v11564_v24 }
 0x180   : > { %10232 = vmatprep.subr.bf16.mxu0 %v11373_v61  ;;  %3019 = vst [vmem:[#allocation2 + $0x7c] sm:$0xf] %v11564_v24  ;;  %3020 = vst [vmem:[#allocation2 + $0x80] sm:$0x1] %v11564_v24  ;;  %v11398_v42 = vld [vmem:[%s14056_s3 + $0x70] sm:$0xff]  }
 0x181   : > { %3021 = vst [vmem:[#allocation2 + $0x84] sm:$0xf] %v11564_v24  ;;  %3022 = vst [vmem:[#allocation2 + $0x88] sm:$0xf] %v11564_v24  ;;  %v3579_v49 = vld [vmem:[#allocation2] sm:$0xf] }
 0x182   : > { %3023 = vst [vmem:[#allocation2 + $0x8c] sm:$0x1] %v11564_v24  ;;  %3024 = vst [vmem:[#allocation2 + $0x90] sm:$0xf] %v11564_v24 }
 0x183   : > { %10233 = vmatpush3.bf16.msra.mxu0 %v11373_v61  ;;  %v2349_v61 = vpack.c.bf16 %v8922_v55, %v8921_v54  ;;  %3025 = vst [vmem:[#allocation2 + $0x94] sm:$0xf] %v11564_v24  ;;  %3026 = vst [vmem:[#allocation2 + $0x98] sm:$0x1] %v11564_v24  ;;  %v3580_v54 = vld [vmem:[#allocation2 + $0x4] sm:$0xf] }
 0x184   : > { %10234 = vmatprep.subr.bf16.mxu0 %v11374_v2  ;;  %3027 = vst [vmem:[#allocation2 + $0x9c] sm:$0xf] %v11564_v24  ;;  %3028 = vst [vmem:[#allocation2 + $0xa0] sm:$0xf] %v11564_v24  ;;  %v3647_v55 = vshrl.u32 %v3579_v49, 16 }
 0x185   : > { %3029 = vst [vmem:[#allocation2 + $0xa4] sm:$0x1] %v11564_v24  ;;  %3030 = vst [vmem:[#allocation2 + $0xa8] sm:$0xf] %v11564_v24 }
 0x186   : > { %10203 = vmatmul.mubr.bf16.gmra.mrb[12].mxu0 %v11896_v5  ;;  %v8898_v5 = vld [vmem:[%s11618_s29 + $0x39] sm:$0xff]  ;;  %3031 = vst [vmem:[#allocation2 + $0xac] sm:$0xf] %v11564_v24  ;;  %3032 = vst [vmem:[#allocation2 + $0xb0] sm:$0x1] %v11564_v24 }
 0x187   : > { %10206 = vmatprep.mubr.bf16.mxu0 %v11910_v15  ;;  %10235 = vmatpush3.bf16.msra.mxu0 %v11374_v2  ;;  %v8923_v2 = vld [vmem:[%s11618_s29 + $0x169] sm:$0xff]  ;;  %3033 = vst [vmem:[#allocation2 + $0xb4] sm:$0xf] %v11564_v24  ;;  %3034 = vst [vmem:[#allocation2 + $0xb8] sm:$0xf] %v11564_v24 }
 0x188   : > { %10236 = vmatprep.subr.bf16.mxu0 %v11375_v21  ;;  %3035 = vst [vmem:[#allocation2 + $0xbc] sm:$0x1] %v11564_v24  ;;  %3036 = vst [vmem:[#allocation2 + $0xc0] sm:$0xf] %v11564_v24 }
 0x189   : > { %3037 = vst [vmem:[#allocation2 + $0xc4] sm:$0xf] %v11564_v24  ;;  %3038 = vst [vmem:[#allocation2 + $0xc8] sm:$0x1] %v11564_v24 }
 0x18a   : > { %3039 = vst [vmem:[#allocation2 + $0xcc] sm:$0xf] %v11564_v24  ;;  %3040 = vst [vmem:[#allocation2 + $0xd0] sm:$0xf] %v11564_v24 }
 0x18b   : > { %10237 = vmatpush3.bf16.msra.mxu0 %v11375_v21  ;;  %v8924_v21 = vld [vmem:[%s11618_s29 + $0x171] sm:$0xff]  ;;  %3041 = vst [vmem:[#allocation2 + $0xd4] sm:$0x1] %v11564_v24 }
 0x18c   : > { %10270 = vmatprep.subr.bf16.mxu0 %v11376_v22 }
 0x18e   : > { %10207 = vmatmul.mubr.bf16.gmra.mrb[16].mxu0 %v11912_v19  ;;  %v8901_v19 = vld [vmem:[%s11618_s29 + $0x61] sm:$0xff] }
 0x18f   : > { %10210 = vmatprep.mubr.bf16.mxu0 %v11920_v31  ;;  %v11385_v31 = vld [vmem:[%s14054_s1 + $0x208] sm:$0xff]  }
 0x196   : > { %10211 = vmatmul.mubr.bf16.gmra.mrb[20].mxu0 %v11922_v34  ;;  %v8903_v34 = vld [vmem:[%s11618_s29 + $0x79] sm:$0xff] }
 0x197   : > { %10214 = vmatprep.mubr.bf16.mxu0 %v11930_v45  ;;  %v2340_v45 = vpack.c.bf16 %v8904_v37, %v8903_v34  ;;  %v8967_v34 = vld [vmem:[%s11618_s29 + $0xda] sm:$0xff]  ;;  %v8968_v37 = vld [vmem:[%s11618_s29 + $0xe2] sm:$0xff] }
 0x19e   : > { %10215 = vmatmul.mubr.bf16.gmra.mrb[24].mxu0 %v11932_v46  ;;  %v2341_v46 = vpack.c.bf16 %v8906_v43, %v8905_v39  ;;  %v8969_v39 = vld [vmem:[%s11618_s29 + $0xf2] sm:$0xff]  ;;  %v8970_v43 = vld [vmem:[%s11618_s29 + $0xfa] sm:$0xff] }
 0x19f   : > { %10218 = vmatprep.mubr.bf16.mxu0 %v11938_v57  ;;  %v8908_v57 = vld [vmem:[%s11618_s29 + $0xb1] sm:$0xff] }
 0x1a0   : > { %v2342_v0 = vpack.c.bf16 %v8908_v57, %v8907_v56  ;;  %v8973_v56 = vld [vmem:[%s11618_s29 + $0x122] sm:$0xff]  ;;  %v8974_v57 = vld [vmem:[%s11618_s29 + $0x12a] sm:$0xff] }
 0x1a1   : > { %v2653_v63 = vpack.c.bf16 %v8974_v57, %v8973_v56 }
 0x1a6   : > { %10219 = vmatmul.mubr.bf16.gmra.mrb[28].mxu0 %v12070_v47 }
 0x1a7   : > { %10238 = vmatprep.mubr.bf16.mxu0 %v11750_v10  ;;  %v11379_v10 = vld [vmem:[%s14054_s1 + $0x1d8] sm:$0xff]  }
 0x1ae   : > { %10239 = vmatmul.mubr.bf16.vlgmr.msra.gmra.mrb[0].mxu0 %v11761_v18  ;;  %v11380_v18 = vld [vmem:[%s14054_s1 + $0x1e0] sm:$0xff]  }
 0x1af   : > { %10271 = vmatpush3.bf16.msra.mxu0 %v11376_v22  ;;  %10242 = vmatprep.mubr.bf16.mxu0 %v11766_v20  ;;  %v11381_v20 = vld [vmem:[%s14054_s1 + $0x1e8] sm:$0xff]   ;;  %v2350_v22 = vpack.c.bf16 %v8924_v21, %v8923_v2  ;;  %v3660_v2 = vshrl.u32 %v3580_v54, 16  ;;  %v11399_v21 = vld [vmem:[%s14056_s3 + $0x78] sm:$0xff]  }
 0x1b0   : > { %10272 = vmatprep.subr.bf16.mxu0 %v11377_v52 }
 0x1b3   : > { %10273 = vmatpush3.bf16.msra.mxu0 %v11377_v52  ;;  %v8953_v52 = vld [vmem:[%s11618_s29 + $0x32] sm:$0xff] }
 0x1b4   : > { %10274 = vmatprep.subr.bf16.mxu0 %v11378_v1 }
 0x1b6   : > { %10243 = vmatmul.mubr.bf16.gmra.mrb[4].mxu0 %v11777_v28  ;;  %v11382_v28 = vld [vmem:[%s14054_s1 + $0x1f0] sm:$0xff]  }
 0x1b7   : > { %10246 = vmatprep.mubr.bf16.mxu0 %v11782_v30  ;;  %10275 = vmatpush3.bf16.msra.mxu0 %v11378_v1  ;;  %v11383_v30 = vld [vmem:[%s14054_s1 + $0x1f8] sm:$0xff]  }
 0x1b8   : > { %10276 = vmatprep.subr.bf16.mxu0 %v11379_v10  ;;  %v8954_v1 = vld [vmem:[%s11618_s29 + $0x3a] sm:$0xff] }
 0x1bb   : > { %10277 = vmatpush3.bf16.msra.mxu0 %v11379_v10  ;;  %v2352_v10 = vpack.c.bf16 %v8928_v36, %v8927_v35 }
 0x1bc   : > { %10278 = vmatprep.subr.bf16.mxu0 %v11380_v18 }
 0x1be   : > { %10247 = vmatmul.mubr.bf16.gmra.mrb[8].mxu0 %v11793_v38  ;;  %v11384_v38 = vld [vmem:[%s14054_s1 + $0x200] sm:$0xff]  }
 0x1bf   : > { %10250 = vmatprep.mubr.bf16.mxu0 %v11798_v41  ;;  %10279 = vmatpush3.bf16.msra.mxu0 %v11380_v18  ;;  %v8871_v41 = vld [vmem:[%s11618_s29 + $0x198] sm:$0xff]  ;;  %v2643_v18 = vpack.c.bf16 %v8954_v1, %v8953_v52  ;;  %v3627_v52 = vld [vmem:[#allocation2 + $0x8] sm:$0x1]  ;;  %v3662_v1 = vrot.slane %v3660_v2, 4 }
 0x1c0   : > { %10280 = vmatprep.subr.bf16.mxu0 %v11381_v20 }
 0x1c3   : > { %10281 = vmatpush3.bf16.msra.mxu0 %v11381_v20  ;;  %v8955_v20 = vld [vmem:[%s11618_s29 + $0x4a] sm:$0xff] }
 0x1c4   : > { %10282 = vmatprep.subr.bf16.mxu0 %v11382_v28 }
 0x1c6   : > { %10251 = vmatmul.mubr.bf16.gmra.mrb[12].mxu0 %v11809_v50  ;;  %v8872_v50 = vld [vmem:[%s11618_s29 + $0x1a0] sm:$0xff] }
 0x1c7   : > { %10254 = vmatprep.mubr.bf16.mxu0 %v11811_v51  ;;  %10283 = vmatpush3.bf16.msra.mxu0 %v11382_v28  ;;  %v8897_v51 = vld [vmem:[%s11618_s29 + $0x31] sm:$0xff]  ;;  %v2046_v15 = vpack.c.bf16 %v8872_v50, %v8871_v41  ;;  %v8959_v50 = vld [vmem:[%s11618_s29 + $0x7a] sm:$0xff] }
 0x1c8   : > { %10284 = vmatprep.subr.bf16.mxu0 %v11383_v30  ;;  %v8956_v28 = vld [vmem:[%s11618_s29 + $0x52] sm:$0xff] }
 0x1cb   : > { %10285 = vmatpush3.bf16.msra.mxu0 %v11383_v30  ;;  %v8957_v30 = vld [vmem:[%s11618_s29 + $0x62] sm:$0xff] }
 0x1cc   : > { %10318 = vmatprep.subr.bf16.mxu0 %v11384_v38 }
 0x1ce   : > { %10255 = vmatmul.mubr.bf16.gmra.mrb[16].mxu0 %v11819_v58  ;;  %v2337_v58 = vpack.c.bf16 %v8898_v5, %v8897_v51  ;;  %v8960_v51 = vld [vmem:[%s11618_s29 + $0x82] sm:$0xff]  ;;  %v8961_v5 = vld [vmem:[%s11618_s29 + $0x92] sm:$0xff] }
 0x1cf   : > { %10258 = vmatprep.mubr.bf16.mxu0 %v11821_v59  ;;  %v8899_v59 = vld [vmem:[%s11618_s29 + $0x49] sm:$0xff] }
 0x1d6   : > { %10259 = vmatmul.mubr.bf16.gmra.mrb[20].mxu0 %v11829_v3  ;;  %v8900_v3 = vld [vmem:[%s11618_s29 + $0x51] sm:$0xff] }
 0x1d7   : > { %10262 = vmatprep.mubr.bf16.mxu0 %v11831_v4  ;;  %v8902_v4 = vld [vmem:[%s11618_s29 + $0x69] sm:$0xff]  ;;  %v2338_v29 = vpack.c.bf16 %v8900_v3, %v8899_v59 }
 0x1d8   : > { %v8963_v3 = vld [vmem:[%s11618_s29 + $0xaa] sm:$0xff] }
 0x1de   : > { %10263 = vmatmul.mubr.bf16.gmra.mrb[24].mxu0 %v11839_v11  ;;  %v2339_v11 = vpack.c.bf16 %v8902_v4, %v8901_v19  ;;  %v8964_v19 = vld [vmem:[%s11618_s29 + $0xb2] sm:$0xff]  ;;  %v8965_v4 = vld [vmem:[%s11618_s29 + $0xc2] sm:$0xff] }
 0x1df   : > { %10266 = vmatprep.mubr.bf16.mxu0 %v11982_v23  ;;  %v11390_v23 = vld [vmem:[%s14054_s1 + $0x230] sm:$0xff]  }
 0x1e6   : > { %10267 = vmatmul.mubr.bf16.gmra.mrb[28].mxu0 %v2046_v15  ;;  %v8962_v15 = vld [vmem:[%s11618_s29 + $0x9a] sm:$0xff] }
 0x1e7   : > { %10286 = vmatprep.mubr.bf16.mxu0 %v2337_v58  ;;  %v2646_v58 = vpack.c.bf16 %v8960_v51, %v8959_v50  ;;  %v2647_v59 = vpack.c.bf16 %v8962_v15, %v8961_v5  ;;  %v12232_v5 = vld [vmem:[%s14056_s3] sm:$0xff]  }
 0x1e8   : > { %v12238_v15 = vld [vmem:[%s14055_s2] ss:$0 sm:$0xff] }
 0x1ee   : > { %10287 = vmatmul.mubr.bf16.vlgmr.msra.gmra.mrb[0].mxu0 %v2338_v29  ;;  %v8966_v29 = vld [vmem:[%s11618_s29 + $0xca] sm:$0xff] }
 0x1ef   : > { %10319 = vmatpush3.bf16.msra.mxu0 %v11384_v38  ;;  %10290 = vmatprep.mubr.bf16.mxu0 %v2339_v11  ;;  %v8958_v38 = vld [vmem:[%s11618_s29 + $0x6a] sm:$0xff]  ;;  %v2648_v11 = vpack.c.bf16 %v8964_v19, %v8963_v3 }
 0x1f0   : > { %10320 = vmatprep.subr.bf16.mxu0 %v11385_v31  ;;  %v2645_v41 = vpack.c.bf16 %v8958_v38, %v8957_v30 }
 0x1f3   : > { %10321 = vmatpush3.bf16.msra.mxu0 %v11385_v31  ;;  %v2649_v31 = vpack.c.bf16 %v8966_v29, %v8965_v4 }
 0x1f4   : > { %10322 = vmatprep.subr.bf16.mxu0 %v11386_v44 }
 0x1f6   : > { %10291 = vmatmul.mubr.bf16.gmra.mrb[4].mxu0 %v2340_v45  ;;  %v2651_v45 = vpack.c.bf16 %v8970_v43, %v8969_v39 }
 0x1f7   : > { %10294 = vmatprep.mubr.bf16.mxu0 %v2341_v46  ;;  %10323 = vmatpush3.bf16.msra.mxu0 %v11386_v44  ;;  %v2650_v44 = vpack.c.bf16 %v8968_v37, %v8967_v34  ;;  %v8971_v46 = vld [vmem:[%s11618_s29 + $0x10a] sm:$0xff] }
 0x1f8   : > { %10324 = vmatprep.subr.bf16.mxu0 %v11387_v53 }
 0x1fb   : > { %10325 = vmatpush3.bf16.msra.mxu0 %v11387_v53  ;;  %v8972_v53 = vld [vmem:[%s11618_s29 + $0x112] sm:$0xff] }
 0x1fc   : > { %10326 = vmatprep.subr.bf16.mxu0 %v11388_v8  ;;  %v2652_v62 = vpack.c.bf16 %v8972_v53, %v8971_v46 }
 0x1fe   : > { %10295 = vmatmul.mubr.bf16.gmra.mrb[8].mxu0 %v2342_v0  ;;  %v8976_v0 = vld [vmem:[%s11618_s29 + $0x142] sm:$0xff] }
 0x1ff   : > { %10298 = vmatprep.mubr.bf16.mxu0 %v2343_v6  ;;  %10327 = vmatpush3.bf16.msra.mxu0 %v11388_v8  ;;  %v8975_v8 = vld [vmem:[%s11618_s29 + $0x13a] sm:$0xff]  ;;  %v8977_v6 = vld [vmem:[%s11618_s29 + $0x152] sm:$0xff] }
 0x200   : > { %10328 = vmatprep.subr.bf16.mxu0 %v11389_v7  ;;  %v2654_v9 = vpack.c.bf16 %v8976_v0, %v8975_v8 }
 0x203   : > { %10329 = vmatpush3.bf16.msra.mxu0 %v11389_v7  ;;  %v8978_v7 = vld [vmem:[%s11618_s29 + $0x15a] sm:$0xff] }
 0x204   : > { %10330 = vmatprep.subr.bf16.mxu0 %v11390_v23  ;;  %v2655_v12 = vpack.c.bf16 %v8978_v7, %v8977_v6 }
 0x206   : > { %10299 = vmatmul.mubr.bf16.gmra.mrb[12].mxu0 %v2344_v26  ;;  %v8983_v26 = vld [vmem:[%s11618_s29 + $0x19a] sm:$0xff] }
 0x207   : > { %10302 = vmatprep.mubr.bf16.mxu0 %v2345_v27  ;;  %10331 = vmatpush3.bf16.msra.mxu0 %v11390_v23  ;;  %v2656_v23 = vpack.c.bf16 %v8980_v14, %v8979_v13  ;;  %v8984_v27 = vld [vmem:[%s11618_s29 + $0x1a2] sm:$0xff]  ;;  %v3474_v14 = vld [vmem:[#allocation2 + $0x18] sm:$0xf] }
 0x208   : > { %10332 = vmatprep.subr.bf16.mxu0 %v11391_v16 }
 0x20b   : > { %10333 = vmatpush3.bf16.msra.mxu0 %v11391_v16  ;;  %v2658_v16 = vpack.c.bf16 %v8984_v27, %v8983_v26 }
 0x20e   : > { %10303 = vmatmul.mubr.bf16.gmra.mrb[16].mxu0 %v2346_v33  ;;  %v11396_v33 = vld [vmem:[%s14056_s3 + $0x60] sm:$0xff]  }
 0x20f   : > { %10306 = vmatprep.mubr.bf16.mxu0 %v2347_v40  ;;  %v11397_v40 = vld [vmem:[%s14056_s3 + $0x68] sm:$0xff]  }
 0x216   : > { %10307 = vmatmul.mubr.bf16.gmra.mrb[20].mxu0 %v2348_v60  ;;  %v3650_v60 = vshll.u32 %v3579_v49, 16 }
 0x217   : > { %10310 = vmatprep.mubr.bf16.mxu0 %v2349_v61  ;;  %v3656_v61 = vshll.u32 %v3580_v54, 16 }
 0x218   : > { %v3652_v35 = vrot.slane %v3650_v60, 5  ;;  %v3478_v60 = vld [vmem:[#allocation2 + $0x20] sm:$0x1] }
 0x219   : > { %v3658_v36 = vrot.slane %v3656_v61, 5 }
 0x21e   : > { %10311 = vmatmul.mubr.bf16.gmra.mrb[24].mxu0 %v2350_v22  ;;  %v3649_v22 = vrot.slane %v3647_v55, 4 }
 0x21f   : > { %10314 = vmatprep.mubr.bf16.mxu0 %v12026_v48  ;;  %v2644_v48 = vpack.c.bf16 %v8956_v28, %v8955_v20  ;;  %v3666_v20 = vshll.u32 %v3627_v52, 16 }
 0x226   : > { %10315 = vmatmul.mubr.bf16.gmra.mrb[28].mxu0 %v2352_v10  ;;  %v3653_v10 = vor.u32 %v3652_v35, %v3649_v22 }
 0x227   : > { %10334 = vmatprep.mubr.bf16.mxu0 %v2643_v18  ;;  %v3663_v18 = vor.u32 %v3662_v1, %v3658_v36 }
 0x228   : > { %v3654_v28 = vrot.slane %v3653_v10, 4 }
 0x229   : > { %v3664_v38 = vrot.slane %v3663_v18, 4 }
 0x22e   : > { %10335 = vmatmul.mubr.bf16.vlgmr.msra.gmra.mrb[0].mxu0 %v2644_v48  ;;  %v3668_v48 = vrot.slane %v3666_v20, 5 }
 0x22f   : > { %10338 = vmatprep.mubr.bf16.mxu0 %v2645_v41  ;;  %v3659_v41 = vsel %vm12221_vm2, %v3654_v28, %v3658_v36  ;;  %v3471_v36 = vld [vmem:[#allocation2 + $0x14] sm:$0x1] }
 0x230   : > { %v3669_v50 = vsel %vm12221_vm2, %v3664_v38, %v3668_v48 }
 0x231   : > { %v9058_v51 = vcombine.low %v3659_v41, %v3669_v50 }
 0x233   : > { %10382 = vmatprep.mubr.bf16.mxu1 %v9058_v51 }
 0x236   : > { %10339 = vmatmul.mubr.bf16.gmra.mrb[4].mxu0 %v2646_v58 }
 0x237   : > { %10342 = vmatprep.mubr.bf16.mxu0 %v2647_v59 }
 0x23e   : > { %10343 = vmatmul.mubr.bf16.gmra.mrb[8].mxu0 %v2648_v11 }
 0x23f   : > { %10346 = vmatprep.mubr.bf16.mxu0 %v2649_v31 }
 0x246   : > { %10347 = vmatmul.mubr.bf16.gmra.mrb[12].mxu0 %v2650_v44 }
 0x247   : > { %10350 = vmatprep.mubr.bf16.mxu0 %v2651_v45 }
 0x24e   : > { %10351 = vmatmul.mubr.bf16.gmra.mrb[16].mxu0 %v2652_v62 }
 0x24f   : > { %10354 = vmatprep.mubr.bf16.mxu0 %v2653_v63 }
 0x256   : > { %10355 = vmatmul.mubr.bf16.gmra.mrb[20].mxu0 %v2654_v9 }
 0x257   : > { %10358 = vmatprep.mubr.bf16.mxu0 %v2655_v12 }
 0x25e   : > { %10359 = vmatmul.mubr.bf16.gmra.mrb[24].mxu0 %v2656_v23 }
 0x25f   : > { %10362 = vmatprep.mubr.bf16.mxu0 %v12070_v47  ;;  %v11393_v47 = vld [vmem:[%s14056_s3 + $0x48] sm:$0xff]  }
 0x260   : > { %10368 = vmatprep.subr.bf16.mxu1 %v11393_v47 }
 0x261   : > { %10369 = vmatpush3.bf16.msra.mxu1 %v11393_v47 }
 0x262   : > { %10370 = vmatprep.subr.bf16.mxu1 %v11394_v25 }
 0x265   : > { %10371 = vmatpush3.bf16.msra.mxu1 %v11394_v25  ;;  %v3465_v25 = vld [vmem:[#allocation2 + $0xc] sm:$0xf] }
 0x266   : > { %10363 = vmatmul.mubr.bf16.gmra.mrb[28].mxu0 %v2658_v16  ;;  %10372 = vmatprep.subr.bf16.mxu1 %v11395_v32 }
 0x269   : > { %10373 = vmatpush3.bf16.msra.mxu1 %v11395_v32 }
 0x26a   : > { %10374 = vmatprep.subr.bf16.mxu1 %v11396_v33 }
 0x26d   : > { %10375 = vmatpush3.bf16.msra.mxu1 %v11396_v33 }
 0x26e   : > { %10376 = vmatprep.subr.bf16.mxu1 %v11397_v40 }
 0x271   : > { %10377 = vmatpush3.bf16.msra.mxu1 %v11397_v40 }
 0x272   : > { %10378 = vmatprep.subr.bf16.mxu1 %v11398_v42 }
 0x275   : > { %10379 = vmatpush3.bf16.msra.mxu1 %v11398_v42 }
 0x276   : > { %10380 = vmatprep.subr.bf16.mxu1 %v11399_v21 }
 0x279   : > { %10381 = vmatpush3.bf16.msra.mxu1 %v11399_v21 }
 0x27a   : > { %10414 = vmatprep.subr.bf16.mxu1 %v12232_v5 }
 0x301   : > { %v10336_v58 = vpop.f32.mrb[0].mxu0 }
 0x302   : > { %v2926_v59 = vadd.f32 %v10336_v58, %v12238_v15  ;;  %v2758_v3 = vpop.f32.mrb[1].mxu0 }
 0x303   : > { %v2924_v19 = vadd.f32 %v12238_v15, %v2758_v3  ;;  %v10337_v4 = vpop.f32.mrb[2].mxu0 }
 0x304   : > { %v2958_v29 = vmax.f32 %v2926_v59, 0.0  ;;  %v2927_v11 = vadd.f32 %v10337_v4, %v12238_v15  ;;  %v2761_v31 = vpop.f32.mrb[3].mxu0 }
 0x305   : > { %v2956_v34 = vmax.f32 %v2924_v19, 0.0  ;;  %v2925_v37 = vadd.f32 %v12238_v15, %v2761_v31  ;;  %v3488_v31 = vld [vmem:[#allocation2 + $0x30] sm:$0xf] }
 0x306   : > { %v9472_v39 = vpack.c.bf16 %v2958_v29, %v2958_v29  ;;  %v2959_v43 = vmax.f32 %v2927_v11, 0.0 }
 0x307   : > { %v9470_v44 = vpack.c.bf16 %v2956_v34, %v2956_v34  ;;  %v2957_v45 = vmax.f32 %v2925_v37, 0.0 }
 0x308   : > { %v3159_v46 = vshrl.u32 %v9472_v39, 16  ;;  %v9473_v53 = vpack.c.bf16 %v2959_v43, %v2959_v43  ;;  %v3162_v56 = vshll.u32 %v9472_v39, 16 }
 0x309   : > { %v3142_v57 = vshrl.u32 %v9470_v44, 16  ;;  %v3145_v62 = vshll.u32 %v9470_v44, 16  ;;  %v9471_v63 = vpack.c.bf16 %v2957_v45, %v2957_v45  ;;  %v10340_v8 = vpop.f32.mrb[4].mxu0 }
 0x30a   : > { %v3161_v0 = vrot.slane %v3159_v46, 7  ;;  %v3167_v6 = vshrl.u32 %v9473_v53, 16  ;;  %v3170_v7 = vshll.u32 %v9473_v53, 16  ;;  %v2930_v9 = vadd.f32 %v10340_v8, %v12238_v15  ;;  %v2774_v12 = vpop.f32.mrb[5].mxu0  ;;  %v3481_v46 = vld [vmem:[#allocation2 + $0x24] sm:$0xf] }
 0x30b   : > { %v3144_v23 = vrot.slane %v3142_v57, 7  ;;  %v3150_v26 = vshrl.u32 %v9471_v63, 16  ;;  %v3153_v27 = vshll.u32 %v9471_v63, 16  ;;  %v2928_v16 = vadd.f32 %v12238_v15, %v2774_v12  ;;  %v10341_v17 = vpop.f32.mrb[6].mxu0 }
 0x30c   : > { %v3164_v24 = vor.u32 %v3162_v56, %v3161_v0  ;;  %v3165_v47 = vrot.slane %v3161_v0, 4  ;;  %v3169_v33 = vrot.slane %v3167_v6, 7  ;;  %v2962_v40 = vmax.f32 %v2930_v9, 0.0  ;;  %v2777_v42 = vpop.f32.mrb[7].mxu0 }
 0x30d   : > { %v3147_v49 = vor.u32 %v3145_v62, %v3144_v23  ;;  %v3148_v54 = vrot.slane %v3144_v23, 4  ;;  %v3152_v61 = vrot.slane %v3150_v26, 7  ;;  %v2960_v2 = vmax.f32 %v2928_v16, 0.0 }
 0x30e   : > { %v3475_v21 = vsel %vm12247_vm8, %v3164_v24, %v3474_v14  ;;  %v3172_v22 = vor.u32 %v3170_v7, %v3169_v33  ;;  %v3174_v35 = vrot.slane %v3169_v33, 4  ;;  %v9476_v52 = vpack.c.bf16 %v2962_v40, %v2962_v40  ;;  %v3485_v33 = vld [vmem:[#allocation2 + $0x2c] sm:$0x1] }
 0x30f   : > { %3476 = vst [vmem:[#allocation2 + $0x18] sm:$0xf] %v3475_v21  ;;  %v3466_v1 = vsel %vm12247_vm8, %v3147_v49, %v3465_v25  ;;  %v3155_v10 = vor.u32 %v3153_v27, %v3152_v61  ;;  %v3157_v18 = vrot.slane %v3152_v61, 4  ;;  %v9474_v20 = vpack.c.bf16 %v2960_v2, %v2960_v2  ;;  %v3492_v25 = vld [vmem:[#allocation2 + $0x38] sm:$0x1] }
 0x310   : > { %3467 = vst [vmem:[#allocation2 + $0xc] sm:$0xf] %v3466_v1  ;;  %v3173_v28 = vsel %vm12254_vm9, %v3165_v47, %v3172_v22  ;;  %v3479_v38 = vsel %vm12260_vm10, %v3174_v35, %v3478_v60  ;;  %v3193_v48 = vshrl.u32 %v9476_v52, 16  ;;  %v3196_v51 = vshll.u32 %v9476_v52, 16  ;;  %v3502_v52 = vld [vmem:[#allocation2 + $0x48] sm:$0xf] }
 0x311   : > { %3477 = vst [vmem:[#allocation2 + $0x1c] sm:$0xf] %v3173_v28  ;;  %3480 = vst [vmem:[#allocation2 + $0x20] sm:$0x1] %v3479_v38  ;;  %v3156_v41 = vsel %vm12254_vm9, %v3148_v54, %v3155_v10  ;;  %v3472_v50 = vsel %vm12260_vm10, %v3157_v18, %v3471_v36  ;;  %v3176_v58 = vshrl.u32 %v9474_v20, 16  ;;  %v10344_v59 = vpop.f32.mrb[8].mxu0  ;;  %v2931_v19 = vadd.f32 %v10341_v17, %v12238_v15 }
 0x312   : > { %3468 = vst [vmem:[#allocation2 + $0x10] sm:$0xf] %v3156_v41  ;;  %3473 = vst [vmem:[#allocation2 + $0x14] sm:$0x1] %v3472_v50  ;;  %v12276_v3 = vrot.slane %v3193_v48, 7  ;;  %v2929_v4 = vadd.f32 %v12238_v15, %v2777_v42  ;;  %v2934_v29 = vadd.f32 %v10344_v59, %v12238_v15  ;;  %v2790_v11 = vpop.f32.mrb[9].mxu0 }
 0x313   : > { %v3178_v34 = vrot.slane %v3176_v58, 7  ;;  %v3179_v37 = vshll.u32 %v9474_v20, 16  ;;  %v2932_v39 = vadd.f32 %v12238_v15, %v2790_v11  ;;  %v10345_v43 = vpop.f32.mrb[10].mxu0  ;;  %v2963_v53 = vmax.f32 %v2931_v19, 0.0  ;;  %v3495_v50 = vld [vmem:[#allocation2 + $0x3c] sm:$0xf] }
 0x314   : > { %v3198_v44 = vor.u32 %v3196_v51, %v12276_v3  ;;  %v3199_v45 = vrot.slane %v12276_v3, 4  ;;  %v2961_v56 = vmax.f32 %v2929_v4, 0.0  ;;  %v2793_v57 = vpop.f32.mrb[11].mxu0  ;;  %v2966_v8 = vmax.f32 %v2934_v29, 0.0 }
 0x315   : > { %v3181_v62 = vor.u32 %v3179_v37, %v3178_v34  ;;  %v3182_v63 = vrot.slane %v3178_v34, 4  ;;  %v2964_v0 = vmax.f32 %v2932_v39, 0.0  ;;  %v9477_v7 = vpack.c.bf16 %v2963_v53, %v2963_v53 }
 0x316   : > { %v3489_v6 = vsel %vm12247_vm8, %v3198_v44, %v3488_v31  ;;  %v9475_v9 = vpack.c.bf16 %v2961_v56, %v2961_v56  ;;  %v2935_v12 = vadd.f32 %v10345_v43, %v12238_v15  ;;  %v9480_v23 = vpack.c.bf16 %v2966_v8, %v2966_v8 }
 0x317   : > { %3490 = vst [vmem:[#allocation2 + $0x30] sm:$0xf] %v3489_v6  ;;  %v3482_v14 = vsel %vm12247_vm8, %v3181_v62, %v3481_v46  ;;  %v9478_v26 = vpack.c.bf16 %v2964_v0, %v2964_v0  ;;  %v2933_v27 = vadd.f32 %v12238_v15, %v2793_v57  ;;  %v3201_v16 = vshrl.u32 %v9477_v7, 16  ;;  %v3506_v0 = vld [vmem:[#allocation2 + $0x50] sm:$0x1] }
 0x318   : > { %3483 = vst [vmem:[#allocation2 + $0x24] sm:$0xf] %v3482_v14  ;;  %v3204_v17 = vshll.u32 %v9477_v7, 16  ;;  %v3184_v24 = vshrl.u32 %v9475_v9, 16  ;;  %v3187_v47 = vshll.u32 %v9475_v9, 16  ;;  %v3227_v40 = vshrl.u32 %v9480_v23, 16 }
 0x319   : > { %v3230_v42 = vshll.u32 %v9480_v23, 16  ;;  %v3210_v49 = vshrl.u32 %v9478_v26, 16  ;;  %v3213_v54 = vshll.u32 %v9478_v26, 16  ;;  %v10348_v60 = vpop.f32.mrb[12].mxu0  ;;  %v3203_v61 = vrot.slane %v3201_v16, 7 }
 0x31a   : > { %v3186_v2 = vrot.slane %v3184_v24, 7  ;;  %v2967_v21 = vmax.f32 %v2935_v12, 0.0  ;;  %v2965_v22 = vmax.f32 %v2933_v27, 0.0  ;;  %v2806_v35 = vpop.f32.mrb[13].mxu0  ;;  %v12290_v36 = vrot.slane %v3227_v40, 7 }
 0x31b   : > { %v12292_v1 = vrot.slane %v3210_v49, 7  ;;  %v2938_v10 = vadd.f32 %v10348_v60, %v12238_v15  ;;  %v2936_v18 = vadd.f32 %v12238_v15, %v2806_v35  ;;  %v10349_v20 = vpop.f32.mrb[14].mxu0  ;;  %v3206_v28 = vor.u32 %v3204_v17, %v3203_v61  ;;  %v3499_v27 = vld [vmem:[#allocation2 + $0x44] sm:$0x1] }
 0x31c   : > { %v3208_v38 = vrot.slane %v3203_v61, 4  ;;  %v3189_v48 = vor.u32 %v3187_v47, %v3186_v2  ;;  %v3191_v41 = vrot.slane %v3186_v2, 4  ;;  %v2809_v51 = vpop.f32.mrb[15].mxu0  ;;  %v3232_v58 = vor.u32 %v3230_v42, %v12290_v36 }
 0x31d   : > { %v3233_v59 = vrot.slane %v12290_v36, 4  ;;  %v3215_v3 = vor.u32 %v3213_v54, %v12292_v1  ;;  %v3216_v19 = vrot.slane %v12292_v1, 4  ;;  %v3207_v4 = vsel %vm12254_vm9, %v3199_v45, %v3206_v28 }
 0x31e   : > { %v3493_v29 = vsel %vm12260_vm10, %v3208_v38, %v3492_v25  ;;  %v3190_v11 = vsel %vm12254_vm9, %v3182_v63, %v3189_v48  ;;  %v3486_v31 = vsel %vm12260_vm10, %v3191_v41, %v3485_v33  ;;  %3491 = vst [vmem:[#allocation2 + $0x34] sm:$0xf] %v3207_v4  ;;  %v3503_v34 = vsel %vm12247_vm8, %v3232_v58, %v3502_v52 }
 0x31f   : > { %3494 = vst [vmem:[#allocation2 + $0x38] sm:$0x1] %v3493_v29  ;;  %3484 = vst [vmem:[#allocation2 + $0x28] sm:$0xf] %v3190_v11  ;;  %v3496_v37 = vsel %vm12247_vm8, %v3215_v3, %v3495_v50  ;;  %v9481_v39 = vpack.c.bf16 %v2967_v21, %v2967_v21  ;;  %v9479_v43 = vpack.c.bf16 %v2965_v22, %v2965_v22  ;;  %v2970_v44 = vmax.f32 %v2938_v10, 0.0 }
 0x320   : > { %3487 = vst [vmem:[#allocation2 + $0x2c] sm:$0x1] %v3486_v31  ;;  %3504 = vst [vmem:[#allocation2 + $0x48] sm:$0xf] %v3503_v34  ;;  %v2968_v45 = vmax.f32 %v2936_v18, 0.0  ;;  %v2939_v46 = vadd.f32 %v10349_v20, %v12238_v15  ;;  %v2937_v53 = vadd.f32 %v12238_v15, %v2809_v51 }
 0x321   : > { %3497 = vst [vmem:[#allocation2 + $0x3c] sm:$0xf] %v3496_v37  ;;  %v3235_v56 = vshrl.u32 %v9481_v39, 16  ;;  %v3238_v57 = vshll.u32 %v9481_v39, 16  ;;  %v3218_v62 = vshrl.u32 %v9479_v43, 16  ;;  %v3221_v63 = vshll.u32 %v9479_v43, 16 }
 0x322   : > { %v10352_v8 = vpop.f32.mrb[16].mxu0  ;;  %v9484_v6 = vpack.c.bf16 %v2970_v44, %v2970_v44  ;;  %v9482_v7 = vpack.c.bf16 %v2968_v45, %v2968_v45  ;;  %v2971_v9 = vmax.f32 %v2939_v46, 0.0  ;;  %v2969_v12 = vmax.f32 %v2937_v53, 0.0  ;;  %v3516_v18 = vld [vmem:[#allocation2 + $0x60] sm:$0xf] }
 0x323   : > { %v2822_v14 = vpop.f32.mrb[17].mxu0  ;;  %v3237_v23 = vrot.slane %v3235_v56, 7  ;;  %v3220_v26 = vrot.slane %v3218_v62, 7  ;;  %v2942_v16 = vadd.f32 %v10352_v8, %v12238_v15  ;;  %v3509_v20 = vld [vmem:[#allocation2 + $0x54] sm:$0xf] }
 0x324   : > { %v2940_v17 = vadd.f32 %v12238_v15, %v2822_v14  ;;  %v10353_v24 = vpop.f32.mrb[18].mxu0  ;;  %v3261_v47 = vshrl.u32 %v9484_v6, 16  ;;  %v3264_v25 = vshll.u32 %v9484_v6, 16  ;;  %v3244_v33 = vshrl.u32 %v9482_v7, 16  ;;  %v3581_v50 = vld [vmem:[#allocation2 + $0xc] sm:$0xf] }
 0x325   : > { %v3247_v40 = vshll.u32 %v9482_v7, 16  ;;  %v2825_v42 = vpop.f32.mrb[19].mxu0  ;;  %v3240_v49 = vor.u32 %v3238_v57, %v3237_v23  ;;  %v3242_v54 = vrot.slane %v3237_v23, 4  ;;  %v3223_v60 = vor.u32 %v3221_v63, %v3220_v26  ;;  %v3520_v11 = vld [vmem:[#allocation2 + $0x68] sm:$0x1] }
 0x326   : > { %v3225_v61 = vrot.slane %v3220_v26, 4  ;;  %v3263_v2 = vrot.slane %v3261_v47, 7  ;;  %v3246_v21 = vrot.slane %v3244_v33, 7  ;;  %v9485_v22 = vpack.c.bf16 %v2971_v9, %v2971_v9  ;;  %v3513_v44 = vld [vmem:[#allocation2 + $0x5c] sm:$0x1] }
 0x327   : > { %v9483_v35 = vpack.c.bf16 %v2969_v12, %v2969_v12  ;;  %v3241_v36 = vsel %vm12254_vm9, %v3233_v59, %v3240_v49  ;;  %v3507_v52 = vsel %vm12260_vm10, %v3242_v54, %v3506_v0  ;;  %v3224_v1 = vsel %vm12254_vm9, %v3216_v19, %v3223_v60  ;;  %v3582_v62 = vld [vmem:[#allocation2 + $0x10] sm:$0xf]  ;;  %v3523_v33 = vld [vmem:[#allocation2 + $0x6c] sm:$0xf]  ;;  %v3628_v60 = vld [vmem:[#allocation2 + $0x14] sm:$0x1] }
 0x328   : > { %v3500_v10 = vsel %vm12260_vm10, %v3225_v61, %v3499_v27  ;;  %3505 = vst [vmem:[#allocation2 + $0x4c] sm:$0xf] %v3241_v36  ;;  %3508 = vst [vmem:[#allocation2 + $0x50] sm:$0x1] %v3507_v52  ;;  %v3266_v28 = vor.u32 %v3264_v25, %v3263_v2  ;;  %v3267_v38 = vrot.slane %v3263_v2, 4  ;;  %v3249_v48 = vor.u32 %v3247_v40, %v3246_v21 }
 0x329   : > { %3498 = vst [vmem:[#allocation2 + $0x40] sm:$0xf] %v3224_v1  ;;  %3501 = vst [vmem:[#allocation2 + $0x44] sm:$0x1] %v3500_v10  ;;  %v3250_v41 = vrot.slane %v3246_v21, 4  ;;  %v3269_v51 = vshrl.u32 %v9485_v22, 16  ;;  %v2943_v45 = vadd.f32 %v10353_v24, %v12238_v15  ;;  %v2941_v46 = vadd.f32 %v12238_v15, %v2825_v42 }
 0x32a   : > { %v3272_v58 = vshll.u32 %v9485_v22, 16  ;;  %v3252_v59 = vshrl.u32 %v9483_v35, 16  ;;  %v3255_v3 = vshll.u32 %v9483_v35, 16  ;;  %v12324_v4 = vpop.f32.mrb[20].mxu0  ;;  %v3517_v19 = vsel %vm12247_vm8, %v3266_v28, %v3516_v18  ;;  %v3530_v25 = vld [vmem:[#allocation2 + $0x78] sm:$0xf] }
 0x32b   : > { %v3510_v29 = vsel %vm12247_vm8, %v3249_v48, %v3509_v20  ;;  %v2974_v31 = vmax.f32 %v2942_v16, 0.0  ;;  %v2972_v34 = vmax.f32 %v2940_v17, 0.0  ;;  %v12330_v37 = vpop.f32.mrb[21].mxu0  ;;  %3518 = vst [vmem:[#allocation2 + $0x60] sm:$0xf] %v3517_v19  ;;  %v3271_v39 = vrot.slane %v3269_v51, 7 }
 0x32c   : > { %3511 = vst [vmem:[#allocation2 + $0x54] sm:$0xf] %v3510_v29  ;;  %v3254_v43 = vrot.slane %v3252_v59, 7  ;;  %v12334_v53 = vpop.f32.mrb[22].mxu0  ;;  %v3671_v63 = vshrl.u32 %v3581_v50, 16  ;;  %v3674_v8 = vshll.u32 %v3581_v50, 16 }
 0x32d   : > { %v9488_v56 = vpack.c.bf16 %v2974_v31, %v2974_v31  ;;  %v9486_v57 = vpack.c.bf16 %v2972_v34, %v2972_v34  ;;  %v12336_v0 = vpop.f32.mrb[23].mxu0  ;;  %v3274_v6 = vor.u32 %v3272_v58, %v3271_v39  ;;  %v3276_v7 = vrot.slane %v3271_v39, 4  ;;  %v3583_v48 = vld [vmem:[#allocation2 + $0x18] sm:$0xf] }
 0x32e   : > { %v3257_v9 = vor.u32 %v3255_v3, %v3254_v43  ;;  %v3259_v12 = vrot.slane %v3254_v43, 4  ;;  %v2975_v49 = vmax.f32 %v2943_v45, 0.0  ;;  %v2973_v54 = vmax.f32 %v2941_v46, 0.0  ;;  %v3584_v3 = vld [vmem:[#allocation2 + $0x1c] sm:$0xf] }
 0x32f   : > { %v3295_v14 = vshrl.u32 %v9488_v56, 16  ;;  %v3298_v23 = vshll.u32 %v9488_v56, 16  ;;  %v3278_v26 = vshrl.u32 %v9486_v57, 16  ;;  %v3281_v27 = vshll.u32 %v9486_v57, 16  ;;  %v3534_v56 = vld [vmem:[#allocation2 + $0x80] sm:$0x1] }
 0x330   : > { %v3275_v16 = vsel %vm12254_vm9, %v3267_v38, %v3274_v6  ;;  %v3521_v17 = vsel %vm12260_vm10, %v3276_v7, %v3520_v11  ;;  %v3258_v24 = vsel %vm12254_vm9, %v3250_v41, %v3257_v9  ;;  %v3514_v47 = vsel %vm12260_vm10, %v3259_v12, %v3513_v44 }
 0x331   : > { %3519 = vst [vmem:[#allocation2 + $0x64] sm:$0xf] %v3275_v16  ;;  %3522 = vst [vmem:[#allocation2 + $0x68] sm:$0x1] %v3521_v17  ;;  %v3297_v40 = vrot.slane %v3295_v14, 7  ;;  %v3280_v42 = vrot.slane %v3278_v26, 7  ;;  %v9489_v18 = vpack.c.bf16 %v2975_v49, %v2975_v49  ;;  %v9487_v20 = vpack.c.bf16 %v2973_v54, %v2973_v54 }
 0x332   : > { %3512 = vst [vmem:[#allocation2 + $0x58] sm:$0xf] %v3258_v24  ;;  %3515 = vst [vmem:[#allocation2 + $0x5c] sm:$0x1] %v3514_v47  ;;  %v3673_v61 = vrot.slane %v3671_v63, 4  ;;  %v3676_v2 = vrot.slane %v3674_v8, 5 }
 0x333   : > { %v3680_v21 = vshll.u32 %v3582_v62, 16  ;;  %v3684_v22 = vshrl.u32 %v3582_v62, 16  ;;  %v12346_v35 = vpop.f32.mrb[24].mxu0  ;;  %v3300_v36 = vor.u32 %v3298_v23, %v3297_v40  ;;  %v3301_v52 = vrot.slane %v3297_v40, 4  ;;  %v3527_v8 = vld [vmem:[#allocation2 + $0x74] sm:$0x1] }
 0x334   : > { %v3283_v1 = vor.u32 %v3281_v27, %v3280_v42  ;;  %v12348_v10 = vpop.f32.mrb[25].mxu0  ;;  %v3677_v28 = vor.u32 %v3676_v2, %v3673_v61  ;;  %v3690_v59 = vshll.u32 %v3628_v60, 16  ;;  %v3284_v29 = vrot.slane %v3280_v42, 4  ;;  %v3629_v16 = vld [vmem:[#allocation2 + $0x20] sm:$0x1] }
 0x335   : > { %v3682_v38 = vrot.slane %v3680_v21, 5  ;;  %v12350_v41 = vpop.f32.mrb[26].mxu0  ;;  %v3531_v50 = vsel %vm12247_vm8, %v3300_v36, %v3530_v25  ;;  %v3686_v58 = vrot.slane %v3684_v22, 4  ;;  %v3303_v11 = vshrl.u32 %v9489_v18, 16  ;;  %v3585_v40 = vld [vmem:[#allocation2 + $0x24] sm:$0xf] }
 0x336   : > { %v3524_v51 = vsel %vm12247_vm8, %v3283_v1, %v3523_v33  ;;  %v12356_v19 = vpop.f32.mrb[27].mxu0  ;;  %3532 = vst [vmem:[#allocation2 + $0x78] sm:$0xf] %v3531_v50  ;;  %v3306_v31 = vshll.u32 %v9489_v18, 16  ;;  %v3286_v34 = vshrl.u32 %v9487_v20, 16  ;;  %v3289_v39 = vshll.u32 %v9487_v20, 16 }
 0x337   : > { %3525 = vst [vmem:[#allocation2 + $0x6c] sm:$0xf] %v3524_v51  ;;  %v3678_v43 = vrot.slane %v3677_v28, 4  ;;  %v3687_v44 = vor.u32 %v3686_v58, %v3682_v38  ;;  %v3692_v45 = vrot.slane %v3690_v59, 5  ;;  %v3305_v46 = vrot.slane %v3303_v11, 7 }
 0x338   : > { %v3288_v57 = vrot.slane %v3286_v34, 7  ;;  %v3695_v62 = vshrl.u32 %v3583_v48, 16  ;;  %v3698_v63 = vshll.u32 %v3583_v48, 16  ;;  %v3704_v9 = vshll.u32 %v3584_v3, 16  ;;  %v3586_v50 = vld [vmem:[#allocation2 + $0x28] sm:$0xf] }
 0x339   : > { %v3683_v6 = vsel %vm12221_vm2, %v3678_v43, %v3682_v38  ;;  %v3688_v7 = vrot.slane %v3687_v44, 4  ;;  %v3708_v12 = vshrl.u32 %v3584_v3, 16  ;;  %v3308_v14 = vor.u32 %v3306_v31, %v3305_v46  ;;  %v12360_v17 = vpop.f32.mrb[28].mxu0 }
 0x33a   : > { %v3310_v23 = vrot.slane %v3305_v46, 4  ;;  %v3291_v26 = vor.u32 %v3289_v39, %v3288_v57  ;;  %v3293_v27 = vrot.slane %v3288_v57, 4  ;;  %v3697_v47 = vrot.slane %v3695_v62, 4  ;;  %v12364_v42 = vpop.f32.mrb[29].mxu0 }
 0x33b   : > { %v3693_v24 = vsel %vm12221_vm2, %v3688_v7, %v3692_v45  ;;  %v3700_v25 = vrot.slane %v3698_v63, 5  ;;  %v3706_v33 = vrot.slane %v3704_v9, 5  ;;  %v3309_v49 = vsel %vm12254_vm9, %v3301_v52, %v3308_v14  ;;  %v12374_v2 = vpop.f32.mrb[30].mxu0  ;;  %v11401_v52 = vld [vmem:[%s14056_s3 + $0x8] sm:$0xff]   ;;  %v3544_v9 = vld [vmem:[#allocation2 + $0x90] sm:$0xf] }
 0x33c   : > { %v3535_v54 = vsel %vm12260_vm10, %v3310_v23, %v3534_v56  ;;  %v3292_v60 = vsel %vm12254_vm9, %v3284_v29, %v3291_v26  ;;  %v3528_v61 = vsel %vm12260_vm10, %v3293_v27, %v3527_v8  ;;  %3533 = vst [vmem:[#allocation2 + $0x7c] sm:$0xf] %v3309_v49  ;;  %v9059_v21 = vcombine.low %v3683_v6, %v3693_v24  ;;  %v12379_v18 = vpop.f32.mrb[31].mxu0  ;;  %v3537_v14 = vld [vmem:[#allocation2 + $0x84] sm:$0xf] }
 0x33d   : > { %3536 = vst [vmem:[#allocation2 + $0x80] sm:$0x1] %v3535_v54  ;;  %3526 = vst [vmem:[#allocation2 + $0x70] sm:$0xf] %v3292_v60  ;;  %v3701_v22 = vor.u32 %v3700_v25, %v3697_v47  ;;  %v3710_v36 = vrot.slane %v3708_v12, 4  ;;  %v3714_v1 = vshll.u32 %v3629_v16, 16  ;;  %v2946_v20 = vadd.f32 %v12324_v4, %v12238_v15 }
 0x33e   : > { %3529 = vst [vmem:[#allocation2 + $0x74] sm:$0x1] %v3528_v61  ;;  %v2944_v28 = vadd.f32 %v12238_v15, %v12330_v37  ;;  %v2947_v38 = vadd.f32 %v12334_v53, %v12238_v15  ;;  %v2945_v48 = vadd.f32 %v12238_v15, %v12336_v0  ;;  %10383 = vmatmul.mubr.bf16.vlgmr.msra.gmra.mrb[0].mxu1 %v9059_v21  ;;  %v3719_v3 = vshrl.u32 %v3585_v40, 16  ;;  %v11402_v0 = vld [vmem:[%s14056_s3 + $0x10] sm:$0xff]   ;;  %v11403_v16 = vld [vmem:[%s14056_s3 + $0x18] sm:$0xff]  }
 0x33f   : > { %v3702_v51 = vrot.slane %v3701_v22, 4  ;;  %v3711_v58 = vor.u32 %v3710_v36, %v3706_v33  ;;  %v3716_v59 = vrot.slane %v3714_v1, 5  ;;  %10415 = vmatpush3.bf16.msra.mxu1 %v12232_v5  ;;  %v2978_v29 = vmax.f32 %v2946_v20, 0.0  ;;  %v3548_v25 = vld [vmem:[#allocation2 + $0x98] sm:$0x1]  ;;  %v11404_v22 = vld [vmem:[%s14056_s3 + $0x20] sm:$0xff]  }
 0x340   : > { %v2976_v11 = vmax.f32 %v2944_v28, 0.0  ;;  %v2979_v4 = vmax.f32 %v2947_v38, 0.0  ;;  %v2977_v31 = vmax.f32 %v2945_v48, 0.0  ;;  %v3721_v53 = vrot.slane %v3719_v3, 4  ;;  %10416 = vmatprep.subr.bf16.mxu1 %v11401_v52 }
 0x341   : > { %v3707_v37 = vsel %vm12221_vm2, %v3702_v51, %v3706_v33  ;;  %v3712_v34 = vrot.slane %v3711_v58, 4  ;;  %v3722_v39 = vshll.u32 %v3585_v40, 16  ;;  %v9492_v43 = vpack.c.bf16 %v2978_v29, %v2978_v29  ;;  %v3541_v40 = vld [vmem:[#allocation2 + $0x8c] sm:$0x1]  ;;  %v12403_v58 = vld [vmem:[#allocation2 + $0x30] sm:$0xf] }
 0x342   : > { %v9490_v44 = vpack.c.bf16 %v2976_v11, %v2976_v11  ;;  %v9493_v45 = vpack.c.bf16 %v2979_v4, %v2979_v4  ;;  %v9491_v46 = vpack.c.bf16 %v2977_v31, %v2977_v31  ;;  %v3728_v57 = vshll.u32 %v3586_v50, 16  ;;  %v3630_v51 = vld [vmem:[#allocation2 + $0x2c] sm:$0x1]  ;;  %v12409_v4 = vld [vmem:[#allocation2 + $0x34] sm:$0xf] }
 0x343   : > { %v3717_v5 = vsel %vm12221_vm2, %v3712_v34, %v3716_v59  ;;  %v3724_v56 = vrot.slane %v3722_v39, 5  ;;  %v3732_v62 = vshrl.u32 %v3586_v50, 16  ;;  %v3329_v8 = vshrl.u32 %v9492_v43, 16  ;;  %10417 = vmatpush3.bf16.msra.mxu1 %v11401_v52  ;;  %v3631_v31 = vld [vmem:[#allocation2 + $0x38] sm:$0x1] }
 0x344   : > { %v9060_v63 = vcombine.low %v3707_v37, %v3717_v5  ;;  %v3332_v6 = vshll.u32 %v9492_v43, 16  ;;  %v3312_v7 = vshrl.u32 %v9490_v44, 16  ;;  %v3315_v12 = vshll.u32 %v9490_v44, 16  ;;  %10418 = vmatprep.subr.bf16.mxu1 %v11402_v0 }
 0x345   : > { %v3337_v23 = vshrl.u32 %v9493_v45, 16  ;;  %v3340_v26 = vshll.u32 %v9493_v45, 16  ;;  %v3320_v27 = vshrl.u32 %v9491_v46, 16  ;;  %v3331_v24 = vrot.slane %v3329_v8, 7 }
 0x346   : > { %10386 = vmatprep.mubr.bf16.mxu1 %v9060_v63  ;;  %v3314_v47 = vrot.slane %v3312_v7, 7  ;;  %v3323_v33 = vshll.u32 %v9491_v46, 16  ;;  %v3725_v49 = vor.u32 %v3724_v56, %v3721_v53  ;;  %v3730_v61 = vrot.slane %v3728_v57, 5 }
 0x347   : > { %v3339_v54 = vrot.slane %v3337_v23, 7  ;;  %v3322_v60 = vrot.slane %v3320_v27, 7  ;;  %v3734_v21 = vrot.slane %v3732_v62, 4  ;;  %v3334_v36 = vor.u32 %v3332_v6, %v3331_v24  ;;  %10419 = vmatpush3.bf16.msra.mxu1 %v11402_v0  ;;  %v11405_v62 = vld [vmem:[%s14056_s3 + $0x28] sm:$0xff]  }
 0x348   : > { %v3335_v1 = vrot.slane %v3331_v24, 4  ;;  %v3317_v52 = vor.u32 %v3315_v12, %v3314_v47  ;;  %v3318_v20 = vrot.slane %v3314_v47, 4  ;;  %10420 = vmatprep.subr.bf16.mxu1 %v11403_v16  ;;  %v3726_v29 = vrot.slane %v3725_v49, 4 }
 0x349   : > { %v3342_v28 = vor.u32 %v3340_v26, %v3339_v54  ;;  %v3344_v38 = vrot.slane %v3339_v54, 4  ;;  %v3325_v48 = vor.u32 %v3323_v33, %v3322_v60  ;;  %v3327_v50 = vrot.slane %v3322_v60, 4  ;;  %v12432_v26 = vld [vmem:[#allocation2 + $0x3c] sm:$0xf] }
 0x34a   : > { %v3545_v59 = vsel %vm12247_vm8, %v3334_v36, %v3544_v9  ;;  %v3538_v3 = vsel %vm12247_vm8, %v3317_v52, %v3537_v14  ;;  %v3735_v11 = vor.u32 %v3734_v21, %v3730_v61  ;;  %v3731_v0 = vsel %vm12221_vm2, %v3726_v29, %v3730_v61 }
 0x34b   : > { %3546 = vst [vmem:[#allocation2 + $0x90] sm:$0xf] %v3545_v59  ;;  %3539 = vst [vmem:[#allocation2 + $0x84] sm:$0xf] %v3538_v3  ;;  %v3343_v37 = vsel %vm12254_vm9, %v3335_v1, %v3342_v28  ;;  %v3549_v34 = vsel %vm12260_vm10, %v3344_v38, %v3548_v25  ;;  %v3326_v53 = vsel %vm12254_vm9, %v3318_v20, %v3325_v48  ;;  %v3738_v44 = vshll.u32 %v3630_v51, 16  ;;  %v11407_v3 = vld [vmem:[%s14056_s3 + $0x38] sm:$0xff]  }
 0x34c   : > { %v3542_v39 = vsel %vm12260_vm10, %v3327_v50, %v3541_v40  ;;  %3547 = vst [vmem:[#allocation2 + $0x94] sm:$0xf] %v3343_v37  ;;  %3550 = vst [vmem:[#allocation2 + $0x98] sm:$0x1] %v3549_v34  ;;  %v3736_v43 = vrot.slane %v3735_v11, 4  ;;  %v3743_v45 = vshrl.u32 %v12403_v58, 16  ;;  %10421 = vmatpush3.bf16.msra.mxu1 %v11403_v16  ;;  %v2950_v6 = vadd.f32 %v12346_v35, %v12238_v15 }
 0x34d   : > { %3540 = vst [vmem:[#allocation2 + $0x88] sm:$0xf] %v3326_v53  ;;  %3543 = vst [vmem:[#allocation2 + $0x8c] sm:$0x1] %v3542_v39  ;;  %v3746_v46 = vshll.u32 %v12403_v58, 16  ;;  %v3752_v5 = vshll.u32 %v12409_v4, 16  ;;  %10422 = vmatprep.subr.bf16.mxu1 %v11404_v22  ;;  %v2948_v7 = vadd.f32 %v12238_v15, %v12348_v10  ;;  %v2951_v47 = vadd.f32 %v12350_v41, %v12238_v15 }
 0x34e   : > { %v3756_v56 = vshrl.u32 %v12409_v4, 16  ;;  %v3762_v57 = vshll.u32 %v3631_v31, 16  ;;  %v3740_v63 = vrot.slane %v3738_v44, 5  ;;  %v3745_v8 = vrot.slane %v3743_v45, 4  ;;  %v11406_v40 = vld [vmem:[%s14056_s3 + $0x30] sm:$0xff]  }
 0x34f   : > { %v3748_v9 = vrot.slane %v3746_v46, 5  ;;  %v3754_v12 = vrot.slane %v3752_v5, 5  ;;  %v2982_v16 = vmax.f32 %v2950_v6, 0.0  ;;  %v2980_v24 = vmax.f32 %v2948_v7, 0.0  ;;  %v3558_v38 = vld [vmem:[#allocation2 + $0xa8] sm:$0xf] }
 0x350   : > { %v3758_v14 = vrot.slane %v3756_v56, 4  ;;  %v3764_v23 = vrot.slane %v3762_v57, 5  ;;  %v3741_v27 = vsel %vm12221_vm2, %v3736_v43, %v3740_v63  ;;  %10423 = vmatpush3.bf16.msra.mxu1 %v11404_v22  ;;  %v2949_v10 = vadd.f32 %v12238_v15, %v12356_v19  ;;  %v3551_v48 = vld [vmem:[#allocation2 + $0x9c] sm:$0xf]  ;;  %v12449_v59 = vld [vmem:[#allocation2 + $0x40] sm:$0xf] }
 0x351   : > { %v9061_v25 = vcombine.low %v3731_v0, %v3741_v27  ;;  %v3749_v35 = vor.u32 %v3748_v9, %v3745_v8  ;;  %10424 = vmatprep.subr.bf16.mxu1 %v11405_v62  ;;  %v9496_v49 = vpack.c.bf16 %v2982_v16, %v2982_v16  ;;  %v9494_v54 = vpack.c.bf16 %v2980_v24, %v2980_v24  ;;  %v3632_v37 = vld [vmem:[#allocation2 + $0x44] sm:$0x1]  ;;  %v3562_v56 = vld [vmem:[#allocation2 + $0xb0] sm:$0x1] }
 0x352   : > { %v3759_v33 = vor.u32 %v3758_v14, %v3754_v12  ;;  %v2983_v60 = vmax.f32 %v2951_v47, 0.0  ;;  %v3767_v61 = vshrl.u32 %v12432_v26, 16  ;;  %v2981_v22 = vmax.f32 %v2949_v10, 0.0  ;;  %v12458_v6 = vld [vmem:[%s14056_s3 + $0x80] sm:$0xff]  }
 0x353   : > { %10387 = vmatmul.mubr.bf16.gmra.mrb[4].mxu1 %v9061_v25  ;;  %v3750_v21 = vrot.slane %v3749_v35, 4  ;;  %v3770_v36 = vshll.u32 %v12432_v26, 16  ;;  %v3363_v1 = vshrl.u32 %v9496_v49, 16  ;;  %v3366_v52 = vshll.u32 %v9496_v49, 16  ;;  %v12465_v25 = vld [vmem:[#allocation2 + $0x48] sm:$0xf] }
 0x354   : > { %v3760_v41 = vrot.slane %v3759_v33, 4  ;;  %v3346_v20 = vshrl.u32 %v9494_v54, 16  ;;  %v3349_v15 = vshll.u32 %v9494_v54, 16  ;;  %10425 = vmatpush3.bf16.msra.mxu1 %v11405_v62  ;;  %v9497_v50 = vpack.c.bf16 %v2983_v60, %v2983_v60  ;;  %v12467_v35 = vld [vmem:[#allocation2 + $0x4c] sm:$0xf] }
 0x355   : > { %v3755_v19 = vsel %vm12221_vm2, %v3750_v21, %v3754_v12  ;;  %v9495_v51 = vpack.c.bf16 %v2981_v22, %v2981_v22  ;;  %10426 = vmatprep.subr.bf16.mxu1 %v11406_v40  ;;  %v3365_v11 = vrot.slane %v3363_v1, 7  ;;  %v3769_v34 = vrot.slane %v3767_v61, 4  ;;  %v3555_v12 = vld [vmem:[#allocation2 + $0xa4] sm:$0x1]  ;;  %v12469_v54 = vld [vmem:[#allocation2 + $0x50] sm:$0x1] }
 0x356   : > { %v3765_v28 = vsel %vm12221_vm2, %v3760_v41, %v3764_v23  ;;  %v3348_v31 = vrot.slane %v3346_v20, 7  ;;  %v3371_v53 = vshrl.u32 %v9497_v50, 16  ;;  %v3374_v39 = vshll.u32 %v9497_v50, 16 }
 0x357   : > { %v9062_v29 = vcombine.low %v3755_v19, %v3765_v28  ;;  %v3354_v0 = vshrl.u32 %v9495_v51, 16  ;;  %v3357_v43 = vshll.u32 %v9495_v51, 16  ;;  %v3368_v44 = vor.u32 %v3366_v52, %v3365_v11  ;;  %v11512_v28 = vld [vmem:[%s14055_s2] ss:$0 sm:$0xff] }
 0x358   : > { %v3369_v45 = vrot.slane %v3365_v11, 4  ;;  %v3351_v46 = vor.u32 %v3349_v15, %v3348_v31  ;;  %v3352_v5 = vrot.slane %v3348_v31, 4  ;;  %10427 = vmatpush3.bf16.msra.mxu1 %v11406_v40  ;;  %v3373_v57 = vrot.slane %v3371_v53, 7 }
 0x359   : > { %10390 = vmatprep.mubr.bf16.mxu1 %v9062_v29  ;;  %v3356_v62 = vrot.slane %v3354_v0, 7  ;;  %v3772_v63 = vrot.slane %v3770_v36, 5  ;;  %v3776_v8 = vshll.u32 %v12449_v59, 16  ;;  %10428 = vmatprep.subr.bf16.mxu1 %v11407_v3  ;;  %v3559_v7 = vsel %vm12247_vm8, %v3368_v44, %v3558_v38 }
 0x35a   : > { %v3552_v9 = vsel %vm12247_vm8, %v3351_v46, %v3551_v48  ;;  %v3780_v14 = vshrl.u32 %v12449_v59, 16  ;;  %v3786_v23 = vshll.u32 %v3632_v37, 16  ;;  %3560 = vst [vmem:[#allocation2 + $0xa8] sm:$0xf] %v3559_v7  ;;  %v3376_v27 = vor.u32 %v3374_v39, %v3373_v57 }
 0x35b   : > { %3553 = vst [vmem:[#allocation2 + $0x9c] sm:$0xf] %v3552_v9  ;;  %v3378_v16 = vrot.slane %v3373_v57, 4  ;;  %v3359_v24 = vor.u32 %v3357_v43, %v3356_v62  ;;  %v3361_v47 = vrot.slane %v3356_v62, 4  ;;  %v3773_v33 = vor.u32 %v3772_v63, %v3769_v34  ;;  %v12491_v34 = vld [vmem:[#allocation2 + $0x54] sm:$0xf] }
 0x35c   : > { %v3778_v10 = vrot.slane %v3776_v8, 5  ;;  %v3782_v40 = vrot.slane %v3780_v14, 4  ;;  %v3788_v49 = vrot.slane %v3786_v23, 5  ;;  %10429 = vmatpush3.bf16.msra.mxu1 %v11407_v3  ;;  %v3377_v60 = vsel %vm12254_vm9, %v3369_v45, %v3376_v27 }
 0x35d   : > { %v3563_v61 = vsel %vm12260_vm10, %v3378_v16, %v3562_v56  ;;  %v3360_v21 = vsel %vm12254_vm9, %v3352_v5, %v3359_v24  ;;  %v3556_v41 = vsel %vm12260_vm10, %v3361_v47, %v3555_v12  ;;  %10462 = vmatprep.subr.bf16.mxu1 %v12458_v6  ;;  %3561 = vst [vmem:[#allocation2 + $0xac] sm:$0xf] %v3377_v60  ;;  %v3774_v22 = vrot.slane %v3773_v33, 4  ;;  %v3572_v12 = vld [vmem:[#allocation2 + $0xc0] sm:$0xf] }
 0x35e   : > { %3564 = vst [vmem:[#allocation2 + $0xb0] sm:$0x1] %v3563_v61  ;;  %3554 = vst [vmem:[#allocation2 + $0xa0] sm:$0xf] %v3360_v21  ;;  %v3783_v36 = vor.u32 %v3782_v40, %v3778_v10  ;;  %v3791_v1 = vshrl.u32 %v12465_v25, 16  ;;  %v3794_v52 = vshll.u32 %v12465_v25, 16  ;;  %v2954_v38 = vadd.f32 %v11512_v28, %v12360_v17 }
 0x35f   : > { %3557 = vst [vmem:[#allocation2 + $0xa4] sm:$0x1] %v3556_v41  ;;  %v3800_v20 = vshll.u32 %v12467_v35, 16  ;;  %v3804_v15 = vshrl.u32 %v12467_v35, 16  ;;  %v3810_v19 = vshll.u32 %v12469_v54, 16  ;;  %v3779_v48 = vsel %vm12221_vm2, %v3774_v22, %v3778_v10 }
 0x360   : > { %v3784_v50 = vrot.slane %v3783_v36, 4  ;;  %v3793_v51 = vrot.slane %v3791_v1, 4  ;;  %v3796_v3 = vrot.slane %v3794_v52, 5  ;;  %v2986_v37 = vmax.f32 %v2954_v38, 0.0  ;;  %v12503_v24 = vld [vmem:[#allocation2 + $0x58] sm:$0xf] }
 0x361   : > { %v3802_v29 = vrot.slane %v3800_v20, 5  ;;  %v3806_v11 = vrot.slane %v3804_v15, 4  ;;  %v3812_v31 = vrot.slane %v3810_v19, 5  ;;  %v2952_v0 = vadd.f32 %v11512_v28, %v12364_v42  ;;  %v3565_v36 = vld [vmem:[#allocation2 + $0xb4] sm:$0xf] }
 0x362   : > { %v3789_v53 = vsel %vm12221_vm2, %v3784_v50, %v3788_v49  ;;  %v3797_v39 = vor.u32 %v3796_v3, %v3793_v51  ;;  %v2955_v17 = vadd.f32 %v11512_v28, %v12374_v2  ;;  %v9500_v45 = vpack.c.bf16 %v2986_v37, %v2986_v37  ;;  %v3576_v19 = vld [vmem:[#allocation2 + $0xc8] sm:$0x1] }
 0x363   : > { %v9063_v43 = vcombine.low %v3779_v48, %v3789_v53  ;;  %v3807_v44 = vor.u32 %v3806_v11, %v3802_v29  ;;  %v2953_v46 = vadd.f32 %v11512_v28, %v12379_v18  ;;  %v2984_v56 = vmax.f32 %v2952_v0, 0.0  ;;  %v3569_v11 = vld [vmem:[#allocation2 + $0xbc] sm:$0x1] }
 0x364   : > { %v3798_v5 = vrot.slane %v3797_v39, 4  ;;  %v2987_v57 = vmax.f32 %v2955_v17, 0.0  ;;  %v3815_v62 = vshrl.u32 %v12491_v34, 16  ;;  %v3397_v8 = vshrl.u32 %v9500_v45, 16  ;;  %v12512_v17 = vld [vmem:[#allocation2 + $0x60] sm:$0xf] }
 0x365   : > { %10391 = vmatmul.mubr.bf16.gmra.mrb[8].mxu1 %v9063_v43  ;;  %v3808_v63 = vrot.slane %v3807_v44, 4  ;;  %v3400_v7 = vshll.u32 %v9500_v45, 16  ;;  %v2985_v9 = vmax.f32 %v2953_v46, 0.0  ;;  %v9498_v2 = vpack.c.bf16 %v2984_v56, %v2984_v56  ;;  %v12514_v43 = vld [vmem:[#allocation2 + $0x64] sm:$0xf] }
 0x366   : > { %v3803_v42 = vsel %vm12221_vm2, %v3798_v5, %v3802_v29  ;;  %v9501_v14 = vpack.c.bf16 %v2987_v57, %v2987_v57  ;;  %v3817_v23 = vrot.slane %v3815_v62, 4  ;;  %v3399_v27 = vrot.slane %v3397_v8, 7  ;;  %v12522_v56 = vld [vmem:[#allocation2 + $0x68] sm:$0x1]  ;;  %v12529_v8 = vld [vmem:[#allocation2 + $0x6c] sm:$0xf] }
 0x367   : > { %v3813_v18 = vsel %vm12221_vm2, %v3808_v63, %v3812_v31  ;;  %v9499_v16 = vpack.c.bf16 %v2985_v9, %v2985_v9  ;;  %v3818_v47 = vshll.u32 %v12491_v34, 16  ;;  %v3380_v10 = vshrl.u32 %v9498_v2, 16  ;;  %v12510_v31 = vld [vmem:[#allocation2 + $0x5c] sm:$0x1] }
 0x368   : > { %v9064_v33 = vcombine.low %v3803_v42, %v3813_v18  ;;  %v3383_v40 = vshll.u32 %v9498_v2, 16  ;;  %v3405_v49 = vshrl.u32 %v9501_v14, 16  ;;  %v3402_v60 = vor.u32 %v3400_v7, %v3399_v27  ;;  %v12534_v2 = vld [vmem:[#allocation2 + $0x70] sm:$0xf] }
 0x369   : > { %v3403_v61 = vrot.slane %v3399_v27, 4  ;;  %v3408_v21 = vshll.u32 %v9501_v14, 16  ;;  %v3388_v41 = vshrl.u32 %v9499_v16, 16  ;;  %v3382_v22 = vrot.slane %v3380_v10, 7  ;;  %v12542_v10 = vld [vmem:[#allocation2 + $0x78] sm:$0xf] }
 0x36a   : > { %10394 = vmatprep.mubr.bf16.mxu1 %v9064_v33  ;;  %v3407_v1 = vrot.slane %v3405_v49, 7  ;;  %v3391_v52 = vshll.u32 %v9499_v16, 16  ;;  %v3820_v20 = vrot.slane %v3818_v47, 5  ;;  %v3573_v15 = vsel %vm12247_vm8, %v3402_v60, %v3572_v12  ;;  %v12540_v33 = vld [vmem:[#allocation2 + $0x74] sm:$0x1] }
 0x36b   : > { %v3390_v28 = vrot.slane %v3388_v41, 7  ;;  %v3824_v38 = vshll.u32 %v12503_v24, 16  ;;  %v3828_v48 = vshrl.u32 %v12503_v24, 16  ;;  %3574 = vst [vmem:[#allocation2 + $0xc0] sm:$0xf] %v3573_v15  ;;  %v3385_v50 = vor.u32 %v3383_v40, %v3382_v22 }
 0x36c   : > { %v3386_v51 = vrot.slane %v3382_v22, 4  ;;  %v3410_v3 = vor.u32 %v3408_v21, %v3407_v1  ;;  %v3412_v29 = vrot.slane %v3407_v1, 4  ;;  %v3821_v39 = vor.u32 %v3820_v20, %v3817_v23  ;;  %v12550_v1 = vld [vmem:[#allocation2 + $0x7c] sm:$0xf] }
 0x36d   : > { %v3393_v37 = vor.u32 %v3391_v52, %v3390_v28  ;;  %v3395_v53 = vrot.slane %v3390_v28, 4  ;;  %v3826_v0 = vrot.slane %v3824_v38, 5  ;;  %v3566_v44 = vsel %vm12247_vm8, %v3385_v50, %v3565_v36 }
 0x36e   : > { %v3411_v45 = vsel %vm12254_vm9, %v3403_v61, %v3410_v3  ;;  %v3577_v46 = vsel %vm12260_vm10, %v3412_v29, %v3576_v19  ;;  %v3830_v5 = vrot.slane %v3828_v48, 4  ;;  %3567 = vst [vmem:[#allocation2 + $0xb4] sm:$0xf] %v3566_v44  ;;  %v3822_v13 = vrot.slane %v3821_v39, 4  ;;  %v12553_v29 = vld [vmem:[#allocation2 + $0x80] sm:$0x1] }
 0x36f   : > { %3575 = vst [vmem:[#allocation2 + $0xc4] sm:$0xf] %v3411_v45  ;;  %3578 = vst [vmem:[#allocation2 + $0xc8] sm:$0x1] %v3577_v46  ;;  %v3394_v57 = vsel %vm12254_vm9, %v3386_v51, %v3393_v37  ;;  %v3570_v62 = vsel %vm12260_vm10, %v3395_v53, %v3569_v11  ;;  %v3834_v63 = vshll.u32 %v12510_v31, 16  ;;  %v3839_v9 = vshrl.u32 %v12512_v17, 16 }
 0x370   : > { %3568 = vst [vmem:[#allocation2 + $0xb8] sm:$0xf] %v3394_v57  ;;  %3571 = vst [vmem:[#allocation2 + $0xbc] sm:$0x1] %v3570_v62  ;;  %v3831_v7 = vor.u32 %v3830_v5, %v3826_v0  ;;  %v3842_v42 = vshll.u32 %v12512_v17, 16  ;;  %v3848_v12 = vshll.u32 %v12514_v43, 16  ;;  %v3827_v32 = vsel %vm12221_vm2, %v3822_v13, %v3826_v0 }
 0x371   : > { %v3836_v55 = vrot.slane %v3834_v63, 5  ;;  %v3852_v14 = vshrl.u32 %v12514_v43, 16  ;;  %v3858_v23 = vshll.u32 %v12522_v56, 16  ;;  %v3841_v27 = vrot.slane %v3839_v9, 4  ;;  %v12560_v45 = vld [vmem:[#allocation2 + $0x84] sm:$0xf] }
 0x372   : > { %v3832_v18 = vrot.slane %v3831_v7, 4  ;;  %v3844_v16 = vrot.slane %v3842_v42, 5  ;;  %v3850_v47 = vrot.slane %v3848_v12, 5  ;;  %v3863_v60 = vshrl.u32 %v12529_v8, 16  ;;  %v12562_v46 = vld [vmem:[#allocation2 + $0x88] sm:$0xf] }
 0x373   : > { %v3854_v40 = vrot.slane %v3852_v14, 4  ;;  %v3860_v49 = vrot.slane %v3858_v23, 5  ;;  %v3866_v61 = vshll.u32 %v12529_v8, 16  ;;  %v3872_v22 = vshll.u32 %v12534_v2, 16  ;;  %v12571_v23 = vld [vmem:[#allocation2 + $0x90] sm:$0xf] }
 0x374   : > { %v3837_v21 = vsel %vm12221_vm2, %v3832_v18, %v3836_v55  ;;  %v3845_v41 = vor.u32 %v3844_v16, %v3841_v27  ;;  %v3876_v36 = vshrl.u32 %v12534_v2, 16  ;;  %v3865_v15 = vrot.slane %v3863_v60, 4  ;;  %v12575_v16 = vld [vmem:[#allocation2 + $0x8c] sm:$0x1] }
 0x375   : > { %v9065_v52 = vcombine.low %v3827_v32, %v3837_v21  ;;  %v3855_v20 = vor.u32 %v3854_v40, %v3850_v47  ;;  %v3868_v19 = vrot.slane %v3866_v61, 5  ;;  %v3874_v38 = vrot.slane %v3872_v22, 5 }
 0x376   : > { %v3846_v28 = vrot.slane %v3845_v41, 4  ;;  %v3878_v48 = vrot.slane %v3876_v36, 4  ;;  %v3882_v50 = vshll.u32 %v12540_v33, 16  ;;  %v3887_v11 = vshrl.u32 %v12542_v10, 16  ;;  %v12579_v41 = vld [vmem:[#allocation2 + $0x94] sm:$0xf] }
 0x377   : > { %10395 = vmatmul.mubr.bf16.gmra.mrb[12].mxu1 %v9065_v52  ;;  %v3856_v51 = vrot.slane %v3855_v20, 4  ;;  %v3869_v3 = vor.u32 %v3868_v19, %v3865_v15  ;;  %v3890_v37 = vshll.u32 %v12542_v10, 16  ;;  %v3896_v44 = vshll.u32 %v12550_v1, 16 }
 0x378   : > { %v3851_v53 = vsel %vm12221_vm2, %v3846_v28, %v3850_v47  ;;  %v3879_v39 = vor.u32 %v3878_v48, %v3874_v38  ;;  %v3884_v0 = vrot.slane %v3882_v50, 5  ;;  %v3889_v62 = vrot.slane %v3887_v11, 4 }
 0x379   : > { %v3861_v5 = vsel %vm12221_vm2, %v3856_v51, %v3860_v49  ;;  %v3870_v57 = vrot.slane %v3869_v3, 4  ;;  %v3892_v13 = vrot.slane %v3890_v37, 5  ;;  %v3898_v9 = vrot.slane %v3896_v44, 5  ;;  %v12587_v3 = vld [vmem:[#allocation2 + $0x98] sm:$0x1] }
 0x37a   : > { %v9066_v63 = vcombine.low %v3851_v53, %v3861_v5  ;;  %v3880_v7 = vrot.slane %v3879_v39, 4  ;;  %v3900_v42 = vshrl.u32 %v12550_v1, 16  ;;  %v3906_v55 = vshll.u32 %v12553_v29, 16  ;;  %v12591_v44 = vld [vmem:[#allocation2 + $0x9c] sm:$0xf] }
 0x37b   : > { %v3875_v12 = vsel %vm12221_vm2, %v3870_v57, %v3874_v38  ;;  %v3893_v32 = vor.u32 %v3892_v13, %v3889_v62  ;;  %v3911_v14 = vshrl.u32 %v12560_v45, 16  ;;  %v3914_v47 = vshll.u32 %v12560_v45, 16 }
 0x37c   : > { %10398 = vmatprep.mubr.bf16.mxu1 %v9066_v63  ;;  %v3885_v18 = vsel %vm12221_vm2, %v3880_v7, %v3884_v0  ;;  %v3902_v27 = vrot.slane %v3900_v42, 4  ;;  %v3920_v40 = vshll.u32 %v12562_v46, 16  ;;  %v3908_v61 = vrot.slane %v3906_v55, 5  ;;  %v12595_v63 = vld [vmem:[#allocation2 + $0xa0] sm:$0xf] }
 0x37d   : > { %v9067_v49 = vcombine.low %v3875_v12, %v3885_v18  ;;  %v3894_v60 = vrot.slane %v3893_v32, 4  ;;  %v3913_v21 = vrot.slane %v3911_v14, 4  ;;  %v3916_v36 = vrot.slane %v3914_v47, 5  ;;  %v12598_v32 = vld [vmem:[#allocation2 + $0xa8] sm:$0xf] }
 0x37e   : > { %v3903_v22 = vor.u32 %v3902_v27, %v3898_v9  ;;  %v3922_v52 = vrot.slane %v3920_v40, 5  ;;  %v3924_v20 = vshrl.u32 %v12562_v46, 16  ;;  %v3930_v19 = vshll.u32 %v12575_v16, 16 }
 0x37f   : > { %10399 = vmatmul.mubr.bf16.gmra.mrb[16].mxu1 %v9067_v49  ;;  %v3899_v15 = vsel %vm12221_vm2, %v3894_v60, %v3898_v9  ;;  %v3935_v28 = vshrl.u32 %v12571_v23, 16  ;;  %v3938_v38 = vshll.u32 %v12571_v23, 16  ;;  %v3917_v50 = vor.u32 %v3916_v36, %v3913_v21  ;;  %v12604_v60 = vld [vmem:[#allocation2 + $0xa4] sm:$0x1] }
 0x380   : > { %v3904_v48 = vrot.slane %v3903_v22, 4  ;;  %v3926_v51 = vrot.slane %v3924_v20, 4  ;;  %v3944_v11 = vshll.u32 %v12579_v41, 16  ;;  %v3932_v37 = vrot.slane %v3930_v19, 5  ;;  %v12610_v20 = vld [vmem:[#allocation2 + $0xac] sm:$0xf] }
 0x381   : > { %v3937_v53 = vrot.slane %v3935_v28, 4  ;;  %v3940_v39 = vrot.slane %v3938_v38, 5  ;;  %v3948_v0 = vshrl.u32 %v12579_v41, 16  ;;  %v3918_v57 = vrot.slane %v3917_v50, 4  ;;  %v12616_v50 = vld [vmem:[#allocation2 + $0xb4] sm:$0xf] }
 0x382   : > { %v3909_v5 = vsel %vm12221_vm2, %v3904_v48, %v3908_v61  ;;  %v3927_v62 = vor.u32 %v3926_v51, %v3922_v52  ;;  %v3946_v13 = vrot.slane %v3944_v11, 5  ;;  %v3954_v12 = vshll.u32 %v12587_v3, 16  ;;  %v12614_v48 = vld [vmem:[#allocation2 + $0xb0] sm:$0x1] }
 0x383   : > { %v9068_v7 = vcombine.low %v3899_v15, %v3909_v5  ;;  %v3941_v9 = vor.u32 %v3940_v39, %v3937_v53  ;;  %v3950_v42 = vrot.slane %v3948_v0, 4  ;;  %v3923_v55 = vsel %vm12221_vm2, %v3918_v57, %v3922_v52  ;;  %v12620_v39 = vld [vmem:[#allocation2 + $0xb8] sm:$0xf] }
 0x384   : > { %v3928_v14 = vrot.slane %v3927_v62, 4  ;;  %v3959_v18 = vshrl.u32 %v12591_v44, 16  ;;  %v3962_v27 = vshll.u32 %v12591_v44, 16  ;;  %v3956_v49 = vrot.slane %v3954_v12, 5 }
 0x385   : > { %10402 = vmatprep.mubr.bf16.mxu1 %v9068_v7  ;;  %v3942_v47 = vrot.slane %v3941_v9, 4  ;;  %v3951_v40 = vor.u32 %v3950_v42, %v3946_v13  ;;  %v3968_v61 = vshll.u32 %v12595_v63, 16  ;;  %v3972_v52 = vshrl.u32 %v12595_v63, 16 }
 0x386   : > { %v3933_v21 = vsel %vm12221_vm2, %v3928_v14, %v3932_v37  ;;  %v3961_v22 = vrot.slane %v3959_v18, 4  ;;  %v3964_v36 = vrot.slane %v3962_v27, 5  ;;  %v3978_v37 = vshll.u32 %v12604_v60, 16 }
 0x387   : > { %v9069_v15 = vcombine.low %v3923_v55, %v3933_v21  ;;  %v3947_v19 = vsel %vm12221_vm2, %v3942_v47, %v3946_v13  ;;  %v3952_v28 = vrot.slane %v3951_v40, 4  ;;  %v3970_v38 = vrot.slane %v3968_v61, 5 }
 0x388   : > { %v3965_v51 = vor.u32 %v3964_v36, %v3961_v22  ;;  %v3974_v11 = vrot.slane %v3972_v52, 4  ;;  %v3983_v53 = vshrl.u32 %v12598_v32, 16  ;;  %v3986_v5 = vshll.u32 %v12598_v32, 16  ;;  %v12631_v22 = vld [vmem:[#allocation2 + $0xbc] sm:$0x1] }
 0x389   : > { %10403 = vmatmul.mubr.bf16.gmra.mrb[20].mxu1 %v9069_v15  ;;  %v3957_v0 = vsel %vm12221_vm2, %v3952_v28, %v3956_v49  ;;  %v3992_v57 = vshll.u32 %v12610_v20, 16  ;;  %v3996_v62 = vshrl.u32 %v12610_v20, 16  ;;  %v3980_v42 = vrot.slane %v3978_v37, 5 }
 0x38a   : > { %v9070_v13 = vcombine.low %v3947_v19, %v3957_v0  ;;  %v3966_v7 = vrot.slane %v3965_v51, 4  ;;  %v3975_v9 = vor.u32 %v3974_v11, %v3970_v38  ;;  %v3985_v12 = vrot.slane %v3983_v53, 4 }
 0x38b   : > { %v3988_v55 = vrot.slane %v3986_v5, 5  ;;  %v3994_v14 = vrot.slane %v3992_v57, 5  ;;  %v3998_v18 = vrot.slane %v3996_v62, 4  ;;  %v4002_v40 = vshll.u32 %v12614_v48, 16 }
 0x38c   : > { %10406 = vmatprep.mubr.bf16.mxu1 %v9070_v13  ;;  %v3971_v27 = vsel %vm12221_vm2, %v3966_v7, %v3970_v38  ;;  %v3976_v47 = vrot.slane %v3975_v9, 4  ;;  %v4007_v49 = vshrl.u32 %v12616_v50, 16  ;;  %v4010_v36 = vshll.u32 %v12616_v50, 16 }
 0x38d   : > { %v3989_v61 = vor.u32 %v3988_v55, %v3985_v12  ;;  %v3999_v21 = vor.u32 %v3998_v18, %v3994_v14  ;;  %v4016_v52 = vshll.u32 %v12620_v39, 16  ;;  %v4004_v19 = vrot.slane %v4002_v40, 5  ;;  %v11513_v55 = vld [vmem:[#allocation2] sm:$0xf]  ;;  %v12643_v18 = vld [vmem:[#allocation2 + $0x4] sm:$0xf] }
 0x38e   : > { %v3981_v15 = vsel %vm12221_vm2, %v3976_v47, %v3980_v42  ;;  %v4009_v28 = vrot.slane %v4007_v49, 4  ;;  %v4020_v38 = vshrl.u32 %v12620_v39, 16  ;;  %v4012_v53 = vrot.slane %v4010_v36, 5 }
 0x38f   : > { %v9071_v51 = vcombine.low %v3971_v27, %v3981_v15  ;;  %v3990_v11 = vrot.slane %v3989_v61, 4  ;;  %v4000_v37 = vrot.slane %v3999_v21, 4  ;;  %v4018_v0 = vrot.slane %v4016_v52, 5 }
 0x390   : > { %v4022_v5 = vrot.slane %v4020_v38, 4  ;;  %v4026_v57 = vshll.u32 %v12631_v22, 16  ;;  %v4013_v7 = vor.u32 %v4012_v53, %v4009_v28  ;;  %v9082_v27 = vcombine.low %v11513_v55, %v12643_v18  ;;  %v12668_v53 = vld [vmem:[#allocation2 + $0x10] sm:$0xf]  ;;  %v4635_v38 = vld [vmem:[#allocation2 + $0x78] sm:$0xe] }
 0x391   : > { %10407 = vmatmul.mubr.bf16.gmra.mrb[24].mxu1 %v9071_v51  ;;  %v3995_v62 = vsel %vm12221_vm2, %v3990_v11, %v3994_v14  ;;  %v4005_v13 = vsel %vm12221_vm2, %v4000_v37, %v4004_v19  ;;  %v9089_v49 = vcombine.low %v12491_v34, %v12503_v24  ;;  %v9090_v14 = vcombine.low %v12512_v17, %v12514_v43  ;;  %v11515_v37 = vld [vmem:[#allocation2 + $0xc] sm:$0xf]  ;;  %v4637_v28 = vld [vmem:[#allocation2 + $0x90] sm:$0xe]  ;;  %v4625_v17 = vld [vmem:[#allocation2] sm:$0xe] }
 0x392   : > { %v9072_v9 = vcombine.low %v3995_v62, %v4005_v13  ;;  %v4023_v42 = vor.u32 %v4022_v5, %v4018_v0  ;;  %v4014_v12 = vrot.slane %v4013_v7, 4  ;;  %v4028_v40 = vrot.slane %v4026_v57, 5  ;;  %v11413_v5 = vld [vmem:[%s14056_s3 + $0x88] sm:$0xff]   ;;  %v11517_v57 = vld [vmem:[#allocation2 + $0x18] sm:$0xf] }
 0x393   : > { %v9091_v21 = vcombine.low %v12529_v8, %v12534_v2  ;;  %v9092_v36 = vcombine.low %v12542_v10, %v12550_v1  ;;  %v9093_v52 = vcombine.low %v12560_v45, %v12562_v46  ;;  %v12674_v62 = vld [vmem:[#allocation2 + $0x1c] sm:$0xf]  ;;  %v4632_v7 = vld [vmem:[#allocation2 + $0x54] sm:$0xe]  ;;  %v4737_v11 = vrot.slane %v12522_v56, 5 }
 0x394   : > { %10410 = vmatprep.mubr.bf16.mxu1 %v9072_v9  ;;  %v4024_v47 = vrot.slane %v4023_v42, 4  ;;  %v4019_v61 = vsel %vm12221_vm2, %v4014_v12, %v4018_v0  ;;  %v9083_v0 = vcombine.low %v11515_v37, %v12668_v53  ;;  %v9084_v13 = vcombine.low %v11517_v57, %v12674_v62  ;;  %v4633_v9 = vld [vmem:[#allocation2 + $0x60] sm:$0xe]  ;;  %v11416_v12 = vld [vmem:[%s14056_s3 + $0x90] sm:$0xff]  }
 0x395   : > { %v4727_v42 = vrot.slane %v12503_v24, 5  ;;  %v9113_v55 = vrot.slane %v4632_v7, 9  ;;  %v4730_v37 = vrot.slane %v12510_v31, 5  ;;  %v9086_v57 = vcombine.low %v12403_v58, %v12409_v4  ;;  %v4636_v4 = vld [vmem:[#allocation2 + $0x84] sm:$0xe] }
 0x396   : > { %v4029_v15 = vsel %vm12221_vm2, %v4024_v47, %v4028_v40  ;;  %v4634_v47 = vld [vmem:[#allocation2 + $0x6c] sm:$0xe]  ;;  %v11519_v40 = vld [vmem:[#allocation2 + $0x24] sm:$0xf]  ;;  %v4741_v58 = vrot.slane %v12534_v2, 5  ;;  %v14127_v34 = vcombine.low %v12571_v23, %v12579_v41  ;;  %v4678_v24 = vrot.slane %v12643_v18, 5 }
 0x397   : > { %v9073_v51 = vcombine.low %v4019_v61, %v4029_v15  ;;  %v12683_v61 = vld [vmem:[#allocation2 + $0x28] sm:$0xf]  ;;  %v14128_v2 = vcombine.low %v12591_v44, %v12595_v63  ;;  %v14129_v10 = vcombine.low %v12598_v32, %v12610_v20  ;;  %v4692_v23 = vrot.slane %v12674_v62, 5  ;;  %v11522_v32 = vld [vmem:[#allocation2 + $0x14] sm:$0x1] }
 0x398   : > { %v9085_v15 = vcombine.low %v11519_v40, %v12683_v61  ;;  %v4680_v8 = vrot.slane %v4678_v24, 4  ;;  %v14130_v44 = vcombine.low %v12616_v50, %v12620_v39  ;;  %v4699_v62 = vrot.slane %v12683_v61, 5  ;;  %v11524_v50 = vld [vmem:[#allocation2 + $0x34] sm:$0xf]  ;;  %v4628_v61 = vld [vmem:[#allocation2 + $0x24] sm:$0xe] }
 0x399   : > { %10411 = vmatmul.mubr.bf16.gmra.mrb[28].mxu1 %v9073_v51 }
 0x39a   : > { %10430 = vmatprep.mubr.bf16.mxu1 %v9082_v27  ;;  %v4734_v27 = vrot.slane %v12514_v43, 5  ;;  %v11521_v43 = vld [vmem:[#allocation2 + $0x8] sm:$0x1] }
 0x39c   : > { %v4736_v7 = vrot.slane %v4734_v27, 4 }
 0x3a1   : > { %10431 = vmatmul.mubr.bf16.vlgmr.msra.gmra.mrb[0].mxu1 %v9083_v0  ;;  %v9114_v0 = vrot.slane %v4633_v9, 9  ;;  %v9115_v9 = vrot.slane %v4634_v47, 9  ;;  %v4639_v47 = vld [vmem:[#allocation2 + $0xa8] sm:$0xe] }
 0x3a2   : > { %10434 = vmatprep.mubr.bf16.mxu1 %v9084_v13  ;;  %10463 = vmatpush3.bf16.msra.mxu1 %v12458_v6  ;;  %v4729_v6 = vrot.slane %v4727_v42, 4  ;;  %v12695_v13 = vsel %vm12686_vm13, %v9113_v55, %v4727_v42  ;;  %v11419_v42 = vld [vmem:[%s14056_s3 + $0x98] sm:$0xff]   ;;  %v4744_v55 = vrot.slane %v12540_v33, 5 }
 0x3a3   : > { %10464 = vmatprep.subr.bf16.mxu1 %v11413_v5  ;;  %v12704_v31 = vsel %vm12686_vm13, %v9114_v0, %v4734_v27  ;;  %v4748_v27 = vrot.slane %v12550_v1, 5  ;;  %v4751_v0 = vrot.slane %v12553_v29, 5  ;;  %v12723_v56 = vsel %vm12686_vm13, %v9115_v9, %v4741_v58  ;;  %v11422_v9 = vld [vmem:[%s14056_s3 + $0xa0] sm:$0xff]  }
 0x3a4   : > { %v12700_v40 = vsel %vm12686_vm13, %v4729_v6, %v4730_v37  ;;  %v4743_v6 = vrot.slane %v4741_v58, 4  ;;  %v9116_v37 = vrot.slane %v4635_v38, 9  ;;  %v4758_v29 = vrot.slane %v12575_v16, 5 }
 0x3a5   : > { %v4750_v19 = vrot.slane %v4748_v27, 4  ;;  %v9087_v16 = vcombine.low %v12432_v26, %v12449_v59  ;;  %v4769_v26 = vrot.slane %v12595_v63, 5  ;;  %v4783_v59 = vrot.slane %v12620_v39, 5  ;;  %v4626_v63 = vld [vmem:[#allocation2 + $0xc] sm:$0xe] }
 0x3a6   : > { %10465 = vmatpush3.bf16.msra.mxu1 %v11413_v5  ;;  %v12714_v5 = vsel %vm12686_vm13, %v4736_v7, %v4737_v11  ;;  %v9117_v11 = vrot.slane %v4636_v4, 9  ;;  %v4755_v7 = vrot.slane %v12562_v46, 5  ;;  %v12728_v33 = vsel %vm12686_vm13, %v4743_v6, %v4744_v55  ;;  %v4638_v55 = vld [vmem:[#allocation2 + $0x9c] sm:$0xe] }
 0x3a7   : > { %10466 = vmatprep.subr.bf16.mxu1 %v11416_v12  ;;  %v12732_v38 = vsel %vm12686_vm13, %v9116_v37, %v4748_v27  ;;  %v9118_v4 = vrot.slane %v4637_v28, 9  ;;  %v4765_v37 = vrot.slane %v12587_v3, 5  ;;  %v4685_v46 = vrot.slane %v12668_v53, 5 }
 0x3a8   : > { %v4757_v58 = vrot.slane %v4755_v7, 4  ;;  %v4706_v39 = vrot.slane %v11524_v50, 5 }
 0x3a9   : > { %10435 = vmatmul.mubr.bf16.gmra.mrb[4].mxu1 %v9085_v15  ;;  %v4762_v15 = vrot.slane %v12579_v41, 5  ;;  %v4687_v18 = vrot.slane %v4685_v46, 4 }
 0x3aa   : > { %10438 = vmatprep.mubr.bf16.mxu1 %v9086_v57  ;;  %10467 = vmatpush3.bf16.msra.mxu1 %v11416_v12  ;;  %v12743_v57 = vsel %vm12686_vm13, %v4750_v19, %v4751_v0  ;;  %v12752_v12 = vsel %vm12686_vm13, %v9117_v11, %v4755_v7  ;;  %v12756_v19 = vsel %vm12686_vm13, %v4757_v58, %v4758_v29  ;;  %v9119_v0 = vrot.slane %v4638_v55, 9  ;;  %v4640_v7 = vld [vmem:[#allocation2 + $0xb4] sm:$0xe]  ;;  %v11425_v29 = vld [vmem:[%s14056_s3 + $0xa8] sm:$0xff]  }
 0x3ab   : > { %10468 = vmatprep.subr.bf16.mxu1 %v11419_v42  ;;  %v4764_v6 = vrot.slane %v4762_v15, 4  ;;  %v12760_v28 = vsel %vm12686_vm13, %v9118_v4, %v4762_v15  ;;  %v4776_v11 = vrot.slane %v12610_v20, 5  ;;  %v4772_v58 = vrot.slane %v12604_v60, 5 }
 0x3ac   : > { %v9120_v4 = vrot.slane %v4639_v47, 9  ;;  %v4779_v55 = vrot.slane %v12614_v48, 5  ;;  %v12782_v27 = vsel %vm12686_vm13, %v9119_v0, %v4769_v26  ;;  %v9121_v47 = vrot.slane %v4640_v7, 9  ;;  %v11428_v0 = vld [vmem:[%s14056_s3 + $0xb0] sm:$0xff]  }
 0x3ad   : > { %v12767_v3 = vsel %vm12686_vm13, %v4764_v6, %v4765_v37  ;;  %v9088_v6 = vcombine.low %v12465_v25, %v12467_v35  ;;  %v4778_v37 = vrot.slane %v4776_v11, 4  ;;  %v4688_v20 = vrot.slane %v11522_v32, 5  ;;  %v4630_v32 = vld [vmem:[#allocation2 + $0x3c] sm:$0xe] }
 0x3ae   : > { %10469 = vmatpush3.bf16.msra.mxu1 %v11419_v42  ;;  %v4771_v42 = vrot.slane %v4769_v26, 4  ;;  %v12790_v60 = vsel %vm12686_vm13, %v9120_v4, %v4776_v11  ;;  %v4786_v26 = vrot.slane %v12631_v22, 5  ;;  %v11431_v22 = vld [vmem:[%s14056_s3 + $0xb8] sm:$0xff]   ;;  %v14144_v11 = vcombine.low %v12752_v12, %v12756_v19  ;;  %v6264_v12 = vld [vmem:[#allocation2 + $0xb4] sm:$0xe] }
 0x3af   : > { %10470 = vmatprep.subr.bf16.mxu1 %v11422_v9  ;;  %v12796_v48 = vsel %vm12686_vm13, %v4778_v37, %v4779_v55  ;;  %v4689_v53 = vsel %vm12686_vm13, %v4687_v18, %v4688_v20 }
 0x3b0   : > { %v12786_v15 = vsel %vm12686_vm13, %v4771_v42, %v4772_v58  ;;  %v9107_v58 = vrot.slane %v4626_v63, 9 }
 0x3b1   : > { %10439 = vmatmul.mubr.bf16.gmra.mrb[8].mxu1 %v9087_v16  ;;  %v4785_v16 = vrot.slane %v4783_v59, 4 }
 0x3b2   : > { %10442 = vmatprep.mubr.bf16.mxu1 %v9088_v6  ;;  %10471 = vmatpush3.bf16.msra.mxu1 %v11422_v9  ;;  %v12806_v9 = vsel %vm12686_vm13, %v9121_v47, %v4783_v59  ;;  %v11432_v59 = vld [vmem:[%s14056_s3 + $0xc0] sm:$0xff]   ;;  %v4686_v37 = vsel %vm12686_vm13, %v9107_v58, %v4685_v46  ;;  %v4720_v46 = vrot.slane %v12467_v35, 5 }
 0x3b3   : > { %10472 = vmatprep.subr.bf16.mxu1 %v11425_v29  ;;  %v12810_v7 = vsel %vm12686_vm13, %v4785_v16, %v4786_v26  ;;  %v9139_v55 = vcombine.low %v4686_v37, %v4689_v53  ;;  %v11433_v16 = vld [vmem:[%s14056_s3 + $0xc8] sm:$0xff]   ;;  %v11528_v35 = vld [vmem:[#allocation2 + $0x44] sm:$0x1]  ;;  %v9111_v53 = vrot.slane %v4630_v32, 9 }
 0x3b4   : > { %v4722_v20 = vrot.slane %v4720_v46, 4  ;;  %v11436_v58 = vld [vmem:[%s14056_s3 + $0xe0] sm:$0xff]   ;;  %v11437_v37 = vld [vmem:[%s14056_s3 + $0xe8] sm:$0xff]  }
 0x3b6   : > { %10473 = vmatpush3.bf16.msra.mxu1 %v11425_v29 }
 0x3b7   : > { %10474 = vmatprep.subr.bf16.mxu1 %v11428_v0 }
 0x3b9   : > { %10443 = vmatmul.mubr.bf16.gmra.mrb[12].mxu1 %v9089_v49  ;;  %v4681_v49 = vrot.slane %v11521_v43, 5  ;;  %v11526_v43 = vld [vmem:[#allocation2 + $0x38] sm:$0x1] }
 0x3ba   : > { %10446 = vmatprep.mubr.bf16.mxu1 %v9090_v14  ;;  %10475 = vmatpush3.bf16.msra.mxu1 %v11428_v0  ;;  %v9106_v14 = vrot.slane %v4625_v17, 9  ;;  %v4701_v0 = vrot.slane %v4699_v62, 4  ;;  %v4629_v17 = vld [vmem:[#allocation2 + $0x30] sm:$0xe] }
 0x3bb   : > { %10476 = vmatprep.subr.bf16.mxu1 %v11431_v22  ;;  %v4682_v45 = vsel %vm12686_vm13, %v4680_v8, %v4681_v49  ;;  %v4709_v49 = vrot.slane %v11526_v43, 5  ;;  %v9109_v8 = vrot.slane %v4628_v61, 9  ;;  %v12906_v61 = vld [vmem:[#allocation2 + $0x34] sm:$0xf]  ;;  %v14131_v43 = vcombine.low %v12695_v13, %v12700_v40  ;;  %v12927_v13 = vld [vmem:[%s14056_s3 + $0x100] sm:$0xff]  }
 0x3bc   : > { %v4679_v1 = vsel %vm12686_vm13, %v9106_v14, %v4678_v24  ;;  %v11434_v14 = vld [vmem:[%s14056_s3 + $0xd0] sm:$0xff]  }
 0x3bd   : > { %v9138_v41 = vcombine.low %v4679_v1, %v4682_v45  ;;  %v9110_v45 = vrot.slane %v4629_v17, 9  ;;  %v12929_v40 = vld [vmem:[#allocation2 + $0x50] sm:$0x1] }
 0x3be   : > { %10477 = vmatpush3.bf16.msra.mxu1 %v11431_v22  ;;  %v4708_v22 = vrot.slane %v4706_v39, 4 }
 0x3bf   : > { %10510 = vmatprep.subr.bf16.mxu1 %v11432_v59  ;;  %v4707_v18 = vsel %vm12686_vm13, %v9110_v45, %v4706_v39 }
 0x3c1   : > { %10447 = vmatmul.mubr.bf16.gmra.mrb[16].mxu1 %v9091_v21  ;;  %v4694_v21 = vrot.slane %v4692_v23, 4 }
 0x3c2   : > { %10450 = vmatprep.mubr.bf16.mxu1 %v9092_v36  ;;  %v4627_v36 = vld [vmem:[#allocation2 + $0x18] sm:$0xe] }
 0x3c3   : > { %v9108_v4 = vrot.slane %v4627_v36, 9  ;;  %v4716_v36 = vrot.slane %v11528_v35, 5 }
 0x3c5   : > { %v4693_v47 = vsel %vm12686_vm13, %v9108_v4, %v4692_v23  ;;  %v4700_v23 = vsel %vm12686_vm13, %v9109_v8, %v4699_v62  ;;  %v6253_v8 = vld [vmem:[#allocation2 + $0x30] sm:$0xe] }
 0x3c9   : > { %10451 = vmatmul.mubr.bf16.gmra.mrb[20].mxu1 %v9093_v52  ;;  %v11523_v52 = vld [vmem:[#allocation2 + $0x20] sm:$0x1] }
 0x3ca   : > { %10454 = vmatprep.mubr.bf16.mxu1 %v14127_v34  ;;  %v4695_v29 = vrot.slane %v11523_v52, 5  ;;  %v11525_v34 = vld [vmem:[#allocation2 + $0x2c] sm:$0x1]  ;;  %v4631_v52 = vld [vmem:[#allocation2 + $0x48] sm:$0xe] }
 0x3cb   : > { %v4702_v24 = vrot.slane %v11525_v34, 5  ;;  %v9112_v4 = vrot.slane %v4631_v52, 9  ;;  %v12908_v34 = vld [vmem:[#allocation2 + $0x38] sm:$0x1]  ;;  %v12948_v52 = vld [vmem:[#allocation2 + $0x64] sm:$0xf] }
 0x3cc   : > { %v4696_v6 = vsel %vm12686_vm13, %v4694_v21, %v4695_v29  ;;  %v4723_v29 = vrot.slane %v12469_v54, 5 }
 0x3cd   : > { %v9140_v26 = vcombine.low %v4693_v47, %v4696_v6  ;;  %v4721_v54 = vsel %vm12686_vm13, %v9112_v4, %v4720_v46  ;;  %v11438_v47 = vld [vmem:[%s14056_s3 + $0xf0] sm:$0xff]   ;;  %v6337_v46 = vrot.slane %v12906_v61, 5 }
 0x3ce   : > { %v4724_v6 = vsel %vm12686_vm13, %v4722_v20, %v4723_v29 }
 0x3cf   : > { %v6339_v32 = vrot.slane %v6337_v46, 4 }
 0x3d1   : > { %10455 = vmatmul.mubr.bf16.gmra.mrb[24].mxu1 %v14128_v2  ;;  %v4703_v2 = vsel %vm12686_vm13, %v4701_v0, %v4702_v24  ;;  %v11439_v0 = vld [vmem:[%s14056_s3 + $0xf8] sm:$0xff]   ;;  %v12910_v24 = vld [vmem:[#allocation2 + $0x40] sm:$0xf] }
 0x3d2   : > { %10458 = vmatprep.mubr.bf16.mxu1 %v14129_v10  ;;  %v11527_v10 = vld [vmem:[#allocation2 + $0x40] sm:$0xf]  ;;  %v6344_v35 = vrot.slane %v12910_v24, 5 }
 0x3d3   : > { %v4713_v1 = vrot.slane %v11527_v10, 5 }
 0x3d5   : > { %v4715_v21 = vrot.slane %v4713_v1, 4  ;;  %v4714_v50 = vsel %vm12686_vm13, %v9111_v53, %v4713_v1 }
 0x3d7   : > { %v4717_v62 = vsel %vm12686_vm13, %v4715_v21, %v4716_v36  ;;  %v6256_v36 = vld [vmem:[#allocation2 + $0x54] sm:$0xe] }
 0x3d8   : > { %v9143_v39 = vcombine.low %v4714_v50, %v4717_v62  ;;  %v6346_v50 = vrot.slane %v6344_v35, 4 }
 0x3d9   : > { %10459 = vmatmul.mubr.bf16.gmra.mrb[28].mxu1 %v14130_v44  ;;  %v11435_v44 = vld [vmem:[%s14056_s3 + $0xd8] sm:$0xff]  }
 0x3da   : > { %10478 = vmatprep.mubr.bf16.mxu1 %v9138_v41  ;;  %v9141_v41 = vcombine.low %v4700_v23, %v4703_v2  ;;  %v14132_v2 = vcombine.low %v12704_v31, %v12714_v5  ;;  %v6255_v23 = vld [vmem:[#allocation2 + $0x48] sm:$0xe]  ;;  %v12934_v31 = vld [vmem:[#allocation2 + $0x5c] sm:$0x1] }
 0x3db   : > { %v9247_v53 = vrot.slane %v6255_v23, 9 }
 0x3e1   : > { %10479 = vmatmul.mubr.bf16.vlgmr.msra.gmra.mrb[0].mxu1 %v9139_v55  ;;  %v9144_v55 = vcombine.low %v4721_v54, %v4724_v6  ;;  %v6257_v54 = vld [vmem:[#allocation2 + $0x60] sm:$0xe] }
 0x3e2   : > { %10482 = vmatprep.mubr.bf16.mxu1 %v9140_v26  ;;  %10511 = vmatpush3.bf16.msra.mxu1 %v11432_v59  ;;  %v4710_v59 = vsel %vm12686_vm13, %v4708_v22, %v4709_v49  ;;  %v12901_v26 = vld [vmem:[#allocation2 + $0x2c] sm:$0x1]  ;;  %v6252_v22 = vld [vmem:[#allocation2 + $0x24] sm:$0xe]  ;;  %v12916_v49 = vld [vmem:[#allocation2 + $0x44] sm:$0x1] }
 0x3e3   : > { %10512 = vmatprep.subr.bf16.mxu1 %v11433_v16  ;;  %v9142_v63 = vcombine.low %v4707_v18, %v4710_v59  ;;  %v9244_v10 = vrot.slane %v6252_v22, 9  ;;  %v6333_v45 = vrot.slane %v12901_v26, 5  ;;  %v6254_v59 = vld [vmem:[#allocation2 + $0x3c] sm:$0xe] }
 0x3e4   : > { %v9246_v20 = vrot.slane %v6254_v59, 9  ;;  %v14135_v59 = vcombine.low %v12732_v38, %v12743_v57 }
 0x3e6   : > { %10513 = vmatpush3.bf16.msra.mxu1 %v11433_v16  ;;  %v12899_v16 = vld [vmem:[#allocation2 + $0x28] sm:$0xf]  ;;  %v12963_v6 = vsel %vm12686_vm13, %v9246_v20, %v6344_v35  ;;  %v12999_v20 = vld [vmem:[#allocation2 + $0x80] sm:$0x1] }
 0x3e7   : > { %10514 = vmatprep.subr.bf16.mxu1 %v11434_v14  ;;  %v6330_v17 = vrot.slane %v12899_v16, 5 }
 0x3e9   : > { %10483 = vmatmul.mubr.bf16.gmra.mrb[4].mxu1 %v9141_v41  ;;  %v6332_v1 = vrot.slane %v6330_v17, 4  ;;  %v12932_v41 = vld [vmem:[#allocation2 + $0x58] sm:$0xf]  ;;  %v12938_v5 = vsel %vm12686_vm13, %v9244_v10, %v6330_v17  ;;  %v14133_v17 = vcombine.low %v12723_v56, %v12728_v33  ;;  %v6361_v10 = vrot.slane %v12934_v31, 5  ;;  %v12989_v56 = vld [vmem:[#allocation2 + $0x7c] sm:$0xf] }
 0x3ea   : > { %10486 = vmatprep.mubr.bf16.mxu1 %v9142_v63  ;;  %10515 = vmatpush3.bf16.msra.mxu1 %v11434_v14  ;;  %v12918_v14 = vld [vmem:[#allocation2 + $0x4c] sm:$0xf]  ;;  %v6340_v63 = vrot.slane %v12908_v34, 5  ;;  %v6358_v22 = vrot.slane %v12932_v41, 5  ;;  %v13035_v33 = vld [vmem:[#allocation2 + $0xa0] sm:$0xf] }
 0x3eb   : > { %10516 = vmatprep.subr.bf16.mxu1 %v11435_v44  ;;  %v12942_v18 = vsel %vm12686_vm13, %v6332_v1, %v6333_v45  ;;  %v6351_v62 = vrot.slane %v12918_v14, 5  ;;  %v6365_v1 = vrot.slane %v12948_v52, 5  ;;  %v6258_v45 = vld [vmem:[#allocation2 + $0x6c] sm:$0xe] }
 0x3ec   : > { %v12959_v4 = vsel %vm12686_vm13, %v6339_v32, %v6340_v63  ;;  %v6360_v23 = vrot.slane %v6358_v22, 4  ;;  %v6259_v63 = vld [vmem:[#allocation2 + $0x78] sm:$0xe]  ;;  %v12997_v32 = vld [vmem:[#allocation2 + $0x74] sm:$0x1] }
 0x3ed   : > { %v6367_v35 = vrot.slane %v6365_v1, 4  ;;  %v6375_v38 = vrot.slane %v12997_v32, 5 }
 0x3ee   : > { %10517 = vmatpush3.bf16.msra.mxu1 %v11435_v44  ;;  %v9245_v44 = vrot.slane %v6253_v8, 9 }
 0x3ef   : > { %10518 = vmatprep.subr.bf16.mxu1 %v11436_v58 }
 0x3f0   : > { %v12952_v29 = vsel %vm12686_vm13, %v9245_v44, %v6337_v46  ;;  %v9249_v44 = vrot.slane %v6257_v54, 9 }
 0x3f1   : > { %10487 = vmatmul.mubr.bf16.gmra.mrb[8].mxu1 %v9143_v39  ;;  %v6354_v39 = vrot.slane %v12929_v40, 5 }
 0x3f2   : > { %10490 = vmatprep.mubr.bf16.mxu1 %v9144_v55  ;;  %10519 = vmatpush3.bf16.msra.mxu1 %v11436_v58  ;;  %v6347_v58 = vrot.slane %v12916_v49, 5 }
 0x3f3   : > { %10520 = vmatprep.subr.bf16.mxu1 %v11437_v37 }
 0x3f4   : > { %v12978_v8 = vsel %vm12686_vm13, %v6346_v50, %v6347_v58  ;;  %v13008_v58 = vld [vmem:[#allocation2 + $0x88] sm:$0xf]  ;;  %v13016_v50 = vsel %vm12686_vm13, %v9249_v44, %v6365_v1  ;;  %v5534_v1 = vld [vmem:[#allocation2 + $0xa4] sm:$0x1] }
 0x3f5   : > { %14139 = vst [vmem:[#allocation7_spill] sm:$0xff] %v13016_v50  ;;  %v6386_v55 = vrot.slane %v13008_v58, 5 }
 0x3f6   : > { %10521 = vmatpush3.bf16.msra.mxu1 %v11437_v37  ;;  %v12966_v37 = vld [vmem:[#allocation2 + $0x68] sm:$0x1] }
 0x3f7   : > { %10522 = vmatprep.subr.bf16.mxu1 %v11438_v47 }
 0x3f9   : > { %10491 = vmatmul.mubr.bf16.gmra.mrb[12].mxu1 %v14131_v43  ;;  %v12974_v43 = vld [vmem:[#allocation2 + $0x70] sm:$0xf] }
 0x3fa   : > { %10494 = vmatprep.mubr.bf16.mxu1 %v14132_v2  ;;  %10523 = vmatpush3.bf16.msra.mxu1 %v11438_v47  ;;  %v6353_v47 = vrot.slane %v6351_v62, 4  ;;  %v12982_v2 = vsel %vm12686_vm13, %v9247_v53, %v6351_v62  ;;  %v5528_v53 = vld [vmem:[#allocation2 + $0x8c] sm:$0x1]  ;;  %v13012_v62 = vsel %vm12686_vm13, %v6360_v23, %v6361_v10  ;;  %v6372_v54 = vrot.slane %v12974_v43, 5  ;;  %v5531_v23 = vld [vmem:[#allocation2 + $0x98] sm:$0x1] }
 0x3fb   : > { %10524 = vmatprep.subr.bf16.mxu1 %v11439_v0  ;;  %14134 = vst [vmem:[#allocation3_spill] sm:$0xff] %v12982_v2  ;;  %14138 = vst [vmem:[#allocation6_spill] sm:$0xff] %v13012_v62  ;;  %v6379_v10 = vrot.slane %v12989_v56, 5  ;;  %v6389_v21 = vrot.slane %v5528_v53, 5  ;;  %v14146_v53 = vcombine.low %v12760_v28, %v12767_v3  ;;  %v13062_v62 = vld [vmem:[#allocation2 + $0xb8] sm:$0xf] }
 0x3fc   : > { %v12995_v46 = vsel %vm12686_vm13, %v6353_v47, %v6354_v39  ;;  %v9250_v39 = vrot.slane %v6258_v45, 9  ;;  %v13019_v47 = vld [vmem:[#allocation2 + $0x94] sm:$0xf]  ;;  %v6374_v44 = vrot.slane %v6372_v54, 4  ;;  %v6400_v3 = vrot.slane %v13035_v33, 5 }
 0x3fd   : > { %14136 = vst [vmem:[#allocation4_spill] sm:$0xff] %v12995_v46  ;;  %v6393_v42 = vrot.slane %v13019_v47, 5 }
 0x3fe   : > { %10525 = vmatpush3.bf16.msra.mxu1 %v11439_v0  ;;  %v9248_v0 = vrot.slane %v6256_v36, 9  ;;  %v6368_v36 = vrot.slane %v12966_v37, 5  ;;  %v13032_v45 = vsel %vm12686_vm13, %v9250_v39, %v6372_v54  ;;  %v13045_v39 = vsel %vm12686_vm13, %v6374_v44, %v6375_v38  ;;  %v6262_v38 = vld [vmem:[#allocation2 + $0x9c] sm:$0xe]  ;;  %v6263_v44 = vld [vmem:[#allocation2 + $0xa8] sm:$0xe] }
 0x3ff   : > { %10558 = vmatprep.subr.bf16.mxu1 %v12927_v13  ;;  %14141 = vst [vmem:[#allocation9_spill] sm:$0xff] %v13032_v45  ;;  %14143 = vst [vmem:[#allocation11_spill] sm:$0xff] %v13045_v39  ;;  %v6395_v19 = vrot.slane %v6393_v42, 4 }
 0x400   : > { %v13005_v57 = vsel %vm12686_vm13, %v9248_v0, %v6358_v22  ;;  %v13025_v22 = vsel %vm12686_vm13, %v6367_v35, %v6368_v36  ;;  %v6261_v0 = vld [vmem:[#allocation2 + $0x90] sm:$0xe]  ;;  %v6381_v35 = vrot.slane %v6379_v10, 4  ;;  %v6382_v36 = vrot.slane %v12999_v20, 5 }
 0x401   : > { %10495 = vmatmul.mubr.bf16.gmra.mrb[16].mxu1 %v14133_v17  ;;  %14137 = vst [vmem:[#allocation5_spill] sm:$0xff] %v13005_v57  ;;  %14140 = vst [vmem:[#allocation8_spill] sm:$0xff] %v13025_v22  ;;  %v9251_v17 = vrot.slane %v6259_v63, 9  ;;  %v6388_v22 = vrot.slane %v6386_v55, 4  ;;  %v9253_v50 = vrot.slane %v6261_v0, 9 }
 0x402   : > { %10498 = vmatprep.mubr.bf16.mxu1 %v14135_v59  ;;  %v6260_v59 = vld [vmem:[#allocation2 + $0x84] sm:$0xe]  ;;  %v13055_v25 = vsel %vm12686_vm13, %v6381_v35, %v6382_v36  ;;  %v5520_v57 = vld [vmem:[#allocation2 + $0x6c] sm:$0xf] }
 0x403   : > { %v13039_v63 = vsel %vm12686_vm13, %v9251_v17, %v6379_v10  ;;  %v9252_v54 = vrot.slane %v6260_v59, 9  ;;  %v5536_v17 = vld [vmem:[#allocation2 + $0xac] sm:$0xf]  ;;  %14145 = vst [vmem:[#allocation12_spill] sm:$0xff] %v13055_v25  ;;  %v5537_v59 = vld [vmem:[#allocation2 + $0xb0] sm:$0x1]  ;;  %v13070_v0 = vsel %vm12686_vm13, %v6388_v22, %v6389_v21  ;;  %v13074_v28 = vsel %vm12686_vm13, %v9253_v50, %v6393_v42 }
 0x404   : > { %14142 = vst [vmem:[#allocation10_spill] sm:$0xff] %v13039_v63  ;;  %v5540_v10 = vld [vmem:[#allocation2 + $0xbc] sm:$0x1]  ;;  %14148 = vst [vmem:[#allocation14_spill] sm:$0xff] %v13070_v0  ;;  %v5542_v36 = vld [vmem:[#allocation2 + $0xc4] sm:$0xf]  ;;  %v14155_v21 = vcombine.low %v12782_v27, %v12786_v15 }
 0x405   : > { %v13066_v35 = vsel %vm12686_vm13, %v9252_v54, %v6386_v55  ;;  %14149 = vst [vmem:[#allocation15_spill] sm:$0xff] %v13074_v28  ;;  %v9254_v55 = vrot.slane %v6262_v38, 9  ;;  %v6407_v54 = vrot.slane %v5536_v17, 5  ;;  %v5543_v25 = vld [vmem:[#allocation2 + $0xc8] sm:$0x1]  ;;  %v6402_v22 = vrot.slane %v6400_v3, 4 }
 0x406   : > { %14147 = vst [vmem:[#allocation13_spill] sm:$0xff] %v13066_v35  ;;  %v6403_v42 = vrot.slane %v5534_v1, 5  ;;  %v9255_v50 = vrot.slane %v6263_v44, 9  ;;  %v6414_v0 = vrot.slane %v13062_v62, 5  ;;  %v6421_v1 = vrot.slane %v5542_v36, 5  ;;  %v11453_v35 = vld [vmem:[#allocation2 + $0x78] sm:$0xff]  }
 0x407   : > { %v13087_v63 = vsel %vm12686_vm13, %v9254_v55, %v6400_v3  ;;  %v6409_v39 = vrot.slane %v6407_v54, 4  ;;  %v6417_v55 = vrot.slane %v5540_v10, 5  ;;  %v14156_v36 = vcombine.low %v12790_v60, %v12796_v48  ;;  %v11440_v48 = vld [vmem:[#allocation2 + $0xc] sm:$0xff]  }
 0x408   : > { %14151 = vst [vmem:[#allocation17_spill] sm:$0xff] %v13087_v63  ;;  %v13092_v17 = vsel %vm12686_vm13, %v6402_v22, %v6403_v42  ;;  %v13096_v38 = vsel %vm12686_vm13, %v9255_v50, %v6407_v54  ;;  %v6423_v42 = vrot.slane %v6421_v1, 4  ;;  %v11443_v50 = vld [vmem:[#allocation2 + $0x24] sm:$0xff]   ;;  %v13148_v22 = vld [vmem:[#allocation2 + $0x14] sm:$0x1] }
 0x409   : > { %10499 = vmatmul.mubr.bf16.gmra.mrb[20].mxu1 %v14144_v11  ;;  %v6396_v11 = vrot.slane %v5531_v23, 5  ;;  %v6410_v23 = vrot.slane %v5537_v59, 5  ;;  %14152 = vst [vmem:[#allocation18_spill] sm:$0xff] %v13092_v17  ;;  %14153 = vst [vmem:[#allocation19_spill] sm:$0xff] %v13096_v38  ;;  %v6416_v59 = vrot.slane %v6414_v0, 4  ;;  %v5626_v17 = vshll.u32 %v12906_v61, 16 }
 0x40a   : > { %10502 = vmatprep.mubr.bf16.mxu1 %v14146_v53 }
 0x40b   : > { %v13081_v53 = vsel %vm12686_vm13, %v6395_v19, %v6396_v11  ;;  %v6265_v19 = vld [vmem:[#allocation2 + $0xc0] sm:$0xe]  ;;  %v9256_v11 = vrot.slane %v6264_v12, 9  ;;  %v13102_v3 = vsel %vm12686_vm13, %v6409_v39, %v6410_v23  ;;  %v6424_v12 = vrot.slane %v5543_v25, 5  ;;  %v11441_v23 = vld [vmem:[#allocation2 + $0x18] sm:$0xff]  }
 0x40c   : > { %14150 = vst [vmem:[#allocation16_spill] sm:$0xff] %v13081_v53  ;;  %14154 = vst [vmem:[#allocation20_spill] sm:$0xff] %v13102_v3  ;;  %v9257_v54 = vrot.slane %v6265_v19, 9  ;;  %v13118_v10 = vsel %vm12686_vm13, %v6416_v59, %v6417_v55  ;;  %v11448_v19 = vld [vmem:[%s14056_s3 + $0x110] sm:$0xff]  }
 0x40d   : > { %v13114_v39 = vsel %vm12686_vm13, %v9256_v11, %v6414_v0  ;;  %14158 = vst [vmem:[#allocation22_spill] sm:$0xff] %v13118_v10  ;;  %v13128_v25 = vsel %vm12686_vm13, %v6423_v42, %v6424_v12  ;;  %v14161_v0 = vcombine.low %v12806_v9, %v12810_v7  ;;  %v5496_v11 = vld [vmem:[#allocation2 + $0xc] sm:$0xf]  ;;  %v11444_v42 = vld [vmem:[#allocation2 + $0x30] sm:$0xff]   ;;  %v11451_v12 = vld [vmem:[%s14056_s3 + $0x118] sm:$0xff]   ;;  %v5602_v10 = vshll.u32 %v12899_v16, 16 }
 0x40e   : > { %14157 = vst [vmem:[#allocation21_spill] sm:$0xff] %v13114_v39  ;;  %v13124_v15 = vsel %vm12686_vm13, %v9257_v54, %v6421_v1  ;;  %14160 = vst [vmem:[#allocation24_spill] sm:$0xff] %v13128_v25  ;;  %v5497_v1 = vld [vmem:[#allocation2 + $0x10] sm:$0xf]  ;;  %v5545_v9 = vshrl.u32 %v5496_v11, 16  ;;  %v5548_v7 = vshll.u32 %v5496_v11, 16 }
 0x40f   : > { %14159 = vst [vmem:[#allocation23_spill] sm:$0xff] %v13124_v15  ;;  %v5554_v59 = vshll.u32 %v5497_v1, 16  ;;  %v5558_v55 = vshrl.u32 %v5497_v1, 16  ;;  %v5499_v54 = vld [vmem:[#allocation2 + $0x18] sm:$0xf]  ;;  %v11454_v1 = vld [vmem:[%s14056_s3 + $0x120] sm:$0xff]  }
 0x410   : > { %v13156_v15 = vld [vmem:[#allocation2 + $0x20] sm:$0x1] }
 0x411   : > { %10503 = vmatmul.mubr.bf16.gmra.mrb[24].mxu1 %v14155_v21  ;;  %v11445_v21 = vld [vmem:[%s14056_s3 + $0x108] sm:$0xff]   ;;  %v5560_v11 = vrot.slane %v5558_v55, 4  ;;  %v11449_v55 = vld [vmem:[#allocation2 + $0x54] sm:$0xff]  }
 0x412   : > { %10506 = vmatprep.mubr.bf16.mxu1 %v14156_v36  ;;  %v5500_v36 = vld [vmem:[#allocation2 + $0x1c] sm:$0xf] }
 0x413   : > { %v5578_v60 = vshll.u32 %v5500_v36, 16  ;;  %v5582_v27 = vshrl.u32 %v5500_v36, 16  ;;  %v5564_v36 = vshll.u32 %v13148_v22, 16 }
 0x415   : > { %v5566_v39 = vrot.slane %v5564_v36, 5 }
 0x419   : > { %10507 = vmatmul.mubr.bf16.gmra.mrb[28].mxu1 %v14161_v0  ;;  %v5572_v0 = vshll.u32 %v5499_v54, 16 }
 0x41a   : > { %10526 = vmatprep.mubr.bf16.mxu1 %v11440_v48  ;;  %v5569_v48 = vshrl.u32 %v5499_v54, 16 }
 0x41b   : > { %v5574_v25 = vrot.slane %v5572_v0, 5 }
 0x41c   : > { %v5571_v44 = vrot.slane %v5569_v48, 4 }
 0x421   : > { %10527 = vmatmul.mubr.bf16.vlgmr.msra.gmra.mrb[0].mxu1 %v11441_v23  ;;  %v5547_v23 = vrot.slane %v5545_v9, 4  ;;  %v11457_v9 = vld [vmem:[%s14056_s3 + $0x128] sm:$0xff]  }
 0x422   : > { %10530 = vmatprep.mubr.bf16.mxu1 %v11443_v50  ;;  %10559 = vmatpush3.bf16.msra.mxu1 %v12927_v13  ;;  %v11446_v13 = vld [vmem:[#allocation2 + $0x3c] sm:$0xff]   ;;  %v5556_v50 = vrot.slane %v5554_v59, 5  ;;  %v5584_v59 = vrot.slane %v5582_v27, 4 }
 0x423   : > { %10560 = vmatprep.subr.bf16.mxu1 %v11445_v21 }
 0x426   : > { %10561 = vmatpush3.bf16.msra.mxu1 %v11445_v21  ;;  %v5550_v21 = vrot.slane %v5548_v7, 5  ;;  %v13153_v7 = vrot.slane %v5578_v60, 5  ;;  %v11460_v60 = vld [vmem:[%s14056_s3 + $0x130] sm:$0xff]  }
 0x427   : > { %10562 = vmatprep.subr.bf16.mxu1 %v11448_v19 }
 0x428   : > { %v5551_v54 = vor.u32 %v5550_v21, %v5547_v23  ;;  %v5585_v27 = vor.u32 %v5584_v59, %v13153_v7  ;;  %v11450_v59 = vld [vmem:[#allocation2 + $0x60] sm:$0xff]  }
 0x429   : > { %10531 = vmatmul.mubr.bf16.gmra.mrb[4].mxu1 %v11444_v42  ;;  %v5502_v42 = vld [vmem:[#allocation2 + $0x24] sm:$0xf] }
 0x42a   : > { %10534 = vmatprep.mubr.bf16.mxu1 %v11446_v13  ;;  %10563 = vmatpush3.bf16.msra.mxu1 %v11448_v19  ;;  %v5561_v13 = vor.u32 %v5560_v11, %v5556_v50  ;;  %v11447_v19 = vld [vmem:[#allocation2 + $0x48] sm:$0xff]   ;;  %v5593_v48 = vshrl.u32 %v5502_v42, 16  ;;  %v5596_v0 = vshll.u32 %v5502_v42, 16  ;;  %v5552_v23 = vrot.slane %v5551_v54, 4 }
 0x42b   : > { %10564 = vmatprep.subr.bf16.mxu1 %v11451_v12  ;;  %v5588_v11 = vshll.u32 %v13156_v15, 16  ;;  %v5586_v36 = vrot.slane %v5585_v27, 4  ;;  %v5630_v27 = vshrl.u32 %v12906_v61, 16  ;;  %v5674_v61 = vshll.u32 %v12918_v14, 16 }
 0x42c   : > { %v5562_v21 = vrot.slane %v5561_v13, 4  ;;  %v5595_v3 = vrot.slane %v5593_v48, 4  ;;  %v5598_v42 = vrot.slane %v5596_v0, 5  ;;  %v5557_v54 = vsel %vm12221_vm2, %v5552_v23, %v5556_v50 }
 0x42d   : > { %v5590_v48 = vrot.slane %v5588_v11, 5  ;;  %v13172_v0 = vrot.slane %v5602_v10, 5  ;;  %v5654_v11 = vshrl.u32 %v12910_v24, 16 }
 0x42e   : > { %10565 = vmatpush3.bf16.msra.mxu1 %v11451_v12  ;;  %v5575_v12 = vor.u32 %v5574_v25, %v5571_v44  ;;  %v5606_v44 = vshrl.u32 %v12899_v16, 16  ;;  %v5567_v13 = vsel %vm12221_vm2, %v5562_v21, %v5566_v39  ;;  %v5612_v16 = vshll.u32 %v12901_v26, 16 }
 0x42f   : > { %10566 = vmatprep.subr.bf16.mxu1 %v11454_v1  ;;  %v13175_v39 = vcombine.low %v5557_v54, %v5567_v13  ;;  %v5656_v28 = vrot.slane %v5654_v11, 4 }
 0x430   : > { %v5576_v25 = vrot.slane %v5575_v12, 4  ;;  %v5599_v12 = vor.u32 %v5598_v42, %v5595_v3  ;;  %v5608_v38 = vrot.slane %v5606_v44, 4  ;;  %v5650_v3 = vshll.u32 %v12910_v24, 16  ;;  %v5511_v42 = vld [vmem:[#allocation2 + $0x48] sm:$0xf] }
 0x431   : > { %10535 = vmatmul.mubr.bf16.gmra.mrb[8].mxu1 %v11447_v19  ;;  %v5508_v19 = vld [vmem:[#allocation2 + $0x3c] sm:$0xf]  ;;  %v5591_v44 = vsel %vm12221_vm2, %v5586_v36, %v5590_v48  ;;  %v5632_v36 = vrot.slane %v5630_v27, 4  ;;  %v5665_v48 = vshrl.u32 %v5511_v42, 16  ;;  %v5698_v27 = vshll.u32 %v12932_v41, 16 }
 0x432   : > { %10538 = vmatprep.mubr.bf16.mxu1 %v11449_v55  ;;  %10567 = vmatpush3.bf16.msra.mxu1 %v11454_v1  ;;  %v5505_v1 = vld [vmem:[#allocation2 + $0x30] sm:$0xf]  ;;  %v11463_v55 = vld [vmem:[%s14056_s3 + $0x138] sm:$0xff]   ;;  %v5581_v21 = vsel %vm12221_vm2, %v5576_v25, %v13153_v7  ;;  %v5641_v10 = vshrl.u32 %v5508_v19, 16  ;;  %v5644_v26 = vshll.u32 %v5508_v19, 16  ;;  %v13189_v7 = vld [vmem:[%s14056_s3 + $0x140] sm:$0xff]   ;;  %v5609_v24 = vor.u32 %v5608_v38, %v13172_v0 }
 0x433   : > { %10568 = vmatprep.subr.bf16.mxu1 %v11457_v9  ;;  %v5617_v50 = vshrl.u32 %v5505_v1, 16  ;;  %v5620_v23 = vshll.u32 %v5505_v1, 16  ;;  %v13191_v25 = vrot.slane %v5612_v16, 5  ;;  %v13195_v1 = vrot.slane %v5599_v12, 4  ;;  %v5514_v19 = vld [vmem:[#allocation2 + $0x54] sm:$0xf] }
 0x434   : > { %v5643_v63 = vrot.slane %v5641_v10, 4  ;;  %v5646_v16 = vrot.slane %v5644_v26, 5  ;;  %v13200_v53 = vrot.slane %v5650_v3, 5  ;;  %v5689_v12 = vshrl.u32 %v5514_v19, 16 }
 0x435   : > { %v5619_v54 = vrot.slane %v5617_v50, 4  ;;  %v5622_v13 = vrot.slane %v5620_v23, 5  ;;  %v5692_v50 = vshll.u32 %v5514_v19, 16  ;;  %v11455_v23 = vld [vmem:[#allocation2 + $0x84] sm:$0xff]   ;;  %v5702_v10 = vshrl.u32 %v12932_v41, 16 }
 0x436   : > { %10569 = vmatpush3.bf16.msra.mxu1 %v11457_v9  ;;  %v11452_v9 = vld [vmem:[#allocation2 + $0x6c] sm:$0xff]   ;;  %v5610_v26 = vrot.slane %v5609_v24, 4  ;;  %v5636_v3 = vshll.u32 %v12908_v34, 16  ;;  %v5667_v11 = vrot.slane %v5665_v48, 4  ;;  %v5660_v19 = vshll.u32 %v12916_v49, 16 }
 0x437   : > { %10570 = vmatprep.subr.bf16.mxu1 %v11460_v60  ;;  %v5691_v45 = vrot.slane %v5689_v12, 4  ;;  %v5694_v41 = vrot.slane %v5692_v50, 5  ;;  %v5704_v24 = vrot.slane %v5702_v10, 4  ;;  %v11458_v10 = vld [vmem:[#allocation2 + $0x9c] sm:$0xff]  }
 0x438   : > { %v5615_v49 = vsel %vm12221_vm2, %v5610_v26, %v13191_v25  ;;  %v5662_v12 = vrot.slane %v5660_v19, 5  ;;  %v5737_v19 = vshrl.u32 %v5520_v57, 16 }
 0x439   : > { %10539 = vmatmul.mubr.bf16.gmra.mrb[12].mxu1 %v11450_v59  ;;  %v13198_v59 = vrot.slane %v5626_v17, 5  ;;  %v13205_v17 = vcombine.low %v5581_v21, %v5591_v44  ;;  %v5657_v44 = vor.u32 %v5656_v28, %v13200_v53  ;;  %v5638_v28 = vrot.slane %v5636_v3, 5 }
 0x43a   : > { %10542 = vmatprep.mubr.bf16.mxu1 %v11452_v9  ;;  %10571 = vmatpush3.bf16.msra.mxu1 %v11460_v60  ;;  %v5678_v60 = vshrl.u32 %v12918_v14, 16  ;;  %v5668_v9 = vshll.u32 %v5511_v42, 16  ;;  %v13203_v14 = vrot.slane %v5674_v61, 5  ;;  %v5517_v61 = vld [vmem:[#allocation2 + $0x60] sm:$0xf] }
 0x43b   : > { %10572 = vmatprep.subr.bf16.mxu1 %v11463_v55  ;;  %v5633_v21 = vor.u32 %v5632_v36, %v13198_v59  ;;  %v5713_v34 = vshrl.u32 %v5517_v61, 16  ;;  %v5716_v48 = vshll.u32 %v5517_v61, 16  ;;  %v5658_v36 = vrot.slane %v5657_v44, 4 }
 0x43c   : > { %v5680_v38 = vrot.slane %v5678_v60, 4  ;;  %v5670_v42 = vrot.slane %v5668_v9, 5  ;;  %v5623_v60 = vor.u32 %v5622_v13, %v5619_v54  ;;  %v5722_v54 = vshll.u32 %v12948_v52, 16 }
 0x43d   : > { %v5726_v13 = vshrl.u32 %v12948_v52, 16  ;;  %v5718_v61 = vrot.slane %v5716_v48, 5  ;;  %v13255_v48 = vld [vmem:[#allocation2 + $0x78] sm:$0xf] }
 0x43e   : > { %10573 = vmatpush3.bf16.msra.mxu1 %v11463_v55  ;;  %v5605_v55 = vsel %vm12221_vm2, %v13195_v1, %v13172_v0  ;;  %v5647_v0 = vor.u32 %v5646_v16, %v5643_v63  ;;  %v5681_v1 = vor.u32 %v5680_v38, %v13203_v14  ;;  %v5671_v9 = vor.u32 %v5670_v42, %v5667_v11  ;;  %v11456_v16 = vld [vmem:[#allocation2 + $0x90] sm:$0xff]  }
 0x43f   : > { %10606 = vmatprep.subr.bf16.mxu1 %v13189_v7  ;;  %v5634_v63 = vrot.slane %v5633_v21, 4  ;;  %v5624_v38 = vrot.slane %v5623_v60, 4  ;;  %v5715_v42 = vrot.slane %v5713_v34, 4  ;;  %v13227_v2 = vrot.slane %v5722_v54, 5 }
 0x440   : > { %v5682_v50 = vrot.slane %v5681_v1, 4  ;;  %v5648_v11 = vrot.slane %v5647_v0, 4  ;;  %v5672_v52 = vrot.slane %v5671_v9, 4  ;;  %v5728_v25 = vrot.slane %v5726_v13, 4 }
 0x441   : > { %10543 = vmatmul.mubr.bf16.gmra.mrb[16].mxu1 %v11453_v35  ;;  %v13218_v35 = vrot.slane %v5698_v27, 5  ;;  %v5695_v27 = vor.u32 %v5694_v41, %v5691_v45  ;;  %v13229_v26 = vcombine.low %v5605_v55, %v5615_v49  ;;  %v5639_v3 = vsel %vm12221_vm2, %v5634_v63, %v5638_v28  ;;  %v13266_v49 = vld [vmem:[#allocation2 + $0x20] sm:$0x1]  ;;  %v11459_v63 = vld [vmem:[#allocation2 + $0xa8] sm:$0xff]  }
 0x442   : > { %10546 = vmatprep.mubr.bf16.mxu1 %v11455_v23  ;;  %v5684_v23 = vshll.u32 %v12929_v40, 16  ;;  %v5663_v45 = vsel %vm12221_vm2, %v5658_v36, %v5662_v12  ;;  %v5708_v60 = vshll.u32 %v12934_v31, 16  ;;  %v5740_v0 = vshll.u32 %v5520_v57, 16  ;;  %14162 = vst [vmem:[#allocation25_spill] sm:$0xff] %v13266_v49  ;;  %v11461_v12 = vld [vmem:[#allocation2 + $0xb4] sm:$0xff]  }
 0x443   : > { %v5705_v40 = vor.u32 %v5704_v24, %v13218_v35  ;;  %v13238_v44 = vrot.slane %v5695_v27, 4  ;;  %v5629_v55 = vsel %vm12221_vm2, %v5624_v38, %v13198_v59  ;;  %v5719_v41 = vor.u32 %v5718_v61, %v5715_v42  ;;  %v13257_v59 = vld [vmem:[#allocation2 + $0x1c] sm:$0xf]  ;;  %v7889_v38 = vld [vmem:[#allocation2 + $0x18] sm:$0xe] }
 0x444   : > { %v5686_v46 = vrot.slane %v5684_v23, 5  ;;  %v5746_v24 = vshll.u32 %v12974_v43, 16  ;;  %v13246_v34 = vcombine.low %v5629_v55, %v5639_v3  ;;  %v5653_v31 = vsel %vm12221_vm2, %v5648_v11, %v13200_v53  ;;  %v13268_v53 = vld [vmem:[#allocation2 + $0x28] sm:$0xf]  ;;  %v13287_v11 = vld [vmem:[#allocation2 + $0x34] sm:$0xf] }
 0x445   : > { %v13243_v1 = vrot.slane %v5705_v40, 4  ;;  %v5729_v57 = vor.u32 %v5728_v25, %v13227_v2  ;;  %v13259_v9 = vcombine.low %v5653_v31, %v5663_v45  ;;  %v13263_v54 = vrot.slane %v5708_v60, 5  ;;  %14163 = vst [vmem:[#allocation26_spill] sm:$0xff] %v13268_v53  ;;  %14164 = vst [vmem:[#allocation27_spill] sm:$0xff] %v13287_v11  ;;  %v7890_v42 = vld [vmem:[#allocation2 + $0x24] sm:$0xe] }
 0x446   : > { %v5687_v21 = vsel %vm12221_vm2, %v5682_v50, %v5686_v46  ;;  %v5677_v46 = vsel %vm12221_vm2, %v5672_v52, %v13203_v14  ;;  %v13274_v28 = vrot.slane %v5737_v19, 4  ;;  %v13276_v36 = vrot.slane %v5740_v0, 5  ;;  %v13295_v3 = vld [vmem:[#allocation2 + $0x2c] sm:$0x1]  ;;  %v13297_v45 = vld [vmem:[#allocation2 + $0x38] sm:$0x1] }
 0x447   : > { %v13261_v23 = vcombine.low %v5677_v46, %v5687_v21  ;;  %v13283_v27 = vrot.slane %v5719_v41, 4  ;;  %v7955_v40 = vrot.slane %v13257_v59, 5  ;;  %v13290_v61 = vrot.slane %v5729_v57, 4  ;;  %14165 = vst [vmem:[#allocation28_spill] sm:$0xff] %v13295_v3  ;;  %14166 = vst [vmem:[#allocation29_spill] sm:$0xff] %v13297_v45  ;;  %v11462_v31 = vld [vmem:[#allocation2 + $0xc0] sm:$0xff]  }
 0x448   : > { %v5761_v52 = vshrl.u32 %v13255_v48, 16  ;;  %v13299_v60 = vld [vmem:[#allocation2 + $0x40] sm:$0xf]  ;;  %v9378_v21 = vrot.slane %v7889_v38, 9  ;;  %v7958_v0 = vrot.slane %v13266_v49, 5  ;;  %v7962_v55 = vrot.slane %v13268_v53, 5 }
 0x449   : > { %10547 = vmatmul.mubr.bf16.gmra.mrb[20].mxu1 %v11456_v16  ;;  %v5750_v16 = vshrl.u32 %v12974_v43, 16  ;;  %14167 = vst [vmem:[#allocation30_spill] sm:$0xff] %v13299_v60  ;;  %v7957_v19 = vrot.slane %v7955_v40, 4  ;;  %v9379_v46 = vrot.slane %v7890_v42, 9  ;;  %v7891_v57 = vld [vmem:[#allocation2 + $0x30] sm:$0xe] }
 0x44a   : > { %10550 = vmatprep.mubr.bf16.mxu1 %v11458_v10  ;;  %v13285_v10 = vrot.slane %v5746_v24, 5  ;;  %v7964_v43 = vrot.slane %v7962_v55, 4  ;;  %v7965_v13 = vrot.slane %v13295_v3, 5  ;;  %v7892_v14 = vld [vmem:[#allocation2 + $0x3c] sm:$0xe]  ;;  %v7976_v25 = vrot.slane %v13299_v60, 5 }
 0x44b   : > { %v13305_v24 = vrot.slane %v5750_v16, 4  ;;  %v13316_v38 = vsel %vm12686_vm13, %v7957_v19, %v7958_v0  ;;  %v13319_v16 = vrot.slane %v5761_v52, 4  ;;  %v13322_v42 = vld [vmem:[#allocation2 + $0x44] sm:$0x1]  ;;  %v13329_v19 = vsel %vm12686_vm13, %v9379_v46, %v7962_v55  ;;  %v7893_v50 = vld [vmem:[#allocation2 + $0x48] sm:$0xe] }
 0x44c   : > { %14170 = vst [vmem:[#allocation33_spill] sm:$0xff] %v13316_v38  ;;  %14171 = vst [vmem:[#allocation34_spill] sm:$0xff] %v13322_v42  ;;  %v13333_v0 = vsel %vm12686_vm13, %v7964_v43, %v7965_v13  ;;  %v9380_v52 = vrot.slane %v7891_v57, 9  ;;  %v13336_v3 = vld [vmem:[#allocation2 + $0x58] sm:$0xf]  ;;  %v7978_v43 = vrot.slane %v7976_v25, 4 }
 0x44d   : > { %14172 = vst [vmem:[#allocation35_spill] sm:$0xff] %v13329_v19  ;;  %14173 = vst [vmem:[#allocation36_spill] sm:$0xff] %v13333_v0  ;;  %v13343_v46 = vld [vmem:[#allocation2 + $0x5c] sm:$0x1]  ;;  %v7979_v57 = vrot.slane %v13322_v42, 5  ;;  %v9382_v55 = vrot.slane %v7893_v50, 9 }
 0x44e   : > { %14174 = vst [vmem:[#allocation37_spill] sm:$0xff] %v13336_v3  ;;  %14175 = vst [vmem:[#allocation38_spill] sm:$0xff] %v13343_v46  ;;  %v7894_v60 = vld [vmem:[#allocation2 + $0x54] sm:$0xe]  ;;  %v13350_v49 = vld [vmem:[#allocation2 + $0x64] sm:$0xf] }
 0x44f   : > { %14177 = vst [vmem:[#allocation40_spill] sm:$0xff] %v13350_v49  ;;  %v13362_v19 = vld [vmem:[#allocation2 + $0x70] sm:$0xf]  ;;  %v7158_v53 = vld [vmem:[#allocation2 + $0x74] sm:$0x1] }
 0x450   : > { %14180 = vst [vmem:[#allocation43_spill] sm:$0xff] %v13362_v19 }
 0x451   : > { %10551 = vmatmul.mubr.bf16.gmra.mrb[24].mxu1 %v11459_v63  ;;  %v13308_v63 = vld [vmem:[#allocation2 + $0x4c] sm:$0xf] }
 0x452   : > { %10554 = vmatprep.mubr.bf16.mxu1 %v11461_v12  ;;  %14168 = vst [vmem:[#allocation31_spill] sm:$0xff] %v13308_v63  ;;  %v13312_v12 = vsel %vm12686_vm13, %v9378_v21, %v7955_v40  ;;  %v7969_v40 = vrot.slane %v13287_v11, 5  ;;  %v7149_v21 = vld [vmem:[#allocation2 + $0x50] sm:$0x1]  ;;  %v9381_v11 = vrot.slane %v7892_v14, 9  ;;  %v7983_v0 = vrot.slane %v13308_v63, 5 }
 0x453   : > { %14169 = vst [vmem:[#allocation32_spill] sm:$0xff] %v13312_v12  ;;  %v7972_v12 = vrot.slane %v13297_v45, 5  ;;  %v9383_v63 = vrot.slane %v7894_v60, 9  ;;  %v7896_v45 = vld [vmem:[#allocation2 + $0x6c] sm:$0xe] }
 0x454   : > { %v7971_v38 = vrot.slane %v7969_v40, 4  ;;  %v13347_v13 = vsel %vm12686_vm13, %v9380_v52, %v7969_v40  ;;  %v13358_v14 = vsel %vm12686_vm13, %v9381_v11, %v7976_v25  ;;  %v7895_v40 = vld [vmem:[#allocation2 + $0x60] sm:$0xe]  ;;  %v7155_v52 = vld [vmem:[#allocation2 + $0x68] sm:$0x1]  ;;  %v7990_v11 = vrot.slane %v13336_v3, 5 }
 0x455   : > { %14176 = vst [vmem:[#allocation39_spill] sm:$0xff] %v13347_v13  ;;  %14179 = vst [vmem:[#allocation42_spill] sm:$0xff] %v13358_v14  ;;  %v7160_v25 = vld [vmem:[#allocation2 + $0x7c] sm:$0xf]  ;;  %v7985_v42 = vrot.slane %v7983_v0, 4  ;;  %v8000_v50 = vrot.slane %v7155_v52, 5 }
 0x456   : > { %v13354_v41 = vsel %vm12686_vm13, %v7971_v38, %v7972_v12  ;;  %v13368_v12 = vsel %vm12686_vm13, %v7978_v43, %v7979_v57  ;;  %v7986_v38 = vrot.slane %v7149_v21, 5  ;;  %v9384_v43 = vrot.slane %v7895_v40, 9  ;;  %v7161_v57 = vld [vmem:[#allocation2 + $0x80] sm:$0x1]  ;;  %v7897_v14 = vld [vmem:[#allocation2 + $0x78] sm:$0xe] }
 0x457   : > { %14178 = vst [vmem:[#allocation41_spill] sm:$0xff] %v13354_v41  ;;  %14181 = vst [vmem:[#allocation44_spill] sm:$0xff] %v13368_v12  ;;  %v7992_v41 = vrot.slane %v7990_v11, 4  ;;  %v7997_v21 = vrot.slane %v13350_v49, 5  ;;  %v13385_v60 = vsel %vm12686_vm13, %v9383_v63, %v7990_v11  ;;  %v8004_v12 = vrot.slane %v13362_v19, 5  ;;  %v11465_v63 = vld [vmem:[%s14056_s3 + $0x148] sm:$0xff]  }
 0x458   : > { %v13381_v13 = vsel %vm12686_vm13, %v7985_v42, %v7986_v38  ;;  %v9385_v42 = vrot.slane %v7896_v45, 9  ;;  %v8007_v19 = vrot.slane %v7158_v53, 5  ;;  %v7899_v3 = vld [vmem:[#allocation2 + $0x90] sm:$0xe]  ;;  %v7167_v52 = vld [vmem:[#allocation2 + $0x98] sm:$0x1] }
 0x459   : > { %10555 = vmatmul.mubr.bf16.gmra.mrb[28].mxu1 %v11462_v31  ;;  %v13376_v31 = vsel %vm12686_vm13, %v9382_v55, %v7983_v0  ;;  %14183 = vst [vmem:[#allocation46_spill] sm:$0xff] %v13381_v13  ;;  %v7164_v0 = vld [vmem:[#allocation2 + $0x8c] sm:$0x1]  ;;  %v7999_v49 = vrot.slane %v7997_v21, 4  ;;  %v13401_v38 = vsel %vm12686_vm13, %v9384_v43, %v7997_v21  ;;  %v8006_v11 = vrot.slane %v8004_v12, 4  ;;  %v11466_v53 = vld [vmem:[%s14056_s3 + $0x150] sm:$0xff]  }
 0x45a   : > { %10574 = vmatprep.mubr.bf16.mxu1 %v13175_v39  ;;  %v7993_v39 = vrot.slane %v13343_v46, 5  ;;  %14182 = vst [vmem:[#allocation45_spill] sm:$0xff] %v13376_v31  ;;  %v7163_v46 = vld [vmem:[#allocation2 + $0x88] sm:$0xf]  ;;  %14184 = vst [vmem:[#allocation47_spill] sm:$0xff] %v13401_v38  ;;  %v13409_v45 = vsel %vm12686_vm13, %v9385_v42, %v8004_v12  ;;  %v8011_v31 = vrot.slane %v7160_v25, 5 }
 0x45b   : > { %v7898_v55 = vld [vmem:[#allocation2 + $0x84] sm:$0xe]  ;;  %v7166_v13 = vld [vmem:[#allocation2 + $0x94] sm:$0xf]  ;;  %14186 = vst [vmem:[#allocation49_spill] sm:$0xff] %v13409_v45  ;;  %v13416_v21 = vsel %vm12686_vm13, %v8006_v11, %v8007_v19  ;;  %v8021_v25 = vrot.slane %v7164_v0, 5 }
 0x45c   : > { %v13392_v40 = vsel %vm12686_vm13, %v7992_v41, %v7993_v39  ;;  %v13405_v41 = vsel %vm12686_vm13, %v7999_v49, %v8000_v50  ;;  %v9386_v39 = vrot.slane %v7897_v14, 9  ;;  %v7169_v43 = vld [vmem:[#allocation2 + $0xa0] sm:$0xf]  ;;  %14187 = vst [vmem:[#allocation50_spill] sm:$0xff] %v13416_v21  ;;  %v8014_v49 = vrot.slane %v7161_v57, 5 }
 0x45d   : > { %14185 = vst [vmem:[#allocation48_spill] sm:$0xff] %v13405_v41  ;;  %v8018_v50 = vrot.slane %v7163_v46, 5  ;;  %v8013_v12 = vrot.slane %v8011_v31, 4  ;;  %v7900_v42 = vld [vmem:[#allocation2 + $0x9c] sm:$0xe]  ;;  %v9388_v57 = vrot.slane %v7899_v3, 9 }
 0x45e   : > { %v7170_v19 = vld [vmem:[#allocation2 + $0xa4] sm:$0x1]  ;;  %v13427_v46 = vsel %vm12686_vm13, %v9386_v39, %v8011_v31  ;;  %v7172_v11 = vld [vmem:[#allocation2 + $0xac] sm:$0xf]  ;;  %v7173_v41 = vld [vmem:[#allocation2 + $0xb0] sm:$0x1] }
 0x45f   : > { %v8028_v14 = vrot.slane %v7167_v52, 5  ;;  %v8032_v21 = vrot.slane %v7169_v43, 5  ;;  %v7175_v45 = vld [vmem:[#allocation2 + $0xb8] sm:$0xf]  ;;  %v9389_v39 = vrot.slane %v7900_v42, 9 }
 0x460   : > { %v7901_v38 = vld [vmem:[#allocation2 + $0xa8] sm:$0xe]  ;;  %v7178_v31 = vld [vmem:[#allocation2 + $0xc4] sm:$0xf] }
 0x461   : > { %10575 = vmatmul.mubr.bf16.vlgmr.msra.gmra.mrb[0].mxu1 %v13205_v17  ;;  %v9387_v17 = vrot.slane %v7898_v55, 9  ;;  %v13431_v55 = vsel %vm12686_vm13, %v8013_v12, %v8014_v49  ;;  %v14191_v49 = vshll.u32 %v12989_v56, 16  ;;  %v8034_v43 = vrot.slane %v8032_v21, 4  ;;  %v14260_v30 = vld [vmem:[#allocation45_spill] sm:$0xff] }
 0x462   : > { %10578 = vmatprep.mubr.bf16.mxu1 %v13229_v26  ;;  %10607 = vmatpush3.bf16.msra.mxu1 %v13189_v7  ;;  %v8020_v26 = vrot.slane %v8018_v50, 4  ;;  %v8025_v7 = vrot.slane %v7166_v13, 5  ;;  %14188 = vst [vmem:[#allocation51_spill] sm:$0xff] %v13431_v55  ;;  %v8046_v55 = vrot.slane %v7175_v45, 5  ;;  %v5526_v45 = vld [vmem:[#allocation2 + $0x84] sm:$0xf] }
 0x463   : > { %10608 = vmatprep.subr.bf16.mxu1 %v11465_v63  ;;  %v13435_v0 = vsel %vm12686_vm13, %v9387_v17, %v8018_v50  ;;  %v13445_v12 = vrot.slane %v14191_v49, 5  ;;  %v8035_v50 = vrot.slane %v7170_v19, 5  ;;  %v7902_v17 = vld [vmem:[#allocation2 + $0xb4] sm:$0xe]  ;;  %v13462_v49 = vsel %vm12686_vm13, %v9389_v39, %v8032_v21 }
 0x464   : > { %14189 = vst [vmem:[#allocation52_spill] sm:$0xff] %v13435_v0  ;;  %v13441_v3 = vsel %vm12686_vm13, %v8020_v26, %v8021_v25  ;;  %v8027_v13 = vrot.slane %v8025_v7, 4  ;;  %v11467_v25 = vld [vmem:[%s14056_s3 + $0x158] sm:$0xff]   ;;  %v8039_v19 = vrot.slane %v7172_v11, 5  ;;  %v9390_v0 = vrot.slane %v7901_v38, 9 }
 0x465   : > { %14190 = vst [vmem:[#allocation53_spill] sm:$0xff] %v13441_v3  ;;  %v7176_v26 = vld [vmem:[#allocation2 + $0xbc] sm:$0x1]  ;;  %v13468_v3 = vsel %vm12686_vm13, %v8034_v43, %v8035_v50  ;;  %v8042_v21 = vrot.slane %v7173_v41, 5  ;;  %v9391_v39 = vrot.slane %v7902_v17, 9  ;;  %v14192_v11 = vshrl.u32 %v12989_v56, 16 }
 0x466   : > { %10609 = vmatpush3.bf16.msra.mxu1 %v11465_v63  ;;  %v13454_v63 = vsel %vm12686_vm13, %v9388_v57, %v8025_v7  ;;  %v13458_v42 = vsel %vm12686_vm13, %v8027_v13, %v8028_v14  ;;  %v7903_v57 = vld [vmem:[#allocation2 + $0xc0] sm:$0xe]  ;;  %v7179_v7 = vld [vmem:[#allocation2 + $0xc8] sm:$0x1]  ;;  %v8041_v13 = vrot.slane %v8039_v19, 4  ;;  %v8048_v43 = vrot.slane %v8046_v55, 4 }
 0x467   : > { %10610 = vmatprep.subr.bf16.mxu1 %v11466_v53  ;;  %v5776_v52 = vrot.slane %v14192_v11, 4  ;;  %v8049_v50 = vrot.slane %v7176_v26, 5  ;;  %v8053_v38 = vrot.slane %v7178_v31, 5  ;;  %v13481_v14 = vsel %vm12686_vm13, %v9390_v0, %v8039_v19 }
 0x468   : > { %v13489_v56 = vsel %vm12686_vm13, %v9391_v39, %v8046_v55  ;;  %v9392_v41 = vrot.slane %v7903_v57, 9  ;;  %v8056_v26 = vrot.slane %v7179_v7, 5  ;;  %v14193_v0 = vshll.u32 %v13255_v48, 16 }
 0x469   : > { %10579 = vmatmul.mubr.bf16.gmra.mrb[4].mxu1 %v13246_v34  ;;  %v11468_v34 = vld [vmem:[%s14056_s3 + $0x160] sm:$0xff]   ;;  %v13495_v31 = vsel %vm12686_vm13, %v8048_v43, %v8049_v50  ;;  %v8055_v17 = vrot.slane %v8053_v38, 4  ;;  %v5785_v57 = vshrl.u32 %v5526_v45, 16  ;;  %v5788_v39 = vshll.u32 %v5526_v45, 16 }
 0x46a   : > { %10582 = vmatprep.mubr.bf16.mxu1 %v13259_v9  ;;  %10611 = vmatpush3.bf16.msra.mxu1 %v11466_v53  ;;  %v13485_v9 = vsel %vm12686_vm13, %v8041_v13, %v8042_v21  ;;  %v5766_v19 = vrot.slane %v14193_v0, 5  ;;  %v5794_v13 = vshll.u32 %v13008_v58, 16  ;;  %v5798_v21 = vshrl.u32 %v13008_v58, 16 }
 0x46b   : > { %10612 = vmatprep.subr.bf16.mxu1 %v11467_v25  ;;  %v9422_v53 = vcombine.low %v13481_v14, %v13485_v9  ;;  %v9423_v55 = vcombine.low %v13489_v56, %v13495_v31  ;;  %v13505_v11 = vsel %vm12686_vm13, %v9392_v41, %v8053_v38  ;;  %v13509_v7 = vsel %vm12686_vm13, %v8055_v17, %v8056_v26  ;;  %v11469_v38 = vld [vmem:[%s14056_s3 + $0x168] sm:$0xff]   ;;  %v9434_v14 = vld [vmem:[%s11618_s29 + $0x19] sm:$0xff] }
 0x46c   : > { %v14194_v48 = vor.u32 %v13276_v36, %v13274_v28  ;;  %v14195_v58 = vor.u32 %v13305_v24, %v13285_v10  ;;  %v9424_v45 = vcombine.low %v13505_v11, %v13509_v7  ;;  %v14196_v28 = vsel %vm12221_vm2, %v13243_v1, %v13263_v54  ;;  %v5529_v1 = vld [vmem:[#allocation2 + $0x90] sm:$0xf]  ;;  %v9435_v7 = vld [vmem:[%s11618_s29 + $0x21] sm:$0xff] }
 0x46d   : > { %v14197_v36 = vsel %vm12221_vm2, %v13238_v44, %v13218_v35  ;;  %v14199_v17 = vshll.u32 %v12997_v32, 16  ;;  %v5780_v0 = vshll.u32 %v12999_v20, 16  ;;  %v5725_v35 = vsel %vm12221_vm2, %v13283_v27, %v13227_v2  ;;  %v11470_v2 = vld [vmem:[%s14056_s3 + $0x170] sm:$0xff]  }
 0x46e   : > { %10613 = vmatpush3.bf16.msra.mxu1 %v11467_v25  ;;  %v5744_v43 = vrot.slane %v14194_v48, 4  ;;  %v5754_v50 = vrot.slane %v14195_v58, 4  ;;  %v5777_v25 = vor.u32 %v5776_v52, %v13445_v12  ;;  %v9224_v24 = vcombine.low %v14197_v36, %v14196_v28 }
 0x46f   : > { %10614 = vmatprep.subr.bf16.mxu1 %v11468_v34  ;;  %v14198_v52 = vshll.u32 %v12966_v37, 16  ;;  %v5758_v26 = vrot.slane %v14199_v17, 5  ;;  %v13539_v48 = vrot.slane %v5794_v13, 5  ;;  %v5800_v58 = vrot.slane %v5798_v21, 4  ;;  %v11471_v17 = vld [vmem:[%s14056_s3 + $0x178] sm:$0xff]  }
 0x470   : > { %v5767_v37 = vor.u32 %v5766_v19, %v13319_v16  ;;  %v5787_v44 = vrot.slane %v5785_v57, 4  ;;  %v5790_v54 = vrot.slane %v5788_v39, 5  ;;  %v5749_v20 = vsel %vm12221_vm2, %v5744_v43, %v13285_v10 }
 0x471   : > { %v5734_v41 = vrot.slane %v14198_v52, 5  ;;  %10583 = vmatmul.mubr.bf16.gmra.mrb[8].mxu1 %v13261_v23  ;;  %v5759_v23 = vsel %vm12221_vm2, %v5754_v50, %v5758_v26  ;;  %v5778_v13 = vrot.slane %v5777_v25, 4  ;;  %v5809_v27 = vshrl.u32 %v5529_v1, 16 }
 0x472   : > { %10586 = vmatprep.mubr.bf16.mxu1 %v9224_v24  ;;  %10615 = vmatpush3.bf16.msra.mxu1 %v11468_v34  ;;  %v5812_v16 = vshll.u32 %v5529_v1, 16  ;;  %v5818_v34 = vshll.u32 %v13019_v47, 16  ;;  %v5822_v19 = vshrl.u32 %v13019_v47, 16  ;;  %v5782_v21 = vrot.slane %v5780_v0, 5  ;;  %v11529_v24 = vld [vmem:[#allocation2 + $0x8c] sm:$0x1] }
 0x473   : > { %v5735_v32 = vsel %vm12221_vm2, %v13290_v61, %v5734_v41  ;;  %10616 = vmatprep.subr.bf16.mxu1 %v11469_v38  ;;  %v5532_v61 = vld [vmem:[#allocation2 + $0x9c] sm:$0xf]  ;;  %v5801_v57 = vor.u32 %v5800_v58, %v13539_v48  ;;  %v5842_v10 = vshll.u32 %v13035_v33, 16  ;;  %v5846_v39 = vshrl.u32 %v13035_v33, 16 }
 0x474   : > { %v9225_v43 = vcombine.low %v5725_v35, %v5735_v32  ;;  %v9226_v50 = vcombine.low %v5749_v20, %v5759_v23  ;;  %v5768_v25 = vrot.slane %v5767_v37, 4  ;;  %v5791_v28 = vor.u32 %v5790_v54, %v5787_v44 }
 0x475   : > { %v5783_v36 = vsel %vm12221_vm2, %v5778_v13, %v5782_v21  ;;  %v5804_v52 = vshll.u32 %v11529_v24, 16  ;;  %v5833_v41 = vshrl.u32 %v5532_v61, 16  ;;  %v5836_v47 = vshll.u32 %v5532_v61, 16  ;;  %v5535_v13 = vld [vmem:[#allocation2 + $0xa8] sm:$0xf] }
 0x476   : > { %10617 = vmatpush3.bf16.msra.mxu1 %v11469_v38  ;;  %v5811_v26 = vrot.slane %v5809_v27, 4  ;;  %v5814_v0 = vrot.slane %v5812_v16, 5  ;;  %v13567_v33 = vrot.slane %v5818_v34, 5  ;;  %v5824_v58 = vrot.slane %v5822_v19, 4  ;;  %v13577_v27 = vld [vmem:[%s14056_s3 + $0x180] sm:$0xff]  }
 0x477   : > { %10618 = vmatprep.subr.bf16.mxu1 %v11470_v2  ;;  %v5802_v1 = vrot.slane %v5801_v57, 4  ;;  %v13569_v38 = vrot.slane %v5842_v10, 5  ;;  %v5848_v35 = vrot.slane %v5846_v39, 4  ;;  %v5773_v37 = vsel %vm12221_vm2, %v5768_v25, %v13445_v12  ;;  %v11530_v19 = vld [vmem:[#allocation2 + $0xac] sm:$0xf] }
 0x478   : > { %v5792_v44 = vrot.slane %v5791_v28, 4  ;;  %v9227_v54 = vcombine.low %v5773_v37, %v5783_v36  ;;  %v5806_v32 = vrot.slane %v5804_v52, 5  ;;  %v5835_v20 = vrot.slane %v5833_v41, 4  ;;  %v5538_v12 = vld [vmem:[#allocation2 + $0xb4] sm:$0xf] }
 0x479   : > { %10587 = vmatmul.mubr.bf16.gmra.mrb[12].mxu1 %v9225_v43  ;;  %v5838_v23 = vrot.slane %v5836_v47, 5  ;;  %v5815_v16 = vor.u32 %v5814_v0, %v5811_v26  ;;  %v5825_v34 = vor.u32 %v5824_v58, %v13567_v33  ;;  %v5866_v61 = vshll.u32 %v11530_v19, 16  ;;  %v11532_v52 = vld [vmem:[#allocation2 + $0xa4] sm:$0x1] }
 0x47a   : > { %10590 = vmatprep.mubr.bf16.mxu1 %v9226_v50  ;;  %10619 = vmatpush3.bf16.msra.mxu1 %v11470_v2  ;;  %v5870_v21 = vshrl.u32 %v11530_v19, 16  ;;  %v5807_v2 = vsel %vm12221_vm2, %v5802_v1, %v5806_v32  ;;  %v5849_v57 = vor.u32 %v5848_v35, %v13569_v38  ;;  %v5890_v10 = vshll.u32 %v13062_v62, 16  ;;  %v11531_v50 = vld [vmem:[#allocation2 + $0x98] sm:$0x1] }
 0x47b   : > { %10620 = vmatprep.subr.bf16.mxu1 %v11471_v17  ;;  %v5894_v39 = vshrl.u32 %v13062_v62, 16  ;;  %v5797_v43 = vsel %vm12221_vm2, %v5792_v44, %v13539_v48  ;;  %v5828_v25 = vshll.u32 %v11531_v50, 16  ;;  %v5857_v28 = vshrl.u32 %v5535_v13, 16 }
 0x47c   : > { %v5860_v36 = vshll.u32 %v5535_v13, 16  ;;  %v5839_v24 = vor.u32 %v5838_v23, %v5835_v20  ;;  %v5852_v41 = vshll.u32 %v11532_v52, 16  ;;  %v5881_v47 = vshrl.u32 %v5538_v12, 16 }
 0x47d   : > { %v5884_v26 = vshll.u32 %v5538_v12, 16  ;;  %v9228_v0 = vcombine.low %v5797_v43, %v5807_v2  ;;  %v5826_v58 = vrot.slane %v5825_v34, 4  ;;  %v5868_v1 = vrot.slane %v5866_v61, 5  ;;  %v5541_v12 = vld [vmem:[#allocation2 + $0xc0] sm:$0xf] }
 0x47e   : > { %10621 = vmatpush3.bf16.msra.mxu1 %v11471_v17  ;;  %v5872_v62 = vrot.slane %v5870_v21, 4  ;;  %v5816_v35 = vrot.slane %v5815_v16, 4  ;;  %v5850_v37 = vrot.slane %v5849_v57, 4  ;;  %v5892_v48 = vrot.slane %v5890_v10, 5  ;;  %v11533_v61 = vld [vmem:[#allocation2 + $0xc4] sm:$0xf] }
 0x47f   : > { %10654 = vmatprep.subr.bf16.mxu1 %v13577_v27  ;;  %v5896_v44 = vrot.slane %v5894_v39, 4  ;;  %v5830_v32 = vrot.slane %v5828_v25, 5  ;;  %v5859_v13 = vrot.slane %v5857_v28, 4  ;;  %v5862_v17 = vrot.slane %v5860_v36, 5  ;;  %v11534_v43 = vld [vmem:[#allocation2 + $0xb0] sm:$0x1] }
 0x480   : > { %v5840_v20 = vrot.slane %v5839_v24, 4  ;;  %v5854_v23 = vrot.slane %v5852_v41, 5  ;;  %v5883_v19 = vrot.slane %v5881_v47, 4  ;;  %v5886_v50 = vrot.slane %v5884_v26, 5  ;;  %v11535_v47 = vld [vmem:[#allocation2 + $0xbc] sm:$0x1] }
 0x481   : > { %10591 = vmatmul.mubr.bf16.gmra.mrb[16].mxu1 %v9227_v54  ;;  %v5831_v2 = vsel %vm12221_vm2, %v5826_v58, %v5830_v32  ;;  %v5873_v34 = vor.u32 %v5872_v62, %v5868_v1  ;;  %v5914_v21 = vshll.u32 %v11533_v61, 16  ;;  %v5918_v54 = vshrl.u32 %v11533_v61, 16  ;;  %v11537_v61 = vld [vmem:[#allocation2 + $0xc8] sm:$0x1] }
 0x482   : > { %10594 = vmatprep.mubr.bf16.mxu1 %v9228_v0  ;;  %v5821_v16 = vsel %vm12221_vm2, %v5816_v35, %v13567_v33  ;;  %v5855_v57 = vsel %vm12221_vm2, %v5850_v37, %v5854_v23  ;;  %v5897_v10 = vor.u32 %v5896_v44, %v5892_v48  ;;  %v5863_v39 = vor.u32 %v5862_v17, %v5859_v13 }
 0x483   : > { %v5876_v25 = vshll.u32 %v11534_v43, 16  ;;  %v5905_v28 = vshrl.u32 %v5541_v12, 16  ;;  %v5908_v36 = vshll.u32 %v5541_v12, 16  ;;  %v9229_v24 = vcombine.low %v5821_v16, %v5831_v2 }
 0x484   : > { %v5845_v52 = vsel %vm12221_vm2, %v5840_v20, %v13569_v38  ;;  %v5887_v41 = vor.u32 %v5886_v50, %v5883_v19  ;;  %v5900_v26 = vshll.u32 %v11535_v47, 16  ;;  %v5874_v58 = vrot.slane %v5873_v34, 4  ;;  %v11536_v19 = vld [vmem:[#allocation2 + $0x10] sm:$0xf] }
 0x485   : > { %v9230_v0 = vcombine.low %v5845_v52, %v5855_v57  ;;  %v5916_v33 = vrot.slane %v5914_v21, 5  ;;  %v5920_v62 = vrot.slane %v5918_v54, 4  ;;  %v5898_v35 = vrot.slane %v5897_v10, 4 }
 0x486   : > { %v5864_v37 = vrot.slane %v5863_v39, 4  ;;  %v5878_v44 = vrot.slane %v5876_v25, 5  ;;  %v5907_v32 = vrot.slane %v5905_v28, 4  ;;  %v5910_v13 = vrot.slane %v5908_v36, 5  ;;  %v6250_v28 = vld [vmem:[#allocation2 + $0xc] sm:$0xe] }
 0x487   : > { %v5888_v17 = vrot.slane %v5887_v41, 4  ;;  %v5902_v23 = vrot.slane %v5900_v26, 5  ;;  %v5921_v38 = vor.u32 %v5920_v62, %v5916_v33  ;;  %v6316_v50 = vrot.slane %v11536_v19, 5  ;;  %v14207_v19 = vld [vmem:[#allocation6_spill] sm:$0xff] }
 0x488   : > { %v5879_v12 = vsel %vm12221_vm2, %v5874_v58, %v5878_v44  ;;  %v5869_v2 = vsel %vm12221_vm2, %v5864_v37, %v5868_v1  ;;  %v5911_v34 = vor.u32 %v5910_v13, %v5907_v32  ;;  %v5924_v21 = vshll.u32 %v11537_v61, 16 }
 0x489   : > { %10595 = vmatmul.mubr.bf16.gmra.mrb[20].mxu1 %v9229_v24  ;;  %v5903_v20 = vsel %vm12221_vm2, %v5898_v35, %v5902_v23  ;;  %v9231_v54 = vcombine.low %v5869_v2, %v5879_v12  ;;  %v5893_v16 = vsel %vm12221_vm2, %v5888_v17, %v5892_v48  ;;  %v5922_v10 = vrot.slane %v5921_v38, 4  ;;  %v11538_v24 = vld [vmem:[#allocation2 + $0x1c] sm:$0xf] }
 0x48a   : > { %10598 = vmatprep.mubr.bf16.mxu1 %v9230_v0  ;;  %v9232_v57 = vcombine.low %v5893_v16, %v5903_v20  ;;  %v6318_v39 = vrot.slane %v6316_v50, 4  ;;  %v5912_v43 = vrot.slane %v5911_v34, 4  ;;  %v5926_v25 = vrot.slane %v5924_v21, 5  ;;  %v11475_v23 = vld [vmem:[%s14056_s3 + $0x198] sm:$0xff]   ;;  %v14204_v20 = vld [vmem:[#allocation4_spill] sm:$0xff]  ;;  %v14212_v21 = vld [vmem:[#allocation9_spill] sm:$0xff] }
 0x48b   : > { %v6319_v36 = vrot.slane %v13148_v22, 5  ;;  %v6323_v52 = vrot.slane %v11538_v24, 5  ;;  %v9242_v41 = vrot.slane %v6250_v28, 9  ;;  %v6251_v22 = vld [vmem:[#allocation2 + $0x18] sm:$0xe]  ;;  %v6326_v35 = vrot.slane %v13156_v15, 5 }
 0x48c   : > { %v5927_v1 = vsel %vm12221_vm2, %v5922_v10, %v5926_v25  ;;  %v5917_v48 = vsel %vm12221_vm2, %v5912_v43, %v5916_v33  ;;  %v9243_v37 = vrot.slane %v6251_v22, 9  ;;  %v11473_v33 = vld [vmem:[%s14056_s3 + $0x188] sm:$0xff]   ;;  %v14200_v17 = vcombine.low %v12938_v5, %v12942_v18  ;;  %v11474_v15 = vld [vmem:[%s14056_s3 + $0x190] sm:$0xff]   ;;  %v11476_v18 = vld [vmem:[%s14056_s3 + $0x1a0] sm:$0xff]  }
 0x48d   : > { %v6320_v47 = vsel %vm12686_vm13, %v6318_v39, %v6319_v36  ;;  %v9233_v26 = vcombine.low %v5917_v48, %v5927_v1  ;;  %v6317_v0 = vsel %vm12686_vm13, %v9242_v41, %v6316_v50  ;;  %v6325_v62 = vrot.slane %v6323_v52, 4  ;;  %v14203_v38 = vld [vmem:[#allocation3_spill] sm:$0xff]  ;;  %v14210_v34 = vld [vmem:[#allocation8_spill] sm:$0xff]  ;;  %v14215_v10 = vld [vmem:[#allocation10_spill] sm:$0xff] }
 0x48e   : > { %v9274_v58 = vcombine.low %v6317_v0, %v6320_v47  ;;  %v6324_v32 = vsel %vm12686_vm13, %v9243_v37, %v6323_v52  ;;  %v14201_v12 = vcombine.low %v12952_v29, %v12959_v4  ;;  %v14202_v5 = vcombine.low %v12963_v6, %v12978_v8  ;;  %v14206_v4 = vld [vmem:[#allocation5_spill] sm:$0xff]  ;;  %v11478_v8 = vld [vmem:[%s14056_s3 + $0x1b0] sm:$0xff]   ;;  %v11479_v50 = vld [vmem:[%s14056_s3 + $0x1b8] sm:$0xff]  }
 0x48f   : > { %v6327_v44 = vsel %vm12686_vm13, %v6325_v62, %v6326_v35  ;;  %v14205_v29 = vcombine.low %v14203_v38, %v14204_v20  ;;  %v14208_v6 = vcombine.low %v14206_v4, %v14207_v19  ;;  %v14209_v2 = vld [vmem:[#allocation7_spill] sm:$0xff]  ;;  %v14216_v39 = vld [vmem:[#allocation12_spill] sm:$0xff]  ;;  %v14218_v25 = vld [vmem:[#allocation13_spill] sm:$0xff] }
 0x490   : > { %v9275_v13 = vcombine.low %v6324_v32, %v6327_v44  ;;  %v14211_v61 = vcombine.low %v14209_v2, %v14210_v34  ;;  %v14217_v43 = vcombine.low %v14215_v10, %v14216_v39  ;;  %v14219_v28 = vld [vmem:[#allocation14_spill] sm:$0xff]  ;;  %v14221_v1 = vld [vmem:[#allocation15_spill] sm:$0xff]  ;;  %v14222_v24 = vld [vmem:[#allocation16_spill] sm:$0xff]  ;;  %v7193_v34 = vshll.u32 %v13257_v59, 16 }
 0x491   : > { %10599 = vmatmul.mubr.bf16.gmra.mrb[24].mxu1 %v9231_v54  ;;  %v14213_v54 = vld [vmem:[#allocation11_spill] sm:$0xff]  ;;  %v14220_v36 = vcombine.low %v14218_v25, %v14219_v28  ;;  %v14223_v52 = vcombine.low %v14221_v1, %v14222_v24  ;;  %v14224_v41 = vld [vmem:[#allocation17_spill] sm:$0xff]  ;;  %v14225_v47 = vld [vmem:[#allocation18_spill] sm:$0xff] }
 0x492   : > { %10602 = vmatprep.mubr.bf16.mxu1 %v9232_v57  ;;  %v14214_v16 = vcombine.low %v14212_v21, %v14213_v54  ;;  %v11482_v57 = vld [vmem:[%s14056_s3 + $0x1c0] sm:$0xff]   ;;  %v14226_v48 = vcombine.low %v14224_v41, %v14225_v47  ;;  %v14230_v62 = vld [vmem:[#allocation21_spill] sm:$0xff]  ;;  %v14231_v22 = vld [vmem:[#allocation22_spill] sm:$0xff]  ;;  %v7195_v39 = vrot.slane %v7193_v34, 5 }
 0x493   : > { %v14228_v0 = vld [vmem:[#allocation20_spill] sm:$0xff]  ;;  %v14232_v35 = vcombine.low %v14230_v62, %v14231_v22  ;;  %v11480_v37 = vld [vmem:[#allocation2 + $0x18] sm:$0xff]   ;;  %v11497_v20 = vld [vmem:[%s14056_s3 + $0x1e8] sm:$0xff]  }
 0x494   : > { %v14233_v44 = vld [vmem:[#allocation23_spill] sm:$0xff]  ;;  %v14234_v32 = vld [vmem:[#allocation24_spill] sm:$0xff]  ;;  %v11500_v4 = vld [vmem:[%s14056_s3 + $0x1f0] sm:$0xff]  }
 0x495   : > { %v11487_v38 = vld [vmem:[#allocation2 + $0x54] sm:$0xff]   ;;  %v11490_v19 = vld [vmem:[#allocation2 + $0x6c] sm:$0xff]   ;;  %v7138_v21 = vld [vmem:[#allocation2 + $0x24] sm:$0xf] }
 0x496   : > { %v7135_v2 = vld [vmem:[#allocation2 + $0x18] sm:$0xf]  ;;  %v11493_v54 = vld [vmem:[#allocation2 + $0x84] sm:$0xff]   ;;  %v11495_v10 = vld [vmem:[#allocation2 + $0x90] sm:$0xff]   ;;  %v7208_v25 = vshrl.u32 %v7138_v21, 16  ;;  %v7211_v28 = vshll.u32 %v7138_v21, 16 }
 0x497   : > { %v14236_v24 = vld [vmem:[#allocation26_spill] sm:$0xff]  ;;  %v14237_v62 = vld [vmem:[#allocation25_spill] sm:$0xff] }
 0x498   : > { %v7213_v47 = vrot.slane %v7211_v28, 5  ;;  %v7203_v22 = vshll.u32 %v14237_v62, 16 }
 0x499   : > { %10603 = vmatmul.mubr.bf16.gmra.mrb[28].mxu1 %v9233_v26  ;;  %v14227_v26 = vld [vmem:[#allocation19_spill] sm:$0xff] }
 0x49a   : > { %10622 = vmatprep.mubr.bf16.mxu1 %v9274_v58  ;;  %v14229_v58 = vcombine.low %v14227_v26, %v14228_v0  ;;  %v7141_v26 = vld [vmem:[#allocation2 + $0x30] sm:$0xf]  ;;  %v11496_v0 = vld [vmem:[#allocation2 + $0x9c] sm:$0xff]  }
 0x4a1   : > { %10623 = vmatmul.mubr.bf16.vlgmr.msra.gmra.mrb[0].mxu1 %v9275_v13  ;;  %v14235_v13 = vcombine.low %v14233_v44, %v14234_v32  ;;  %v7232_v44 = vshrl.u32 %v7141_v26, 16 }
 0x4a2   : > { %10626 = vmatprep.mubr.bf16.mxu1 %v14200_v17  ;;  %10655 = vmatpush3.bf16.msra.mxu1 %v13577_v27  ;;  %v11477_v27 = vld [vmem:[%s14056_s3 + $0x1a8] sm:$0xff]  }
 0x4a3   : > { %10656 = vmatprep.subr.bf16.mxu1 %v11473_v33  ;;  %v11485_v17 = vld [vmem:[%s14056_s3 + $0x1c8] sm:$0xff]  }
 0x4a6   : > { %10657 = vmatpush3.bf16.msra.mxu1 %v11473_v33  ;;  %v11481_v33 = vld [vmem:[#allocation2 + $0x24] sm:$0xff]  }
 0x4a7   : > { %10658 = vmatprep.subr.bf16.mxu1 %v11474_v15 }
 0x4a9   : > { %10627 = vmatmul.mubr.bf16.gmra.mrb[4].mxu1 %v14201_v12  ;;  %v11484_v12 = vld [vmem:[#allocation2 + $0x3c] sm:$0xff]  }
 0x4aa   : > { %10630 = vmatprep.mubr.bf16.mxu1 %v14202_v5  ;;  %10659 = vmatpush3.bf16.msra.mxu1 %v11474_v15  ;;  %v11483_v15 = vld [vmem:[#allocation2 + $0x30] sm:$0xff]   ;;  %v11491_v5 = vld [vmem:[%s14056_s3 + $0x1d8] sm:$0xff]  }
 0x4ab   : > { %10660 = vmatprep.subr.bf16.mxu1 %v11475_v23 }
 0x4ae   : > { %10661 = vmatpush3.bf16.msra.mxu1 %v11475_v23  ;;  %v11488_v23 = vld [vmem:[%s14056_s3 + $0x1d0] sm:$0xff]  }
 0x4af   : > { %10662 = vmatprep.subr.bf16.mxu1 %v11476_v18 }
 0x4b1   : > { %10631 = vmatmul.mubr.bf16.gmra.mrb[8].mxu1 %v14205_v29  ;;  %v11489_v29 = vld [vmem:[#allocation2 + $0x60] sm:$0xff]  }
 0x4b2   : > { %10634 = vmatprep.mubr.bf16.mxu1 %v14208_v6  ;;  %10663 = vmatpush3.bf16.msra.mxu1 %v11476_v18  ;;  %v11486_v18 = vld [vmem:[#allocation2 + $0x48] sm:$0xff]   ;;  %v11503_v6 = vld [vmem:[%s14056_s3 + $0x1f8] sm:$0xff]  }
 0x4b3   : > { %10664 = vmatprep.subr.bf16.mxu1 %v11477_v27 }
 0x4b6   : > { %10665 = vmatpush3.bf16.msra.mxu1 %v11477_v27  ;;  %v11494_v27 = vld [vmem:[%s14056_s3 + $0x1e0] sm:$0xff]  }
 0x4b7   : > { %10666 = vmatprep.subr.bf16.mxu1 %v11478_v8 }
 0x4b9   : > { %10635 = vmatmul.mubr.bf16.gmra.mrb[12].mxu1 %v14211_v61  ;;  %v7197_v61 = vshrl.u32 %v13257_v59, 16  ;;  %v7210_v59 = vrot.slane %v7208_v25, 4 }
 0x4ba   : > { %10638 = vmatprep.mubr.bf16.mxu1 %v14214_v16  ;;  %10667 = vmatpush3.bf16.msra.mxu1 %v11478_v8  ;;  %v11492_v8 = vld [vmem:[#allocation2 + $0x78] sm:$0xff]   ;;  %v7184_v16 = vshrl.u32 %v7135_v2, 16 }
 0x4bb   : > { %10668 = vmatprep.subr.bf16.mxu1 %v11479_v50 }
 0x4be   : > { %10669 = vmatpush3.bf16.msra.mxu1 %v11479_v50  ;;  %v13712_v50 = vld [vmem:[%s14056_s3 + $0x200] sm:$0xff]  }
 0x4bf   : > { %10702 = vmatprep.subr.bf16.mxu1 %v11482_v57 }
 0x4c1   : > { %10639 = vmatmul.mubr.bf16.gmra.mrb[16].mxu1 %v14217_v43  ;;  %v7199_v43 = vrot.slane %v7197_v61, 4  ;;  %v11499_v61 = vld [vmem:[#allocation2 + $0xb4] sm:$0xff]  }
 0x4c2   : > { %10642 = vmatprep.mubr.bf16.mxu1 %v14220_v36  ;;  %v7186_v36 = vrot.slane %v7184_v16, 4  ;;  %v14240_v16 = vld [vmem:[#allocation29_spill] sm:$0xff] }
 0x4c3   : > { %v7200_v41 = vor.u32 %v7199_v43, %v7195_v39  ;;  %v11501_v43 = vld [vmem:[#allocation2 + $0xc0] sm:$0xff]  }
 0x4c5   : > { %v7201_v32 = vrot.slane %v7200_v41, 4 }
 0x4c9   : > { %10643 = vmatmul.mubr.bf16.gmra.mrb[20].mxu1 %v14223_v52  ;;  %v7217_v52 = vshll.u32 %v14236_v24, 16 }
 0x4ca   : > { %10646 = vmatprep.mubr.bf16.mxu1 %v14226_v48  ;;  %v7221_v48 = vshrl.u32 %v14236_v24, 16 }
 0x4d1   : > { %10647 = vmatmul.mubr.bf16.gmra.mrb[24].mxu1 %v14229_v58 }
 0x4d2   : > { %10650 = vmatprep.mubr.bf16.mxu1 %v14232_v35  ;;  %v11498_v35 = vld [vmem:[#allocation2 + $0xa8] sm:$0xff]  }
 0x4d9   : > { %10651 = vmatmul.mubr.bf16.gmra.mrb[28].mxu1 %v14235_v13  ;;  %v7214_v13 = vor.u32 %v7213_v47, %v7210_v59  ;;  %v14242_v47 = vld [vmem:[#allocation31_spill] sm:$0xff] }
 0x4da   : > { %10670 = vmatprep.mubr.bf16.mxu1 %v11480_v37  ;;  %v13720_v37 = vrot.slane %v7217_v52, 5  ;;  %v7147_v52 = vld [vmem:[#allocation2 + $0x48] sm:$0xf]  ;;  %v7293_v62 = vshrl.u32 %v14242_v47, 16 }
 0x4e1   : > { %10671 = vmatmul.mubr.bf16.vlgmr.msra.gmra.mrb[0].mxu1 %v11481_v33  ;;  %v7223_v33 = vrot.slane %v7221_v48, 4  ;;  %v7289_v48 = vshll.u32 %v14242_v47, 16 }
 0x4e2   : > { %10674 = vmatprep.mubr.bf16.mxu1 %v11483_v15  ;;  %10703 = vmatpush3.bf16.msra.mxu1 %v11482_v57  ;;  %v7187_v57 = vshll.u32 %v7135_v2, 16  ;;  %v14238_v15 = vld [vmem:[#allocation27_spill] sm:$0xff] }
 0x4e3   : > { %10704 = vmatprep.subr.bf16.mxu1 %v11485_v17 }
 0x4e4   : > { %v7189_v1 = vrot.slane %v7187_v57, 5  ;;  %v7251_v57 = vshll.u32 %v14240_v16, 16 }
 0x4e6   : > { %10705 = vmatpush3.bf16.msra.mxu1 %v11485_v17  ;;  %v7190_v58 = vor.u32 %v7189_v1, %v7186_v36  ;;  %v7235_v17 = vshll.u32 %v7141_v26, 16  ;;  %v14241_v36 = vld [vmem:[#allocation30_spill] sm:$0xff] }
 0x4e7   : > { %10706 = vmatprep.subr.bf16.mxu1 %v11488_v23  ;;  %v7265_v1 = vshll.u32 %v14241_v36, 16  ;;  %v7269_v24 = vshrl.u32 %v14241_v36, 16  ;;  %v13744_v26 = vld [vmem:[#allocation2 + $0xd0] sm:$0xf] }
 0x4e9   : > { %10675 = vmatmul.mubr.bf16.gmra.mrb[4].mxu1 %v11484_v12  ;;  %v7245_v12 = vshrl.u32 %v14238_v15, 16 }
 0x4ea   : > { %10678 = vmatprep.mubr.bf16.mxu1 %v11486_v18  ;;  %10707 = vmatpush3.bf16.msra.mxu1 %v11488_v23  ;;  %v7241_v23 = vshll.u32 %v14238_v15, 16  ;;  %v7205_v18 = vrot.slane %v7203_v22, 5  ;;  %v7904_v22 = vld [vmem:[#allocation2 + $0xcc] sm:$0xe] }
 0x4eb   : > { %10708 = vmatprep.subr.bf16.mxu1 %v11491_v5  ;;  %v7247_v34 = vrot.slane %v7245_v12, 4  ;;  %v9393_v15 = vrot.slane %v7904_v22, 9  ;;  %v13754_v12 = vrot.slane %v7265_v1, 5 }
 0x4ec   : > { %v13730_v2 = vrot.slane %v7241_v23, 5 }
 0x4ee   : > { %10709 = vmatpush3.bf16.msra.mxu1 %v11491_v5  ;;  %v7191_v5 = vrot.slane %v7190_v58, 4  ;;  %v7248_v58 = vor.u32 %v7247_v34, %v13730_v2 }
 0x4ef   : > { %10710 = vmatprep.subr.bf16.mxu1 %v11494_v27 }
 0x4f0   : > { %v7196_v21 = vsel %vm12221_vm2, %v7191_v5, %v7195_v39  ;;  %v7271_v5 = vrot.slane %v7269_v24, 4  ;;  %v7249_v1 = vrot.slane %v7248_v58, 4  ;;  %v14244_v24 = vld [vmem:[#allocation34_spill] sm:$0xff] }
 0x4f1   : > { %10679 = vmatmul.mubr.bf16.gmra.mrb[8].mxu1 %v11487_v38 }
 0x4f2   : > { %10682 = vmatprep.mubr.bf16.mxu1 %v11489_v29  ;;  %10711 = vmatpush3.bf16.msra.mxu1 %v11494_v27  ;;  %v14239_v27 = vld [vmem:[#allocation28_spill] sm:$0xff]  ;;  %v7144_v29 = vld [vmem:[#allocation2 + $0x3c] sm:$0xf]  ;;  %v7272_v47 = vor.u32 %v7271_v5, %v13754_v12 }
 0x4f3   : > { %10712 = vmatprep.subr.bf16.mxu1 %v11497_v20  ;;  %v7227_v38 = vshll.u32 %v14239_v27, 16  ;;  %v7259_v28 = vshll.u32 %v7144_v29, 16  ;;  %v11502_v27 = vld [vmem:[#allocation2 + $0xcc] sm:$0xff]  }
 0x4f5   : > { %v7261_v23 = vrot.slane %v7259_v28, 5 }
 0x4f6   : > { %10713 = vmatpush3.bf16.msra.mxu1 %v11497_v20  ;;  %v7234_v20 = vrot.slane %v7232_v44, 4 }
 0x4f7   : > { %10714 = vmatprep.subr.bf16.mxu1 %v11500_v4 }
 0x4f9   : > { %10683 = vmatmul.mubr.bf16.gmra.mrb[12].mxu1 %v11490_v19  ;;  %v13727_v19 = vrot.slane %v7214_v13, 4  ;;  %v14243_v13 = vld [vmem:[#allocation37_spill] sm:$0xff] }
 0x4fa   : > { %10686 = vmatprep.mubr.bf16.mxu1 %v11492_v8  ;;  %10715 = vmatpush3.bf16.msra.mxu1 %v11500_v4  ;;  %v7206_v4 = vsel %vm12221_vm2, %v7201_v32, %v7205_v18  ;;  %v7237_v8 = vrot.slane %v7235_v17, 5  ;;  %v7317_v17 = vshrl.u32 %v14243_v13, 16 }
 0x4fb   : > { %10716 = vmatprep.subr.bf16.mxu1 %v11503_v6  ;;  %v9354_v25 = vcombine.low %v7196_v21, %v7206_v4  ;;  %v7220_v41 = vsel %vm12221_vm2, %v13727_v19, %v13720_v37  ;;  %v7295_v19 = vrot.slane %v7293_v62, 4 }
 0x4fc   : > { %v7238_v59 = vor.u32 %v7237_v8, %v7234_v20  ;;  %v7283_v20 = vshll.u32 %v7147_v52, 16  ;;  %v7319_v16 = vrot.slane %v7317_v17, 4 }
 0x4fe   : > { %10717 = vmatpush3.bf16.msra.mxu1 %v11503_v6  ;;  %v7224_v6 = vor.u32 %v7223_v33, %v13720_v37  ;;  %v7150_v37 = vld [vmem:[#allocation2 + $0x54] sm:$0xf]  ;;  %v7313_v33 = vshll.u32 %v14243_v13, 16  ;;  %v7239_v36 = vrot.slane %v7238_v59, 4 }
 0x4ff   : > { %10750 = vmatprep.subr.bf16.mxu1 %v13712_v50  ;;  %v7307_v8 = vshll.u32 %v7150_v37, 16 }
 0x500   : > { %v7225_v39 = vrot.slane %v7224_v6, 4  ;;  %v7304_v6 = vshrl.u32 %v7150_v37, 16  ;;  %v13766_v21 = vrot.slane %v7313_v33, 5  ;;  %v11539_v33 = vld [vmem:[#allocation2 + $0x50] sm:$0x1] }
 0x501   : > { %10687 = vmatmul.mubr.bf16.gmra.mrb[16].mxu1 %v11493_v54  ;;  %v13734_v54 = vrot.slane %v7227_v38, 5  ;;  %v7280_v38 = vshrl.u32 %v7147_v52, 16  ;;  %v7275_v52 = vshll.u32 %v14244_v24, 16  ;;  %v7299_v17 = vshll.u32 %v11539_v33, 16 }
 0x502   : > { %10690 = vmatprep.mubr.bf16.mxu1 %v11495_v10  ;;  %v7256_v10 = vshrl.u32 %v7144_v29, 16  ;;  %v13756_v29 = vrot.slane %v7289_v48, 5  ;;  %v7285_v48 = vrot.slane %v7283_v20, 5  ;;  %v7306_v22 = vrot.slane %v7304_v6, 4 }
 0x503   : > { %v7230_v28 = vsel %vm12221_vm2, %v7225_v39, %v13734_v54  ;;  %v7320_v37 = vor.u32 %v7319_v16, %v13766_v21  ;;  %v14245_v54 = vld [vmem:[#allocation40_spill] sm:$0xff]  ;;  %v7277_v5 = vrot.slane %v7275_v52, 5 }
 0x504   : > { %v7258_v32 = vrot.slane %v7256_v10, 4  ;;  %v7153_v10 = vld [vmem:[#allocation2 + $0x60] sm:$0xf]  ;;  %v7296_v62 = vor.u32 %v7295_v19, %v13756_v29  ;;  %v7337_v39 = vshll.u32 %v14245_v54, 16  ;;  %v7341_v59 = vshrl.u32 %v14245_v54, 16 }
 0x505   : > { %v7331_v13 = vshll.u32 %v7153_v10, 16  ;;  %v9355_v58 = vcombine.low %v7220_v41, %v7230_v28  ;;  %v11505_v41 = vld [vmem:[%s14056_s3 + $0x208] sm:$0xff]  }
 0x506   : > { %v7262_v51 = vor.u32 %v7261_v23, %v7258_v32  ;;  %v7244_v32 = vsel %vm12221_vm2, %v7239_v36, %v13730_v2  ;;  %v7273_v23 = vrot.slane %v7272_v47, 4  ;;  %v7297_v20 = vrot.slane %v7296_v62, 4  ;;  %v7159_v62 = vld [vmem:[#allocation2 + $0x78] sm:$0xf] }
 0x507   : > { %v7321_v2 = vrot.slane %v7320_v37, 4  ;;  %v7333_v16 = vrot.slane %v7331_v13, 5  ;;  %v7301_v36 = vrot.slane %v7299_v17, 5  ;;  %v7379_v33 = vshll.u32 %v7159_v62, 16 }
 0x509   : > { %10691 = vmatmul.mubr.bf16.gmra.mrb[20].mxu1 %v11496_v0  ;;  %v13746_v0 = vld [vmem:[#allocation2 + $0xd4] sm:$0x1] }
 0x50a   : > { %10694 = vmatprep.mubr.bf16.mxu1 %v11498_v35  ;;  %v8060_v35 = vrot.slane %v13744_v26, 5  ;;  %v8063_v44 = vrot.slane %v13746_v0, 5 }
 0x50c   : > { %v8062_v18 = vrot.slane %v8060_v35, 4  ;;  %v13760_v4 = vsel %vm12686_vm13, %v9393_v15, %v8060_v35  ;;  %v7309_v35 = vrot.slane %v7307_v8, 5  ;;  %v7263_v15 = vrot.slane %v7262_v51, 4  ;;  %v7156_v8 = vld [vmem:[#allocation2 + $0x6c] sm:$0xf] }
 0x50e   : > { %v13764_v34 = vsel %vm12686_vm13, %v8062_v18, %v8063_v44  ;;  %v7328_v44 = vshrl.u32 %v7153_v10, 16  ;;  %v14246_v18 = vld [vmem:[#allocation38_spill] sm:$0xff]  ;;  %v7310_v19 = vor.u32 %v7309_v35, %v7306_v22  ;;  %v13788_v10 = vrot.slane %v7337_v39, 5 }
 0x50f   : > { %v7268_v51 = vsel %vm12221_vm2, %v7263_v15, %v13754_v12  ;;  %v7278_v22 = vsel %vm12221_vm2, %v7273_v23, %v7277_v5  ;;  %v11506_v12 = vld [vmem:[%s14056_s3 + $0x210] sm:$0xff]   ;;  %v11541_v23 = vld [vmem:[#allocation2 + $0x7c] sm:$0xf] }
 0x510   : > { %v7330_v6 = vrot.slane %v7328_v44, 4  ;;  %v7302_v44 = vsel %vm12221_vm2, %v7297_v20, %v7301_v36  ;;  %v7311_v37 = vrot.slane %v7310_v19, 4  ;;  %v7385_v5 = vshll.u32 %v11541_v23, 16 }
 0x511   : > { %10695 = vmatmul.mubr.bf16.gmra.mrb[24].mxu1 %v11499_v61  ;;  %v7253_v61 = vrot.slane %v7251_v57, 5  ;;  %v7282_v57 = vrot.slane %v7280_v38, 4 }
 0x512   : > { %10698 = vmatprep.mubr.bf16.mxu1 %v11501_v43  ;;  %v9425_v43 = vcombine.low %v13760_v4, %v13764_v34  ;;  %v7334_v54 = vor.u32 %v7333_v16, %v7330_v6  ;;  %v7316_v20 = vsel %vm12221_vm2, %v7311_v37, %v13766_v21  ;;  %v11507_v16 = vld [vmem:[%s14056_s3 + $0x218] sm:$0xff]  }
 0x513   : > { %v7286_v38 = vor.u32 %v7285_v48, %v7282_v57  ;;  %v7352_v57 = vshrl.u32 %v7156_v8, 16  ;;  %v7355_v48 = vshll.u32 %v7156_v8, 16 }
 0x514   : > { %v7335_v8 = vrot.slane %v7334_v54, 4  ;;  %v11544_v54 = vld [vmem:[#allocation2 + $0x94] sm:$0xf] }
 0x515   : > { %v7287_v35 = vrot.slane %v7286_v38, 4  ;;  %v7354_v17 = vrot.slane %v7352_v57, 4  ;;  %v7357_v15 = vrot.slane %v7355_v48, 5 }
 0x517   : > { %v7292_v38 = vsel %vm12221_vm2, %v7287_v35, %v13756_v29  ;;  %v7381_v29 = vrot.slane %v7379_v33, 5 }
 0x518   : > { %v9358_v19 = vcombine.low %v7292_v38, %v7302_v44  ;;  %v11508_v44 = vld [vmem:[%s14056_s3 + $0x220] sm:$0xff]  }
 0x519   : > { %10699 = vmatmul.mubr.bf16.gmra.mrb[28].mxu1 %v11502_v27  ;;  %v7323_v27 = vshll.u32 %v14246_v18, 16  ;;  %v7389_v18 = vshrl.u32 %v11541_v23, 16  ;;  %v11545_v23 = vld [vmem:[#allocation2 + $0x80] sm:$0x1] }
 0x51a   : > { %10718 = vmatprep.mubr.bf16.mxu1 %v9354_v25  ;;  %v7254_v25 = vsel %vm12221_vm2, %v7249_v1, %v7253_v61  ;;  %v7343_v61 = vrot.slane %v7341_v59, 4  ;;  %v14247_v1 = vld [vmem:[#allocation43_spill] sm:$0xff] }
 0x51b   : > { %v9356_v28 = vcombine.low %v7244_v32, %v7254_v25  ;;  %v7361_v24 = vshll.u32 %v14247_v1, 16  ;;  %v7365_v52 = vshrl.u32 %v14247_v1, 16  ;;  %v7325_v47 = vrot.slane %v7323_v27, 5 }
 0x51c   : > { %v7344_v39 = vor.u32 %v7343_v61, %v13788_v10  ;;  %v7376_v25 = vshrl.u32 %v7159_v62, 16  ;;  %v9357_v27 = vcombine.low %v7268_v51, %v7278_v22  ;;  %v7162_v61 = vld [vmem:[#allocation2 + $0x84] sm:$0xf]  ;;  %v13818_v51 = vrot.slane %v7385_v5, 5  ;;  %v11543_v62 = vld [vmem:[#allocation2 + $0x88] sm:$0xf] }
 0x51d   : > { %v7326_v13 = vsel %vm12221_vm2, %v7321_v2, %v7325_v47  ;;  %v7367_v32 = vrot.slane %v7365_v52, 4  ;;  %v11542_v52 = vld [vmem:[#allocation2 + $0x74] sm:$0x1]  ;;  %v7391_v47 = vrot.slane %v7389_v18, 4  ;;  %v7400_v57 = vshrl.u32 %v7162_v61, 16 }
 0x51e   : > { %v9359_v6 = vcombine.low %v7316_v20, %v7326_v13  ;;  %v7378_v1 = vrot.slane %v7376_v25, 4  ;;  %v7371_v21 = vshll.u32 %v11542_v52, 16  ;;  %v7403_v48 = vshll.u32 %v7162_v61, 16 }
 0x51f   : > { %v7409_v22 = vshll.u32 %v11543_v62, 16  ;;  %v7413_v35 = vshrl.u32 %v11543_v62, 16  ;;  %v7395_v5 = vshll.u32 %v11545_v23, 16  ;;  %v7402_v18 = vrot.slane %v7400_v57, 4 }
 0x520   : > { %v7382_v25 = vor.u32 %v7381_v29, %v7378_v1 }
 0x521   : > { %10719 = vmatmul.mubr.bf16.vlgmr.msra.gmra.mrb[0].mxu1 %v9355_v58  ;;  %v13806_v58 = vrot.slane %v7361_v24, 5  ;;  %v7358_v24 = vor.u32 %v7357_v15, %v7354_v17  ;;  %v7373_v17 = vrot.slane %v7371_v21, 5  ;;  %v7392_v15 = vor.u32 %v7391_v47, %v13818_v51 }
 0x522   : > { %10722 = vmatprep.mubr.bf16.mxu1 %v9356_v28  ;;  %10751 = vmatpush3.bf16.msra.mxu1 %v13712_v50  ;;  %v11540_v50 = vld [vmem:[#allocation2 + $0x68] sm:$0x1]  ;;  %v7345_v28 = vrot.slane %v7344_v39, 4  ;;  %v7433_v39 = vshll.u32 %v11544_v54, 16  ;;  %v13829_v38 = vrot.slane %v7409_v22, 5  ;;  %v7415_v20 = vrot.slane %v7413_v35, 4 }
 0x523   : > { %10752 = vmatprep.subr.bf16.mxu1 %v11505_v41  ;;  %v7347_v59 = vshll.u32 %v11540_v50, 16  ;;  %v7368_v36 = vor.u32 %v7367_v32, %v13806_v58  ;;  %v7437_v50 = vshrl.u32 %v11544_v54, 16  ;;  %v7359_v33 = vrot.slane %v7358_v24, 4  ;;  %v11546_v35 = vld [vmem:[#allocation2 + $0x8c] sm:$0x1] }
 0x524   : > { %v13831_v61 = vrot.slane %v7433_v39, 5  ;;  %v7383_v1 = vrot.slane %v7382_v25, 4  ;;  %v7416_v52 = vor.u32 %v7415_v20, %v13829_v38  ;;  %v7171_v39 = vld [vmem:[#allocation2 + $0xa8] sm:$0xf] }
 0x525   : > { %v7349_v2 = vrot.slane %v7347_v59, 5  ;;  %v7340_v59 = vsel %vm12221_vm2, %v7335_v8, %v13788_v10  ;;  %v7369_v32 = vrot.slane %v7368_v36, 4  ;;  %v7364_v29 = vsel %vm12221_vm2, %v7359_v33, %v13806_v58 }
 0x526   : > { %10753 = vmatpush3.bf16.msra.mxu1 %v11505_v41  ;;  %v7165_v41 = vld [vmem:[#allocation2 + $0x90] sm:$0xf]  ;;  %v7388_v58 = vsel %vm12221_vm2, %v7383_v1, %v13818_v51  ;;  %v7475_v20 = vshll.u32 %v7171_v39, 16 }
 0x527   : > { %10754 = vmatprep.subr.bf16.mxu1 %v11506_v12  ;;  %v7424_v37 = vshrl.u32 %v7165_v41, 16  ;;  %v7427_v13 = vshll.u32 %v7165_v41, 16  ;;  %v7393_v41 = vrot.slane %v7392_v15, 4  ;;  %v7417_v15 = vrot.slane %v7416_v52, 4 }
 0x529   : > { %10723 = vmatmul.mubr.bf16.gmra.mrb[4].mxu1 %v9357_v27  ;;  %v7405_v27 = vrot.slane %v7403_v48, 5  ;;  %v7426_v10 = vrot.slane %v7424_v37, 4  ;;  %v7429_v8 = vrot.slane %v7427_v13, 5  ;;  %v7397_v48 = vrot.slane %v7395_v5, 5  ;;  %v11547_v13 = vld [vmem:[#allocation2 + $0xa0] sm:$0xf] }
 0x52a   : > { %10726 = vmatprep.mubr.bf16.mxu1 %v9358_v19  ;;  %10755 = vmatpush3.bf16.msra.mxu1 %v11506_v12  ;;  %v7350_v12 = vsel %vm12221_vm2, %v7345_v28, %v7349_v2  ;;  %v7168_v19 = vld [vmem:[#allocation2 + $0x9c] sm:$0xf]  ;;  %v7439_v2 = vrot.slane %v7437_v50, 4  ;;  %v11509_v28 = vld [vmem:[%s14056_s3 + $0x228] sm:$0xff]   ;;  %v7419_v37 = vshll.u32 %v11546_v35, 16  ;;  %v7461_v54 = vshrl.u32 %v11547_v13, 16 }
 0x52b   : > { %10756 = vmatprep.subr.bf16.mxu1 %v11507_v16  ;;  %v9360_v36 = vcombine.low %v7340_v59, %v7350_v12  ;;  %v7406_v24 = vor.u32 %v7405_v27, %v7402_v18  ;;  %v7448_v21 = vshrl.u32 %v7168_v19, 16  ;;  %v7451_v47 = vshll.u32 %v7168_v19, 16  ;;  %v11548_v59 = vld [vmem:[#allocation2 + $0x98] sm:$0x1] }
 0x52c   : > { %v7430_v62 = vor.u32 %v7429_v8, %v7426_v10  ;;  %v7440_v22 = vor.u32 %v7439_v2, %v13831_v61  ;;  %v7398_v50 = vsel %vm12221_vm2, %v7393_v41, %v7397_v48  ;;  %v7443_v12 = vshll.u32 %v11548_v59, 16  ;;  %v11511_v19 = vld [vmem:[%s14056_s3 + $0x238] sm:$0xff]  }
 0x52d   : > { %v7450_v23 = vrot.slane %v7448_v21, 4  ;;  %v7453_v5 = vrot.slane %v7451_v47, 5  ;;  %v7472_v27 = vshrl.u32 %v7171_v39, 16  ;;  %v9362_v10 = vcombine.low %v7388_v58, %v7398_v50  ;;  %v11550_v21 = vld [vmem:[#allocation2 + $0xa4] sm:$0x1] }
 0x52e   : > { %10757 = vmatpush3.bf16.msra.mxu1 %v11507_v16  ;;  %v7374_v16 = vsel %vm12221_vm2, %v7369_v32, %v7373_v17  ;;  %v11549_v32 = vld [vmem:[#allocation2 + $0xac] sm:$0xf]  ;;  %v7407_v17 = vrot.slane %v7406_v24, 4  ;;  %v7431_v51 = vrot.slane %v7430_v62, 4  ;;  %v7441_v18 = vrot.slane %v7440_v22, 4 }
 0x52f   : > { %10758 = vmatprep.subr.bf16.mxu1 %v11508_v44  ;;  %v9361_v57 = vcombine.low %v7364_v29, %v7374_v16  ;;  %v7481_v25 = vshll.u32 %v11549_v32, 16  ;;  %v7485_v33 = vshrl.u32 %v11549_v32, 16  ;;  %v7421_v8 = vrot.slane %v7419_v37, 5  ;;  %v11551_v35 = vld [vmem:[#allocation2 + $0xb8] sm:$0xf] }
 0x530   : > { %v7445_v16 = vrot.slane %v7443_v12, 5  ;;  %v7412_v41 = vsel %vm12221_vm2, %v7407_v17, %v13829_v38  ;;  %v7454_v52 = vor.u32 %v7453_v5, %v7450_v23  ;;  %v7467_v47 = vshll.u32 %v11550_v21, 16  ;;  %v11552_v39 = vld [vmem:[#allocation2 + $0xc4] sm:$0xf]  ;;  %v11553_v17 = vld [vmem:[#allocation2 + $0xb0] sm:$0x1] }
 0x531   : > { %10727 = vmatmul.mubr.bf16.gmra.mrb[8].mxu1 %v9359_v6  ;;  %v11510_v6 = vld [vmem:[%s14056_s3 + $0x230] sm:$0xff]   ;;  %v13856_v1 = vrot.slane %v7481_v25, 5  ;;  %v7487_v29 = vrot.slane %v7485_v33, 4  ;;  %v7422_v24 = vsel %vm12221_vm2, %v7417_v15, %v7421_v8  ;;  %v7474_v62 = vrot.slane %v7472_v27, 4 }
 0x532   : > { %10730 = vmatprep.mubr.bf16.mxu1 %v9360_v36  ;;  %10759 = vmatpush3.bf16.msra.mxu1 %v11508_v44  ;;  %v7457_v44 = vshll.u32 %v11547_v13, 16  ;;  %v7463_v36 = vrot.slane %v7461_v54, 4  ;;  %v7446_v48 = vsel %vm12221_vm2, %v7441_v18, %v7445_v16  ;;  %v7477_v22 = vrot.slane %v7475_v20, 5 }
 0x533   : > { %10760 = vmatprep.subr.bf16.mxu1 %v11509_v28  ;;  %v7505_v37 = vshll.u32 %v11551_v35, 16  ;;  %v7509_v13 = vshrl.u32 %v11551_v35, 16  ;;  %v7488_v54 = vor.u32 %v7487_v29, %v13856_v1  ;;  %v7529_v50 = vshll.u32 %v11552_v39, 16  ;;  %v11554_v35 = vld [vmem:[#allocation2 + $0xbc] sm:$0x1] }
 0x534   : > { %v13854_v2 = vrot.slane %v7457_v44, 5  ;;  %v7177_v44 = vld [vmem:[#allocation2 + $0xc0] sm:$0xf]  ;;  %v7533_v59 = vshrl.u32 %v11552_v39, 16  ;;  %v7455_v32 = vrot.slane %v7454_v52, 4  ;;  %v7469_v25 = vrot.slane %v7467_v47, 5 }
 0x535   : > { %v7478_v33 = vor.u32 %v7477_v22, %v7474_v62  ;;  %v7491_v15 = vshll.u32 %v11553_v17, 16  ;;  %v7520_v23 = vshrl.u32 %v7177_v44, 16  ;;  %v7523_v5 = vshll.u32 %v7177_v44, 16 }
 0x536   : > { %10761 = vmatpush3.bf16.msra.mxu1 %v11509_v28  ;;  %v7174_v28 = vld [vmem:[#allocation2 + $0xb4] sm:$0xf]  ;;  %v7464_v58 = vor.u32 %v7463_v36, %v13854_v2  ;;  %v7507_v20 = vrot.slane %v7505_v37, 5  ;;  %v7489_v8 = vrot.slane %v7488_v54, 4  ;;  %v7531_v16 = vrot.slane %v7529_v50, 5 }
 0x537   : > { %10762 = vmatprep.subr.bf16.mxu1 %v11510_v6  ;;  %v7496_v38 = vshrl.u32 %v7174_v28, 16  ;;  %v7535_v29 = vrot.slane %v7533_v59, 4  ;;  %v7479_v52 = vrot.slane %v7478_v33, 4  ;;  %v7493_v21 = vrot.slane %v7491_v15, 5  ;;  %v11555_v59 = vld [vmem:[#allocation2 + $0xc8] sm:$0x1] }
 0x538   : > { %v7465_v18 = vrot.slane %v7464_v58, 4  ;;  %v7522_v47 = vrot.slane %v7520_v23, 4  ;;  %v7515_v37 = vshll.u32 %v11554_v35, 16  ;;  %v14258_v35 = vld [vmem:[#allocation44_spill] sm:$0xff] }
 0x539   : > { %10731 = vmatmul.mubr.bf16.gmra.mrb[12].mxu1 %v9361_v57  ;;  %v7436_v57 = vsel %vm12221_vm2, %v7431_v51, %v13831_v61  ;;  %v9363_v61 = vcombine.low %v7412_v41, %v7422_v24  ;;  %v7180_v51 = vld [vmem:[#allocation2 + $0xcc] sm:$0xf]  ;;  %v7498_v27 = vrot.slane %v7496_v38, 4  ;;  %v7557_v24 = vshrl.u32 %v13744_v26, 16 }
 0x53a   : > { %10734 = vmatprep.mubr.bf16.mxu1 %v9362_v10  ;;  %10763 = vmatpush3.bf16.msra.mxu1 %v11510_v6  ;;  %v7499_v6 = vshll.u32 %v7174_v28, 16  ;;  %v9364_v12 = vcombine.low %v7436_v57, %v7446_v48  ;;  %v7511_v10 = vrot.slane %v7509_v13, 4  ;;  %v7544_v28 = vshrl.u32 %v7180_v51, 16 }
 0x53b   : > { %10764 = vmatprep.subr.bf16.mxu1 %v11511_v19  ;;  %v7547_v41 = vshll.u32 %v7180_v51, 16  ;;  %v7525_v57 = vrot.slane %v7523_v5, 5  ;;  %v7460_v48 = vsel %vm12221_vm2, %v7455_v32, %v13854_v2  ;;  %v7470_v62 = vsel %vm12221_vm2, %v7465_v18, %v7469_v25 }
 0x53c   : > { %v7501_v36 = vrot.slane %v7499_v6, 5  ;;  %v7512_v22 = vor.u32 %v7511_v10, %v7507_v20  ;;  %v7494_v58 = vsel %vm12221_vm2, %v7489_v8, %v7493_v21  ;;  %v7536_v13 = vor.u32 %v7535_v29, %v7531_v16  ;;  %v14248_v21 = vld [vmem:[#allocation32_spill] sm:$0xff] }
 0x53d   : > { %v7549_v44 = vrot.slane %v7547_v41, 5  ;;  %v7559_v6 = vrot.slane %v7557_v24, 4  ;;  %v9365_v39 = vcombine.low %v7460_v48, %v7470_v62  ;;  %v7484_v2 = vsel %vm12221_vm2, %v7479_v52, %v13856_v1  ;;  %v14252_v48 = vld [vmem:[#allocation36_spill] sm:$0xff] }
 0x53e   : > { %10765 = vmatpush3.bf16.msra.mxu1 %v11511_v19  ;;  %v7553_v19 = vshll.u32 %v13744_v26, 16  ;;  %v7502_v38 = vor.u32 %v7501_v36, %v7498_v27  ;;  %v7546_v26 = vrot.slane %v7544_v28, 4  ;;  %v7526_v50 = vor.u32 %v7525_v57, %v7522_v47  ;;  %v14251_v57 = vld [vmem:[#allocation35_spill] sm:$0xff] }
 0x53f   : > { %v7513_v32 = vrot.slane %v7512_v22, 4  ;;  %v7517_v25 = vrot.slane %v7515_v37, 5  ;;  %v7537_v33 = vrot.slane %v7536_v13, 4  ;;  %v7563_v5 = vshll.u32 %v13746_v0, 16  ;;  %v14255_v22 = vld [vmem:[#allocation41_spill] sm:$0xff]  ;;  %v14261_v13 = vld [vmem:[#allocation46_spill] sm:$0xff] }
 0x540   : > { %v7555_v54 = vrot.slane %v7553_v19, 5  ;;  %v7503_v17 = vrot.slane %v7502_v38, 4  ;;  %v7550_v15 = vor.u32 %v7549_v44, %v7546_v26  ;;  %v7527_v51 = vrot.slane %v7526_v50, 4  ;;  %v14257_v38 = vld [vmem:[#allocation42_spill] sm:$0xff] }
 0x541   : > { %10735 = vmatmul.mubr.bf16.gmra.mrb[16].mxu1 %v9363_v61  ;;  %v7539_v61 = vshll.u32 %v11555_v59, 16  ;;  %v7518_v27 = vsel %vm12221_vm2, %v7513_v32, %v7517_v25  ;;  %v7565_v29 = vrot.slane %v7563_v5, 5  ;;  %v14253_v62 = vcombine.low %v14251_v57, %v14252_v48  ;;  %v14268_v50 = vld [vmem:[#allocation50_spill] sm:$0xff]  ;;  %v14272_v32 = vld [vmem:[#allocation52_spill] sm:$0xff]  ;;  %v14273_v25 = vld [vmem:[#allocation53_spill] sm:$0xff] }
 0x542   : > { %10738 = vmatprep.mubr.bf16.mxu1 %v9364_v12  ;;  %v9366_v12 = vcombine.low %v7484_v2, %v7494_v58  ;;  %v7560_v23 = vor.u32 %v7559_v6, %v7555_v54  ;;  %v7508_v10 = vsel %vm12221_vm2, %v7503_v17, %v7507_v20  ;;  %v7551_v8 = vrot.slane %v7550_v15, 4  ;;  %v14249_v20 = vld [vmem:[#allocation33_spill] sm:$0xff]  ;;  %v14265_v6 = vld [vmem:[#allocation48_spill] sm:$0xff] }
 0x543   : > { %v7541_v18 = vrot.slane %v7539_v61, 5  ;;  %v9367_v28 = vcombine.low %v7508_v10, %v7518_v27  ;;  %v7532_v41 = vsel %vm12221_vm2, %v7527_v51, %v7531_v16  ;;  %v14250_v47 = vcombine.low %v14248_v21, %v14249_v20  ;;  %v14254_v16 = vld [vmem:[#allocation39_spill] sm:$0xff]  ;;  %v14267_v2 = vld [vmem:[#allocation49_spill] sm:$0xff] }
 0x544   : > { %v7561_v36 = vrot.slane %v7560_v23, 4  ;;  %v7556_v0 = vsel %vm12221_vm2, %v7551_v8, %v7555_v54  ;;  %v14256_v58 = vcombine.low %v14254_v16, %v14255_v22  ;;  %v14259_v37 = vcombine.low %v14257_v38, %v14258_v35  ;;  %v14264_v54 = vld [vmem:[#allocation47_spill] sm:$0xff]  ;;  %v9438_v10 = vld [vmem:[%s11618_s29 + $0x49] sm:$0xff] }
 0x545   : > { %v7542_v1 = vsel %vm12221_vm2, %v7537_v33, %v7541_v18  ;;  %v14262_v26 = vcombine.low %v14260_v30, %v14261_v13  ;;  %v14263_v44 = vcombine.low %v13385_v60, %v13392_v40  ;;  %v14269_v59 = vcombine.low %v14267_v2, %v14268_v50  ;;  %v14270_v61 = vld [vmem:[#allocation51_spill] sm:$0xff]  ;;  %v9440_v18 = vld [vmem:[%s11618_s29 + $0x61] sm:$0xff] }
 0x546   : > { %v9368_v19 = vcombine.low %v7532_v41, %v7542_v1  ;;  %v7566_v24 = vsel %vm12221_vm2, %v7561_v36, %v7565_v29  ;;  %v14274_v33 = vcombine.low %v14272_v32, %v14273_v25  ;;  %v14275_v60 = vcombine.low %v13454_v63, %v13458_v42  ;;  %v9436_v63 = vld [vmem:[%s11618_s29 + $0x31] sm:$0xff]  ;;  %v9441_v29 = vld [vmem:[%s11618_s29 + $0x69] sm:$0xff]  ;;  %v9442_v35 = vld [vmem:[%s11618_s29 + $0x79] sm:$0xff] }
 0x547   : > { %v9369_v52 = vcombine.low %v7556_v0, %v7566_v24  ;;  %v14276_v40 = vcombine.low %v13462_v49, %v13468_v3  ;;  %v9439_v0 = vld [vmem:[%s11618_s29 + $0x51] sm:$0xff]  ;;  %v9445_v13 = vld [vmem:[%s11618_s29 + $0x99] sm:$0xff] }
 0x548   : > { %v9444_v22 = vld [vmem:[%s11618_s29 + $0x91] sm:$0xff] }
 0x549   : > { %10739 = vmatmul.mubr.bf16.gmra.mrb[20].mxu1 %v9365_v39  ;;  %v14266_v39 = vcombine.low %v14264_v54, %v14265_v6  ;;  %v9443_v6 = vld [vmem:[%s11618_s29 + $0x81] sm:$0xff] }
 0x54a   : > { %10742 = vmatprep.mubr.bf16.mxu1 %v9366_v12  ;;  %v14271_v12 = vcombine.low %v13427_v46, %v14270_v61  ;;  %v13946_v46 = vld [vmem:[%s14057_s4] ss:$0 sm:$0xff] }
 0x551   : > { %10743 = vmatmul.mubr.bf16.gmra.mrb[24].mxu1 %v9367_v28 }
 0x552   : > { %10746 = vmatprep.mubr.bf16.mxu1 %v9368_v19 }
 0x559   : > { %10747 = vmatmul.mubr.bf16.gmra.mrb[28].mxu1 %v9369_v52 }
 0x55a   : > { %10766 = vmatprep.mubr.bf16.mxu1 %v14250_v47 }
 0x561   : > { %10767 = vmatmul.mubr.bf16.vlgmr.msra.gmra.mrb[0].mxu1 %v14253_v62 }
 0x562   : > { %10770 = vmatprep.mubr.bf16.mxu1 %v14256_v58 }
 0x569   : > { %10771 = vmatmul.mubr.bf16.gmra.mrb[4].mxu1 %v14259_v37 }
 0x56a   : > { %10774 = vmatprep.mubr.bf16.mxu1 %v14262_v26 }
 0x571   : > { %10775 = vmatmul.mubr.bf16.gmra.mrb[8].mxu1 %v14263_v44 }
 0x572   : > { %10778 = vmatprep.mubr.bf16.mxu1 %v14266_v39 }
 0x579   : > { %10779 = vmatmul.mubr.bf16.gmra.mrb[12].mxu1 %v14269_v59 }
 0x57a   : > { %10782 = vmatprep.mubr.bf16.mxu1 %v14271_v12 }
 0x581   : > { %10783 = vmatmul.mubr.bf16.gmra.mrb[16].mxu1 %v14274_v33 }
 0x582   : > { %10786 = vmatprep.mubr.bf16.mxu1 %v14275_v60  ;;  %v9448_v60 = vld [vmem:[%s11618_s29 + $0xc1] sm:$0xff] }
 0x589   : > { %10787 = vmatmul.mubr.bf16.gmra.mrb[20].mxu1 %v14276_v40 }
 0x58a   : > { %10790 = vmatprep.mubr.bf16.mxu1 %v9422_v53  ;;  %v9437_v53 = vld [vmem:[%s11618_s29 + $0x39] sm:$0xff] }
 0x591   : > { %10791 = vmatmul.mubr.bf16.gmra.mrb[24].mxu1 %v9423_v55 }
 0x592   : > { %10794 = vmatprep.mubr.bf16.mxu1 %v9424_v45 }
 0x599   : > { %10795 = vmatmul.mubr.bf16.gmra.mrb[28].mxu1 %v9425_v43 }
 0x634   : > { %v10768_v3 = vpop.f32.mrb[0].mxu1 }
 0x635   : > { %v8428_v42 = vadd.f32 %v10768_v3, %v13946_v46  ;;  %v8228_v49 = vpop.f32.mrb[1].mxu1 }
 0x636   : > { %v8426_v9 = vadd.f32 %v13946_v46, %v8228_v49  ;;  %v10769_v56 = vpop.f32.mrb[2].mxu1 }
 0x637   : > { %v8460_v31 = vadd.f32 %v9436_v63, %v8428_v42  ;;  %v8429_v55 = vadd.f32 %v10769_v56, %v13946_v46  ;;  %v8231_v11 = vpop.f32.mrb[3].mxu1  ;;  %v9446_v63 = vld [vmem:[%s11618_s29 + $0xa9] sm:$0xff] }
 0x638   : > { %v8458_v45 = vadd.f32 %v9434_v14, %v8426_v9  ;;  %v8427_v4 = vadd.f32 %v13946_v46, %v8231_v11  ;;  %v9449_v14 = vld [vmem:[%s11618_s29 + $0xc9] sm:$0xff] }
 0x639   : > { %v8492_v34 = vmax.f32 %v8460_v31, 0.0  ;;  %v8461_v43 = vadd.f32 %v9437_v53, %v8429_v55  ;;  %v9447_v31 = vld [vmem:[%s11618_s29 + $0xb1] sm:$0xff] }
 0x63a   : > { %v8490_v17 = vmax.f32 %v8458_v45, 0.0  ;;  %v8459_v15 = vadd.f32 %v9435_v7, %v8427_v4 }
 0x63b   : > { %8524 = vst [vmem:[%s13959_s10 + $0x10] sm:$0xff] %v8492_v34  ;;  %v8493_v23 = vmax.f32 %v8461_v43, 0.0 }
 0x63c   : > { %8522 = vst [vmem:[%s13959_s10] sm:$0xff] %v8490_v17  ;;  %v8491_v5 = vmax.f32 %v8459_v15, 0.0  ;;  %v10772_v51 = vpop.f32.mrb[4].mxu1 }
 0x63d   : > { %8525 = vst [vmem:[%s13959_s10 + $0x18] sm:$0xff] %v8493_v23  ;;  %v8432_v27 = vadd.f32 %v10772_v51, %v13946_v46  ;;  %v8244_v1 = vpop.f32.mrb[5].mxu1  ;;  %v9452_v23 = vld [vmem:[%s11618_s29 + $0xf1] sm:$0xff] }
 0x63e   : > { %8523 = vst [vmem:[%s13959_s10 + $0x8] sm:$0xff] %v8491_v5  ;;  %v8430_v8 = vadd.f32 %v13946_v46, %v8244_v1  ;;  %v10773_v36 = vpop.f32.mrb[6].mxu1 }
 0x63f   : > { %v8464_v28 = vadd.f32 %v9440_v18, %v8432_v27  ;;  %v8433_v41 = vadd.f32 %v10773_v36, %v13946_v46  ;;  %v8247_v19 = vpop.f32.mrb[7].mxu1  ;;  %v9450_v18 = vld [vmem:[%s11618_s29 + $0xd9] sm:$0xff] }
 0x640   : > { %v8462_v24 = vadd.f32 %v9438_v10, %v8430_v8  ;;  %v8431_v52 = vadd.f32 %v13946_v46, %v8247_v19  ;;  %v9453_v10 = vld [vmem:[%s11618_s29 + $0xf9] sm:$0xff] }
 0x641   : > { %v8496_v21 = vmax.f32 %v8464_v28, 0.0  ;;  %v8465_v20 = vadd.f32 %v9441_v29, %v8433_v41  ;;  %v9451_v28 = vld [vmem:[%s11618_s29 + $0xe1] sm:$0xff] }
 0x642   : > { %v8494_v47 = vmax.f32 %v8462_v24, 0.0  ;;  %v8463_v57 = vadd.f32 %v9439_v0, %v8431_v52 }
 0x643   : > { %8528 = vst [vmem:[%s13959_s10 + $0x30] sm:$0xff] %v8496_v21  ;;  %v8497_v48 = vmax.f32 %v8465_v20, 0.0 }
 0x644   : > { %8526 = vst [vmem:[%s13959_s10 + $0x20] sm:$0xff] %v8494_v47  ;;  %v8495_v62 = vmax.f32 %v8463_v57, 0.0  ;;  %v10776_v16 = vpop.f32.mrb[8].mxu1 }
 0x645   : > { %8529 = vst [vmem:[%s13959_s10 + $0x38] sm:$0xff] %v8497_v48  ;;  %v8436_v58 = vadd.f32 %v10776_v16, %v13946_v46  ;;  %v8260_v38 = vpop.f32.mrb[9].mxu1  ;;  %v9456_v48 = vld [vmem:[%s11618_s29 + $0x121] sm:$0xff] }
 0x646   : > { %8527 = vst [vmem:[%s13959_s10 + $0x28] sm:$0xff] %v8495_v62  ;;  %v8434_v37 = vadd.f32 %v13946_v46, %v8260_v38  ;;  %v10777_v30 = vpop.f32.mrb[10].mxu1 }
 0x647   : > { %v8468_v26 = vadd.f32 %v9444_v22, %v8436_v58  ;;  %v8437_v44 = vadd.f32 %v10777_v30, %v13946_v46  ;;  %v8263_v54 = vpop.f32.mrb[11].mxu1  ;;  %v9454_v22 = vld [vmem:[%s11618_s29 + $0x109] sm:$0xff] }
 0x648   : > { %v8466_v39 = vadd.f32 %v9442_v35, %v8434_v37  ;;  %v8435_v2 = vadd.f32 %v13946_v46, %v8263_v54  ;;  %v9457_v35 = vld [vmem:[%s11618_s29 + $0x129] sm:$0xff] }
 0x649   : > { %v8500_v50 = vmax.f32 %v8468_v26, 0.0  ;;  %v8469_v59 = vadd.f32 %v9445_v13, %v8437_v44  ;;  %v9455_v26 = vld [vmem:[%s11618_s29 + $0x111] sm:$0xff] }
 0x64a   : > { %v8498_v61 = vmax.f32 %v8466_v39, 0.0  ;;  %v8467_v12 = vadd.f32 %v9443_v6, %v8435_v2 }
 0x64b   : > { %8532 = vst [vmem:[%s13959_s10 + $0x50] sm:$0xff] %v8500_v50  ;;  %v8501_v32 = vmax.f32 %v8469_v59, 0.0 }
 0x64c   : > { %8530 = vst [vmem:[%s13959_s10 + $0x40] sm:$0xff] %v8498_v61  ;;  %v8499_v25 = vmax.f32 %v8467_v12, 0.0  ;;  %v10780_v33 = vpop.f32.mrb[12].mxu1 }
 0x64d   : > { %8533 = vst [vmem:[%s13959_s10 + $0x58] sm:$0xff] %v8501_v32  ;;  %v8440_v40 = vadd.f32 %v10780_v33, %v13946_v46  ;;  %v8276_v3 = vpop.f32.mrb[13].mxu1  ;;  %v9460_v32 = vld [vmem:[%s11618_s29 + $0x151] sm:$0xff] }
 0x64e   : > { %8531 = vst [vmem:[%s13959_s10 + $0x48] sm:$0xff] %v8499_v25  ;;  %v8438_v42 = vadd.f32 %v13946_v46, %v8276_v3  ;;  %v10781_v49 = vpop.f32.mrb[14].mxu1 }
 0x64f   : > { %v8472_v9 = vadd.f32 %v9448_v60, %v8440_v40  ;;  %v8441_v56 = vadd.f32 %v10781_v49, %v13946_v46  ;;  %v8279_v53 = vpop.f32.mrb[15].mxu1  ;;  %v9458_v60 = vld [vmem:[%s11618_s29 + $0x139] sm:$0xff] }
 0x650   : > { %v8470_v55 = vadd.f32 %v9446_v63, %v8438_v42  ;;  %v8439_v11 = vadd.f32 %v13946_v46, %v8279_v53  ;;  %v9461_v63 = vld [vmem:[%s11618_s29 + $0x159] sm:$0xff] }
 0x651   : > { %v8504_v7 = vmax.f32 %v8472_v9, 0.0  ;;  %v8473_v45 = vadd.f32 %v9449_v14, %v8441_v56  ;;  %v9459_v9 = vld [vmem:[%s11618_s29 + $0x141] sm:$0xff] }
 0x652   : > { %v8502_v4 = vmax.f32 %v8470_v55, 0.0  ;;  %v8471_v34 = vadd.f32 %v9447_v31, %v8439_v11 }
 0x653   : > { %8536 = vst [vmem:[%s13959_s10 + $0x70] sm:$0xff] %v8504_v7  ;;  %v8505_v43 = vmax.f32 %v8473_v45, 0.0 }
 0x654   : > { %8534 = vst [vmem:[%s13959_s10 + $0x60] sm:$0xff] %v8502_v4  ;;  %v8503_v17 = vmax.f32 %v8471_v34, 0.0  ;;  %v10784_v15 = vpop.f32.mrb[16].mxu1 }
 0x655   : > { %8537 = vst [vmem:[%s13959_s10 + $0x78] sm:$0xff] %v8505_v43  ;;  %v8444_v5 = vadd.f32 %v10784_v15, %v13946_v46  ;;  %v8292_v51 = vpop.f32.mrb[17].mxu1  ;;  %v9464_v43 = vld [vmem:[%s11618_s29 + $0x181] sm:$0xff] }
 0x656   : > { %8535 = vst [vmem:[%s13959_s10 + $0x68] sm:$0xff] %v8503_v17  ;;  %v8442_v27 = vadd.f32 %v13946_v46, %v8292_v51  ;;  %v10785_v1 = vpop.f32.mrb[18].mxu1 }
 0x657   : > { %v8476_v8 = vadd.f32 %v9452_v23, %v8444_v5  ;;  %v8445_v36 = vadd.f32 %v10785_v1, %v13946_v46  ;;  %v8295_v29 = vpop.f32.mrb[19].mxu1  ;;  %v9462_v23 = vld [vmem:[%s11618_s29 + $0x169] sm:$0xff] }
 0x658   : > { %v8474_v41 = vadd.f32 %v9450_v18, %v8442_v27  ;;  %v8443_v19 = vadd.f32 %v13946_v46, %v8295_v29  ;;  %v9465_v18 = vld [vmem:[%s11618_s29 + $0x189] sm:$0xff] }
 0x659   : > { %v8508_v0 = vmax.f32 %v8476_v8, 0.0  ;;  %v8477_v24 = vadd.f32 %v9453_v10, %v8445_v36  ;;  %v9463_v8 = vld [vmem:[%s11618_s29 + $0x171] sm:$0xff] }
 0x65a   : > { %v8506_v52 = vmax.f32 %v8474_v41, 0.0  ;;  %v8475_v21 = vadd.f32 %v9451_v28, %v8443_v19 }
 0x65b   : > { %8540 = vst [vmem:[%s13959_s10 + $0x90] sm:$0xff] %v8508_v0  ;;  %v8509_v20 = vmax.f32 %v8477_v24, 0.0 }
 0x65c   : > { %8538 = vst [vmem:[%s13959_s10 + $0x80] sm:$0xff] %v8506_v52  ;;  %v8507_v47 = vmax.f32 %v8475_v21, 0.0  ;;  %v10788_v57 = vpop.f32.mrb[20].mxu1 }
 0x65d   : > { %8541 = vst [vmem:[%s13959_s10 + $0x98] sm:$0xff] %v8509_v20  ;;  %v8448_v62 = vadd.f32 %v10788_v57, %v13946_v46  ;;  %v8308_v16 = vpop.f32.mrb[21].mxu1 }
 0x65e   : > { %8539 = vst [vmem:[%s13959_s10 + $0x88] sm:$0xff] %v8507_v47  ;;  %v8446_v58 = vadd.f32 %v13946_v46, %v8308_v16  ;;  %v10789_v38 = vpop.f32.mrb[22].mxu1 }
 0x65f   : > { %v8480_v37 = vadd.f32 %v9456_v48, %v8448_v62  ;;  %v8449_v30 = vadd.f32 %v10789_v38, %v13946_v46  ;;  %v8311_v13 = vpop.f32.mrb[23].mxu1 }
 0x660   : > { %v8478_v44 = vadd.f32 %v9454_v22, %v8446_v58  ;;  %v8447_v54 = vadd.f32 %v13946_v46, %v8311_v13 }
 0x661   : > { %v8512_v6 = vmax.f32 %v8480_v37, 0.0  ;;  %v8481_v39 = vadd.f32 %v9457_v35, %v8449_v30 }
 0x662   : > { %v8510_v2 = vmax.f32 %v8478_v44, 0.0  ;;  %v8479_v50 = vadd.f32 %v9455_v26, %v8447_v54 }
 0x663   : > { %8544 = vst [vmem:[%s13959_s10 + $0xb0] sm:$0xff] %v8512_v6  ;;  %v8513_v59 = vmax.f32 %v8481_v39, 0.0 }
 0x664   : > { %8542 = vst [vmem:[%s13959_s10 + $0xa0] sm:$0xff] %v8510_v2  ;;  %v8511_v61 = vmax.f32 %v8479_v50, 0.0  ;;  %v10792_v12 = vpop.f32.mrb[24].mxu1 }
 0x665   : > { %8545 = vst [vmem:[%s13959_s10 + $0xb8] sm:$0xff] %v8513_v59  ;;  %v8452_v25 = vadd.f32 %v10792_v12, %v13946_v46  ;;  %v8324_v33 = vpop.f32.mrb[25].mxu1 }
 0x666   : > { %8543 = vst [vmem:[%s13959_s10 + $0xa8] sm:$0xff] %v8511_v61  ;;  %v8450_v40 = vadd.f32 %v13946_v46, %v8324_v33  ;;  %v10793_v3 = vpop.f32.mrb[26].mxu1 }
 0x667   : > { %v8484_v42 = vadd.f32 %v9460_v32, %v8452_v25  ;;  %v8453_v49 = vadd.f32 %v10793_v3, %v13946_v46  ;;  %v8327_v14 = vpop.f32.mrb[27].mxu1 }
 0x668   : > { %v8482_v56 = vadd.f32 %v9458_v60, %v8450_v40  ;;  %v8451_v53 = vadd.f32 %v13946_v46, %v8327_v14 }
 0x669   : > { %v8516_v31 = vmax.f32 %v8484_v42, 0.0  ;;  %v8485_v55 = vadd.f32 %v9461_v63, %v8453_v49 }
 0x66a   : > { %v8514_v11 = vmax.f32 %v8482_v56, 0.0  ;;  %v8483_v7 = vadd.f32 %v9459_v9, %v8451_v53 }
 0x66b   : > { %8548 = vst [vmem:[%s13959_s10 + $0xd0] sm:$0xff] %v8516_v31  ;;  %v8517_v45 = vmax.f32 %v8485_v55, 0.0 }
 0x66c   : > { %8546 = vst [vmem:[%s13959_s10 + $0xc0] sm:$0xff] %v8514_v11  ;;  %v8515_v4 = vmax.f32 %v8483_v7, 0.0  ;;  %v10796_v34 = vpop.f32.mrb[28].mxu1 }
 0x66d   : > { %8549 = vst [vmem:[%s13959_s10 + $0xd8] sm:$0xff] %v8517_v45  ;;  %v8456_v17 = vadd.f32 %v10796_v34, %v13946_v46  ;;  %v8340_v15 = vpop.f32.mrb[29].mxu1 }
 0x66e   : > { %8547 = vst [vmem:[%s13959_s10 + $0xc8] sm:$0xff] %v8515_v4  ;;  %v8454_v5 = vadd.f32 %v13946_v46, %v8340_v15  ;;  %v10797_v51 = vpop.f32.mrb[30].mxu1 }
 0x66f   : > { %v8488_v27 = vadd.f32 %v9464_v43, %v8456_v17  ;;  %v8457_v1 = vadd.f32 %v10797_v51, %v13946_v46  ;;  %v8343_v10 = vpop.f32.mrb[31].mxu1 }
 0x670   : > { %v8486_v36 = vadd.f32 %v9462_v23, %v8454_v5  ;;  %v8455_v29 = vadd.f32 %v13946_v46, %v8343_v10 }
 0x671   : > { %v8520_v28 = vmax.f32 %v8488_v27, 0.0  ;;  %v8489_v41 = vadd.f32 %v9465_v18, %v8457_v1 }
 0x672   : > { %v8518_v19 = vmax.f32 %v8486_v36, 0.0  ;;  %v8487_v0 = vadd.f32 %v9463_v8, %v8455_v29 }
 0x673   : > { %8552 = vst [vmem:[%s13959_s10 + $0xf0] sm:$0xff] %v8520_v28  ;;  %v8521_v24 = vmax.f32 %v8489_v41, 0.0 }
 0x674   : > { %8550 = vst [vmem:[%s13959_s10 + $0xe0] sm:$0xff] %v8518_v19  ;;  %v8519_v52 = vmax.f32 %v8487_v0, 0.0 }
 0x675   : > { %8553 = vst [vmem:[%s13959_s10 + $0xf8] sm:$0xff] %v8521_v24 }
 0x676   : > { %8551 = vst [vmem:[%s13959_s10 + $0xe8] sm:$0xff] %v8519_v52 }
 0x677 PF: > { %s15_s18 = sadd.s32 1, %s11562_s18  }
 0x678   : > { %p12_p4 = scmp.ge.s32.totalorder %s15_s18, 4  }
 0x67a   :  { %14 = sbr.rel (!%p12_p4) target bundleno = 1 (0x1), region = 90 }

</bundles_post_ra>
